<compile_context>
chip_gen: v7x
topology: tpu7x:2x2x1
jax: 0.10.0
libtpu: 0.0.40
codegen_flags: <defaults>
</compile_context>

<pallas_src>
import jax
import jax.numpy as jnp
from jax import lax
from jax.experimental import pallas as pl
from jax.experimental.pallas import tpu as pltpu

BN_EPS = 1e-5
LRELU_SLOPE = 0.2
MIN_ROW_TILE = 64
MAX_ROW_TILE = 1024          # matmul pass (bigger tiles amortize ~0.35us/grid-step)
AFFINE_MAX_ROW_TILE = 2048   # pure HBM-roofline pass, tiny VMEM footprint


def _round_up(x, m):
    return ((x + m - 1) // m) * m


def _pick_vmem_limit():
    """Generation-aware scoped-VMEM limit: ~96 MiB on v5e/v6e (128 MiB physical),
    ~48 MiB on v7x (64 MiB physical); safe 48 MiB fallback if the query fails."""
    cap = 64 * 1024 * 1024
    try:
        cap = int(getattr(pltpu.get_tpu_info(), "vmem_capacity_bytes", cap))
    except Exception:
        pass
    return int(min(96 * 1024 * 1024, (cap * 3) // 4))


VMEM_LIMIT = _pick_vmem_limit()


def _choose_row_tile(r, per_row_bytes, resident_bytes, max_tile=MAX_ROW_TILE):
    """Row tile from the actual VMEM budget: subtract the resident (double-buffered)
    weight/scale blocks, double-buffer the row-tiled pipeline blocks."""
    budget = max(VMEM_LIMIT - resident_bytes - (4 << 20), 2 << 20)
    tr = budget // max(2 * per_row_bytes, 1)
    tr = min(int(tr), max_tile)
    # Keep >= 4 grid steps when r allows so the "parallel" row axis splits evenly
    # across v7x's two TensorCores (harmless on single-TC v5e/v6e).
    tr = min(tr, max(MIN_ROW_TILE, _round_up((r + 3) // 4, MIN_ROW_TILE)))
    tr = max(MIN_ROW_TILE, (tr // MIN_ROW_TILE) * MIN_ROW_TILE)
    return tr


# ----------------------------------------------------------------------------
# Pallas kernels
# ----------------------------------------------------------------------------
def _make_conv_matmul_kernel(tr, r_true, fuse_act):
    """(TR, K) bf16 x (K, Cp) bf16 -> f32 MXU accumulation, bf16 y + partial BN stats.
    If fuse_act: applies the PREVIOUS layer's folded BN affine + LeakyReLU to the
    patch tile first (spatial conv padding carries a sentinel that maps to 0 here)."""
    mask_rows = (r_true % tr) != 0   # row-padding exists -> mask it out of the stats

    def kernel(*refs):
        if fuse_act:
            p_ref, scale_ref, shift_ref, w_ref, y_ref, stats_ref = refs
            z = p_ref[...].astype(jnp.float32) * scale_ref[...] + shift_ref[...]
            a = jnp.where(z >= 0, z, LRELU_SLOPE * z).astype(jnp.bfloat16)
        else:
            p_ref, w_ref, y_ref, stats_ref = refs
            a = p_ref[...]
        y = jnp.dot(a, w_ref[...], preferred_element_type=jnp.float32)
        ys = y
        if mask_rows:
            row = pl.program_id(0) * tr + lax.broadcasted_iota(jnp.int32, (tr, 1), 0)
            ys = jnp.where(row < r_true, y, 0.0)
        # Per-tile partial BN statistics from the f32 accumulator.
        stats_ref[0, 0:1, :] = jnp.sum(ys, axis=0, keepdims=True)
        stats_ref[0, 1:2, :] = jnp.sum(ys * ys, axis=0, keepdims=True)
        y_ref[...] = y.astype(y_ref.dtype)          # bf16 HBM roundtrip

    return kernel


def _affine_lrelu_kernel(y_ref, scale_ref, shift_ref, o_ref):
    # Folded BN (scale/shift precomputed once per layer) + LeakyReLU(0.2).
    z = y_ref[...].astype(jnp.float32) * scale_ref[...] + shift_ref[...]
    o_ref[...] = jnp.where(z >= 0, z, LRELU_SLOPE * z).astype(o_ref.dtype)


# ----------------------------------------------------------------------------
# pallas_call wrappers (tiled over R, "parallel" grid axis)
# ----------------------------------------------------------------------------
def _conv_matmul(patches, wmat_p, scale_k, shift_k, tr, r_true):
    rp, k = patches.shape
    cp = wmat_p.shape[1]
    n_r = rp // tr
    fuse = scale_k is not None
    kernel = _make_conv_matmul_kernel(tr, r_true, fuse)

    in_specs = [pl.BlockSpec((tr, k), lambda i: (i, 0))]
    args = [patches]
    if fuse:
        in_specs += [pl.BlockSpec((1, k), lambda i: (0, 0)),
                     pl.BlockSpec((1, k), lambda i: (0, 0))]
        args += [scale_k, shift_k]
    in_specs.append(pl.BlockSpec((k, cp), lambda i: (0, 0)))
    args.append(wmat_p)

    flops = 2 * rp * k * cp
    bytes_accessed = (rp * k * 2 + k * cp * 2 + rp * cp * 2 + n_r * 2 * cp * 4
                      + (2 * k * 4 if fuse else 0))
    return pl.pallas_call(
        kernel,
        out_shape=(jax.ShapeDtypeStruct((rp, cp), jnp.bfloat16),
                   jax.ShapeDtypeStruct((n_r, 2, cp), jnp.float32)),
        grid_spec=pltpu.PrefetchScalarGridSpec(
            num_scalar_prefetch=0,
            grid=(n_r,),
            in_specs=in_specs,
            out_specs=[pl.BlockSpec((tr, cp), lambda i: (i, 0)),
                       pl.BlockSpec((1, 2, cp), lambda i: (i, 0, 0))],
        ),
        compiler_params=pltpu.CompilerParams(
            dimension_semantics=("parallel",),
            vmem_limit_bytes=VMEM_LIMIT),
        cost_estimate=pl.CostEstimate(flops=flops, transcendentals=0,
                                      bytes_accessed=bytes_accessed),
    )(*args)


def _affine_lrelu(y2d, scale, shift):
    r, cp = y2d.shape
    tr = _choose_row_tile(r, 8 * cp, 16 * cp, max_tile=AFFINE_MAX_ROW_TILE)
    rp = _round_up(r, tr)
    if rp != r:
        y2d = jnp.pad(y2d, ((0, rp - r), (0, 0)))
    out = pl.pallas_call(
        _affine_lrelu_kernel,
        out_shape=jax.ShapeDtypeStruct((rp, cp), jnp.bfloat16),
        grid_spec=pltpu.PrefetchScalarGridSpec(
            num_scalar_prefetch=0,
            grid=(rp // tr,),
            in_specs=[pl.BlockSpec((tr, cp), lambda i: (i, 0)),
                      pl.BlockSpec((1, cp), lambda i: (0, 0)),
                      pl.BlockSpec((1, cp), lambda i: (0, 0))],
            out_specs=pl.BlockSpec((tr, cp), lambda i: (i, 0)),
        ),
        compiler_params=pltpu.CompilerParams(
            dimension_semantics=("parallel",),
            vmem_limit_bytes=VMEM_LIMIT),
        cost_estimate=pl.CostEstimate(flops=2 * rp * cp, transcendentals=0,
                                      bytes_accessed=rp * cp * 4 + 2 * cp * 4),
    )(y2d, scale, shift)
    return out[:r]


# ----------------------------------------------------------------------------
# Glue: im2col (NHWC, bf16, lane-dense C) on a pre-padded input
# ----------------------------------------------------------------------------
def im2col_nhwc(x, ksize, stride):
    """x: (B, H, W, C), already spatially padded -> (B*Ho*Wo, ksize*ksize*C), Ho, Wo."""
    B, H, W, C = x.shape
    Ho = (H - ksize) // stride + 1
    Wo = (W - ksize) // stride + 1
    cols = []
    for kh in range(ksize):
        for kw in range(ksize):
            cols.append(x[:, kh: kh + stride * Ho: stride,
                          kw: kw + stride * Wo: stride, :])
    patches = jnp.stack(cols, axis=3)          # (B, Ho, Wo, KH*KW, C)
    return patches.reshape(B * Ho * Wo, ksize * ksize * C), Ho, Wo


# ----------------------------------------------------------------------------
# Parameters & forward pass
# ----------------------------------------------------------------------------
def make_params(key, in_channels, ndf, m):
    """Hidden: (w_oihw, gamma, beta, wmat_padded_bf16, gamma_padded, beta_padded).
    Final: (w_oihw, bias, wvec_padded). The conv bias before training-mode BN is
    exactly cancelled by the mean subtraction -> omitted from both paths."""
    params = []
    cin = in_channels
    cin_p = _round_up(in_channels, 8)       # first layer: K = 16*cin_p multiple of 128
    for i in m[:-1]:
        cout = ndf * i
        cp = _round_up(cout, 256) if cout > 128 else _round_up(cout, 128)
        key, wk, gk, bk = jax.random.split(key, 4)
        w = jax.random.normal(wk, (cout, cin, 4, 4), jnp.float32) * 0.02
        # (O,I,KH,KW) -> (KH,KW,I,O); zero rows for phantom input channels, zero cols
        # for phantom (lane-padding) output channels; flatten to (16*cin_p, cp) bf16.
        whwio = jnp.transpose(w, (2, 3, 1, 0))
        whwio = jnp.pad(whwio, ((0, 0), (0, 0), (0, cin_p - cin), (0, cp - cout)))
        wmat_p = whwio.reshape(16 * cin_p, cp).astype(jnp.bfloat16)
        gamma = 1.0 + 0.1 * jax.random.normal(gk, (cout,), jnp.float32)
        beta = 0.1 * jax.random.normal(bk, (cout,), jnp.float32)
        gamma_p = jnp.pad(gamma, (0, cp - cout))    # phantom channels -> scale 0
        beta_p = jnp.pad(beta, (0, cp - cout))      # phantom channels -> shift 0
        params.append((w, gamma, beta, wmat_p, gamma_p, beta_p))
        cin, cin_p = cout, cp                       # carry lane-padded channels
    key, wk, bk = jax.random.split(key, 3)
    w = jax.random.normal(wk, (1, cin, 4, 4), jnp.float32) * 0.02
    whwio = jnp.pad(jnp.transpose(w, (2, 3, 1, 0)),
                    ((0, 0), (0, 0), (0, cin_p - cin), (0, 0)))
    wvec_p = whwio.reshape(16 * cin_p, 1)
    bias = 0.1 * jax.random.normal(bk, (1,), jnp.float32)
    params.append((w, bias, wvec_p))
    return params


def dc_discriminator_forward(img_nchw, params):
    hidden = params[:-1]
    B = img_nchw.shape[0]
    # NCHW -> NHWC bf16; pad input channels to a multiple of 8 so K is 128-aligned.
    x = jnp.transpose(img_nchw, (0, 2, 3, 1)).astype(jnp.bfloat16)
    cin0 = x.shape[-1]
    cin0_p = _round_up(cin0, 8)
    if cin0_p != cin0:
        x = jnp.pad(x, ((0, 0), (0, 0), (0, 0), (0, cin0_p - cin0)))

    pending = None   # (y4d bf16, scale (Cp,) f32, shift (Cp,) f32) awaiting BN+LeakyReLU
    for (_, _, _, wmat_p, gamma_p, beta_p) in hidden:
        if pending is None:
            xin = jnp.pad(x, ((0, 0), (1, 1), (1, 1), (0, 0)))      # conv pad=1, zeros
            scale_k = shift_k = None
        else:
            y_prev, scale, shift = pending
            # Conv pads the *activation* with 0.  Since BN+LeakyReLU is folded into
            # this layer's matmul, pad y with the per-channel sentinel the folded
            # affine maps back to 0 (phantom channels have scale=0 -> sentinel 0).
            # NOTE: only degenerate if a real channel has gamma == 0 exactly.
            safe = jnp.where(scale == 0.0, 1.0, scale)
            pad_val = jnp.where(scale == 0.0, 0.0, -shift / safe).astype(jnp.bfloat16)
            Bp, Hp, Wp, Cpp = y_prev.shape
            xin = jnp.broadcast_to(pad_val, (Bp, Hp + 2, Wp + 2, Cpp))
            xin = xin.at[:, 1:-1, 1:-1, :].set(y_prev)
            scale_k = jnp.tile(scale, 16)[None, :]                  # (1, 16*Cp) f32
            shift_k = jnp.tile(shift, 16)[None, :]

        patches, ho, wo = im2col_nhwc(xin, ksize=4, stride=2)
        r, k = patches.shape
        cp = wmat_p.shape[1]
        fused = scale_k is not None
        per_row = 2 * k + 2 * cp + (6 * k if fused else 0)          # + in-kernel temps
        resident = 2 * k * cp * 2 + (4 * k * 4 if fused else 0)     # dbl-buffered weights
        tr = _choose_row_tile(r, per_row, resident)
        rp = _round_up(r, tr)
        if rp != r:
            # Zero rows are masked out of the stats in-kernel and sliced off below.
            patches = jnp.pad(patches, ((0, rp - r), (0, 0)))

        y, stats = _conv_matmul(patches, wmat_p, scale_k, shift_k, tr, r)

        # Cross-tile BN reduction + affine folding: O(Cout), once per layer.
        # TODO(synk): E[y^2]-mean^2 in f32 is cancellation-prone for near-constant
        # channels of trained nets; switch to shifted/Welford accumulation if needed.
        mean = jnp.sum(stats[:, 0, :], axis=0) / r
        var = jnp.maximum(jnp.sum(stats[:, 1, :], axis=0) / r - mean * mean, 0.0)
        inv = lax.rsqrt(var + BN_EPS)
        scale = gamma_p * inv
        shift = beta_p - mean * scale
        pending = (y[:r].reshape(B, ho, wo, cp), scale, shift)

    # Last hidden layer: standalone fused BN-affine + LeakyReLU (feeds the final conv).
    y_last, scale, shift = pending
    Bl, Hl, Wl, Cl = y_last.shape
    a = _affine_lrelu(y_last.reshape(Bl * Hl * Wl, Cl), scale[None, :], shift[None, :])
    a = a.reshape(Bl, Hl, Wl, Cl)

    # Final Conv2d(cin, 1, k=4, s=2, p=0) + Sigmoid: Cout=1 would leave >99% of MXU
    # lanes idle and be dominated by launch/DMA overhead -> plain JAX.
    _, bias, wvec_p = params[-1]
    patches, ho, wo = im2col_nhwc(a, ksize=4, stride=2)
    z = patches.astype(jnp.float32) @ wvec_p + bias
    out = jax.nn.sigmoid(z).reshape(Bl, ho, wo, 1)
    return jnp.transpose(out, (0, 3, 1, 2))                         # back to NCHW


# ----------------------------------------------------------------------------
# Pure-JAX f32 reference (lax.conv) for correctness checking
# ----------------------------------------------------------------------------
def reference_forward(img_nchw, params):
    x = img_nchw
    dn = lax.conv_dimension_numbers(x.shape, params[0][0].shape,
                                    ("NCHW", "OIHW", "NCHW"))
    for (w, gamma, beta, *_rest) in params[:-1]:
        x = lax.conv_general_dilated(x, w, (2, 2), ((1, 1), (1, 1)),
                                     dimension_numbers=dn)
        mean = jnp.mean(x, axis=(0, 2, 3), keepdims=True)
        var = jnp.mean((x - mean) ** 2, axis=(0, 2, 3), keepdims=True)
        x = (x - mean) * lax.rsqrt(var + BN_EPS)
        x = x * gamma.reshape(1, -1, 1, 1) + beta.reshape(1, -1, 1, 1)
        x = jnp.where(x >= 0, x, LRELU_SLOPE * x)
    w, bias, _ = params[-1]
    x = lax.conv_general_dilated(x, w, (2, 2), ((0, 0), (0, 0)),
                                 dimension_numbers=dn)
    return jax.nn.sigmoid(x + bias.reshape(1, -1, 1, 1))


if __name__ == "__main__":
    # in_channels=4, ndf=8, m=[1,2,4]: two conv+BN+LeakyReLU layers + final conv+sigmoid.
    # batch=16 with 16x16 inputs -> layer-1 im2col has 1024 rows (4 grid tiles), which
    # exercises the multi-tile cross-tile BN-stats reduction and fused-affine paths.
    in_channels, ndf, m = 4, 8, [1, 2, 4]
    key = jax.random.PRNGKey(0)
    key, xk = jax.random.split(key)
    img = jax.random.normal(xk, (16, in_channels, 16, 16), jnp.float32)

    params = make_params(key, in_channels, ndf, m)

    fwd = jax.jit(dc_discriminator_forward)
    out = jax.block_until_ready(fwd(img, params))

    ref = reference_forward(img, params)
    assert out.shape == (16, 1, 1, 1), out.shape
    # bf16 operands / bf16 y intermediate (f32 MXU accumulation) vs f32 reference.
    err = float(jnp.max(jnp.abs(out.astype(jnp.float32) - ref)))
    assert err < 4e-2, err

    print("KERNEL_OK")
</pallas_src>

<mosaic_0001>
module attributes {stable_mosaic.version = 11 : i64} {
  func.func @kernel(%arg0: i32, %arg1: memref<256x128xbf16, #tpu.memory_space<vmem>>, %arg2: memref<128x128xbf16, #tpu.memory_space<vmem>>, %arg3: memref<256x128xbf16, #tpu.memory_space<vmem>>, %arg4: memref<1x2x128xf32, #tpu.memory_space<vmem>>) attributes {dimension_semantics = [#tpu.dimension_semantics<parallel>], iteration_bounds = array<i64: 4>, scalar_prefetch = 0 : i64, scratch_operands = 0 : i64, tpu.core_type = #tpu.core_type<tc>, window_params = [{transform_indices = @transform_0, window_bounds = array<i64: 256, 128>}, {pipeline_mode = #tpu.pipeline_mode<synchronous>, transform_indices = @transform_1, window_bounds = array<i64: 128, 128>}, {transform_indices = @transform_2, window_bounds = array<i64: 256, 128>}, {transform_indices = @transform_3, window_bounds = array<i64: 1, 2, 128>}]} {
    %c0 = arith.constant 0 : index
    %c0_0 = arith.constant 0 : index
    %0 = vector.load %arg1[%c0, %c0_0] : memref<256x128xbf16, #tpu.memory_space<vmem>>, vector<256x128xbf16>
    %c0_1 = arith.constant 0 : index
    %c0_2 = arith.constant 0 : index
    %1 = vector.load %arg2[%c0_1, %c0_2] : memref<128x128xbf16, #tpu.memory_space<vmem>>, vector<128x128xbf16>
    %cst = arith.constant dense<0.000000e+00> : vector<256x128xf32>
    %2 = tpu.matmul %0, %1, %cst {dimension_numbers = #tpu.dot_dimension_numbers<[1], [0], [0], [1], [0, 0, 1, 1], [], []>} : vector<256x128xbf16>, vector<128x128xbf16>, vector<256x128xf32> -> vector<256x128xf32>
    %cst_3 = arith.constant dense<0.000000e+00> : vector<128xf32>
    %3 = vector.multi_reduction <add>, %2, %cst_3 [0] : vector<256x128xf32> to vector<128xf32>
    %4 = vector.shape_cast %3 : vector<128xf32> to vector<1x128xf32>
    %c0_4 = arith.constant 0 : index
    %c0_5 = arith.constant 0 : index
    %c0_6 = arith.constant 0 : index
    %5 = vector.load %arg4[%c0_4, %c0_5, %c0_6] : memref<1x2x128xf32, #tpu.memory_space<vmem>>, vector<1x1x128xf32>
    %6 = vector.shape_cast %5 : vector<1x1x128xf32> to vector<1x128xf32>
    %7 = vector.shape_cast %4 : vector<1x128xf32> to vector<1x1x128xf32>
    tpu.vector_store %arg4[%c0_4, %c0_5, %c0_6], %7 {strides = array<i32>} : memref<1x2x128xf32, #tpu.memory_space<vmem>>, vector<1x1x128xf32>,
    %8 = arith.mulf %2, %2 : vector<256x128xf32>
    %cst_7 = arith.constant dense<0.000000e+00> : vector<128xf32>
    %9 = vector.multi_reduction <add>, %8, %cst_7 [0] : vector<256x128xf32> to vector<128xf32>
    %10 = vector.shape_cast %9 : vector<128xf32> to vector<1x128xf32>
    %c0_8 = arith.constant 0 : index
    %c1 = arith.constant 1 : index
    %c0_9 = arith.constant 0 : index
    %11 = vector.load %arg4[%c0_8, %c1, %c0_9] : memref<1x2x128xf32, #tpu.memory_space<vmem>>, vector<1x1x128xf32>
    %12 = vector.shape_cast %11 : vector<1x1x128xf32> to vector<1x128xf32>
    %13 = vector.shape_cast %10 : vector<1x128xf32> to vector<1x1x128xf32>
    tpu.vector_store %arg4[%c0_8, %c1, %c0_9], %13 {strides = array<i32>} : memref<1x2x128xf32, #tpu.memory_space<vmem>>, vector<1x1x128xf32>,
    %14 = arith.truncf %2 : vector<256x128xf32> to vector<256x128xbf16>
    %c0_10 = arith.constant 0 : index
    %c0_11 = arith.constant 0 : index
    %15 = vector.load %arg3[%c0_10, %c0_11] : memref<256x128xbf16, #tpu.memory_space<vmem>>, vector<256x128xbf16>
    tpu.vector_store %arg3[%c0_10, %c0_11], %14 {strides = array<i32>} : memref<256x128xbf16, #tpu.memory_space<vmem>>, vector<256x128xbf16>,
    return
  }
  func.func @transform_0(%arg0: i32) -> (i32, i32) {
    %c0_i32 = arith.constant 0 : i32
    %c0_i32_0 = arith.constant 0 : i32
    return %arg0, %c0_i32 : i32, i32
  }
  func.func @transform_1(%arg0: i32) -> (i32, i32) {
    %c0_i32 = arith.constant 0 : i32
    %c0_i32_0 = arith.constant 0 : i32
    %c0_i32_1 = arith.constant 0 : i32
    return %c0_i32, %c0_i32_0 : i32, i32
  }
  func.func @transform_2(%arg0: i32) -> (i32, i32) {
    %c0_i32 = arith.constant 0 : i32
    %c0_i32_0 = arith.constant 0 : i32
    return %arg0, %c0_i32 : i32, i32
  }
  func.func @transform_3(%arg0: i32) -> (i32, i32, i32) {
    %c0_i32 = arith.constant 0 : i32
    %c0_i32_0 = arith.constant 0 : i32
    %c0_i32_1 = arith.constant 0 : i32
    return %arg0, %c0_i32, %c0_i32_0 : i32, i32, i32
  }
}

module attributes {stable_mosaic.version = 11 : i64} {
  func.func @kernel(%arg0: i32, %arg1: memref<64x2048xbf16, #tpu.memory_space<vmem>>, %arg2: memref<1x2048xf32, #tpu.memory_space<vmem>>, %arg3: memref<1x2048xf32, #tpu.memory_space<vmem>>, %arg4: memref<2048x128xbf16, #tpu.memory_space<vmem>>, %arg5: memref<64x128xbf16, #tpu.memory_space<vmem>>, %arg6: memref<1x2x128xf32, #tpu.memory_space<vmem>>) attributes {dimension_semantics = [#tpu.dimension_semantics<parallel>], iteration_bounds = array<i64: 4>, scalar_prefetch = 0 : i64, scratch_operands = 0 : i64, tpu.core_type = #tpu.core_type<tc>, window_params = [{transform_indices = @transform_0, window_bounds = array<i64: 64, 2048>}, {pipeline_mode = #tpu.pipeline_mode<synchronous>, transform_indices = @transform_1, window_bounds = array<i64: 1, 2048>}, {pipeline_mode = #tpu.pipeline_mode<synchronous>, transform_indices = @transform_2, window_bounds = array<i64: 1, 2048>}, {pipeline_mode = #tpu.pipeline_mode<synchronous>, transform_indices = @transform_3, window_bounds = array<i64: 2048, 128>}, {transform_indices = @transform_4, window_bounds = array<i64: 64, 128>}, {transform_indices = @transform_5, window_bounds = array<i64: 1, 2, 128>}]} {
    %c0 = arith.constant 0 : index
    %c0_0 = arith.constant 0 : index
    %0 = vector.load %arg1[%c0, %c0_0] : memref<64x2048xbf16, #tpu.memory_space<vmem>>, vector<64x2048xbf16>
    %1 = arith.extf %0 : vector<64x2048xbf16> to vector<64x2048xf32>
    %c0_1 = arith.constant 0 : index
    %c0_2 = arith.constant 0 : index
    %2 = vector.load %arg2[%c0_1, %c0_2] : memref<1x2048xf32, #tpu.memory_space<vmem>>, vector<1x2048xf32>
    %3 = vector.broadcast %2 : vector<1x2048xf32> to vector<64x2048xf32>
    %4 = arith.mulf %1, %3 : vector<64x2048xf32>
    %c0_3 = arith.constant 0 : index
    %c0_4 = arith.constant 0 : index
    %5 = vector.load %arg3[%c0_3, %c0_4] : memref<1x2048xf32, #tpu.memory_space<vmem>>, vector<1x2048xf32>
    %6 = vector.broadcast %5 : vector<1x2048xf32> to vector<64x2048xf32>
    %7 = arith.addf %4, %6 : vector<64x2048xf32>
    %cst = arith.constant 0.000000e+00 : f32
    %8 = vector.broadcast %cst : f32 to vector<64x2048xf32>
    %9 = arith.cmpf oge, %7, %8 : vector<64x2048xf32>
    %cst_5 = arith.constant 2.000000e-01 : f32
    %10 = vector.broadcast %cst_5 : f32 to vector<64x2048xf32>
    %11 = arith.mulf %10, %7 : vector<64x2048xf32>
    %12 = arith.select %9, %7, %11 : vector<64x2048xi1>, vector<64x2048xf32>
    %13 = arith.truncf %12 : vector<64x2048xf32> to vector<64x2048xbf16>
    %c0_6 = arith.constant 0 : index
    %c0_7 = arith.constant 0 : index
    %14 = vector.load %arg4[%c0_6, %c0_7] : memref<2048x128xbf16, #tpu.memory_space<vmem>>, vector<2048x128xbf16>
    %cst_8 = arith.constant dense<0.000000e+00> : vector<64x128xf32>
    %15 = tpu.matmul %13, %14, %cst_8 {dimension_numbers = #tpu.dot_dimension_numbers<[1], [0], [0], [1], [0, 0, 1, 1], [], []>} : vector<64x2048xbf16>, vector<2048x128xbf16>, vector<64x128xf32> -> vector<64x128xf32>
    %cst_9 = arith.constant dense<0.000000e+00> : vector<128xf32>
    %16 = vector.multi_reduction <add>, %15, %cst_9 [0] : vector<64x128xf32> to vector<128xf32>
    %17 = vector.shape_cast %16 : vector<128xf32> to vector<1x128xf32>
    %c0_10 = arith.constant 0 : index
    %c0_11 = arith.constant 0 : index
    %c0_12 = arith.constant 0 : index
    %18 = vector.load %arg6[%c0_10, %c0_11, %c0_12] : memref<1x2x128xf32, #tpu.memory_space<vmem>>, vector<1x1x128xf32>
    %19 = vector.shape_cast %18 : vector<1x1x128xf32> to vector<1x128xf32>
    %20 = vector.shape_cast %17 : vector<1x128xf32> to vector<1x1x128xf32>
    tpu.vector_store %arg6[%c0_10, %c0_11, %c0_12], %20 {strides = array<i32>} : memref<1x2x128xf32, #tpu.memory_space<vmem>>, vector<1x1x128xf32>,
    %21 = arith.mulf %15, %15 : vector<64x128xf32>
    %cst_13 = arith.constant dense<0.000000e+00> : vector<128xf32>
    %22 = vector.multi_reduction <add>, %21, %cst_13 [0] : vector<64x128xf32> to vector<128xf32>
    %23 = vector.shape_cast %22 : vector<128xf32> to vector<1x128xf32>
    %c0_14 = arith.constant 0 : index
    %c1 = arith.constant 1 : index
    %c0_15 = arith.constant 0 : index
    %24 = vector.load %arg6[%c0_14, %c1, %c0_15] : memref<1x2x128xf32, #tpu.memory_space<vmem>>, vector<1x1x128xf32>
    %25 = vector.shape_cast %24 : vector<1x1x128xf32> to vector<1x128xf32>
    %26 = vector.shape_cast %23 : vector<1x128xf32> to vector<1x1x128xf32>
    tpu.vector_store %arg6[%c0_14, %c1, %c0_15], %26 {strides = array<i32>} : memref<1x2x128xf32, #tpu.memory_space<vmem>>, vector<1x1x128xf32>,
    %27 = arith.truncf %15 : vector<64x128xf32> to vector<64x128xbf16>
    %c0_16 = arith.constant 0 : index
    %c0_17 = arith.constant 0 : index
    %28 = vector.load %arg5[%c0_16, %c0_17] : memref<64x128xbf16, #tpu.memory_space<vmem>>, vector<64x128xbf16>
    tpu.vector_store %arg5[%c0_16, %c0_17], %27 {strides = array<i32>} : memref<64x128xbf16, #tpu.memory_space<vmem>>, vector<64x128xbf16>,
    return
  }
  func.func @transform_0(%arg0: i32) -> (i32, i32) {
    %c0_i32 = arith.constant 0 : i32
    %c0_i32_0 = arith.constant 0 : i32
    return %arg0, %c0_i32 : i32, i32
  }
  func.func @transform_1(%arg0: i32) -> (i32, i32) {
    %c0_i32 = arith.constant 0 : i32
    %c0_i32_0 = arith.constant 0 : i32
    %c0_i32_1 = arith.constant 0 : i32
    return %c0_i32, %c0_i32_0 : i32, i32
  }
  func.func @transform_2(%arg0: i32) -> (i32, i32) {
    %c0_i32 = arith.constant 0 : i32
    %c0_i32_0 = arith.constant 0 : i32
    %c0_i32_1 = arith.constant 0 : i32
    return %c0_i32, %c0_i32_0 : i32, i32
  }
  func.func @transform_3(%arg0: i32) -> (i32, i32) {
    %c0_i32 = arith.constant 0 : i32
    %c0_i32_0 = arith.constant 0 : i32
    %c0_i32_1 = arith.constant 0 : i32
    return %c0_i32, %c0_i32_0 : i32, i32
  }
  func.func @transform_4(%arg0: i32) -> (i32, i32) {
    %c0_i32 = arith.constant 0 : i32
    %c0_i32_0 = arith.constant 0 : i32
    return %arg0, %c0_i32 : i32, i32
  }
  func.func @transform_5(%arg0: i32) -> (i32, i32, i32) {
    %c0_i32 = arith.constant 0 : i32
    %c0_i32_0 = arith.constant 0 : i32
    %c0_i32_1 = arith.constant 0 : i32
    return %arg0, %c0_i32, %c0_i32_0 : i32, i32, i32
  }
}

module attributes {stable_mosaic.version = 11 : i64} {
  func.func @_affine_lrelu_kernel(%arg0: i32, %arg1: memref<64x128xbf16, #tpu.memory_space<vmem>>, %arg2: memref<1x128xf32, #tpu.memory_space<vmem>>, %arg3: memref<1x128xf32, #tpu.memory_space<vmem>>, %arg4: memref<64x128xbf16, #tpu.memory_space<vmem>>) attributes {dimension_semantics = [#tpu.dimension_semantics<parallel>], iteration_bounds = array<i64: 4>, scalar_prefetch = 0 : i64, scratch_operands = 0 : i64, tpu.core_type = #tpu.core_type<tc>, window_params = [{transform_indices = @transform_0, window_bounds = array<i64: 64, 128>}, {pipeline_mode = #tpu.pipeline_mode<synchronous>, transform_indices = @transform_1, window_bounds = array<i64: 1, 128>}, {pipeline_mode = #tpu.pipeline_mode<synchronous>, transform_indices = @transform_2, window_bounds = array<i64: 1, 128>}, {transform_indices = @transform_3, window_bounds = array<i64: 64, 128>}]} {
    %c0 = arith.constant 0 : index
    %c0_0 = arith.constant 0 : index
    %0 = vector.load %arg1[%c0, %c0_0] : memref<64x128xbf16, #tpu.memory_space<vmem>>, vector<64x128xbf16>
    %1 = arith.extf %0 : vector<64x128xbf16> to vector<64x128xf32>
    %c0_1 = arith.constant 0 : index
    %c0_2 = arith.constant 0 : index
    %2 = vector.load %arg2[%c0_1, %c0_2] : memref<1x128xf32, #tpu.memory_space<vmem>>, vector<1x128xf32>
    %3 = vector.broadcast %2 : vector<1x128xf32> to vector<64x128xf32>
    %4 = arith.mulf %1, %3 : vector<64x128xf32>
    %c0_3 = arith.constant 0 : index
    %c0_4 = arith.constant 0 : index
    %5 = vector.load %arg3[%c0_3, %c0_4] : memref<1x128xf32, #tpu.memory_space<vmem>>, vector<1x128xf32>
    %6 = vector.broadcast %5 : vector<1x128xf32> to vector<64x128xf32>
    %7 = arith.addf %4, %6 : vector<64x128xf32>
    %cst = arith.constant 0.000000e+00 : f32
    %8 = vector.broadcast %cst : f32 to vector<64x128xf32>
    %9 = arith.cmpf oge, %7, %8 : vector<64x128xf32>
    %cst_5 = arith.constant 2.000000e-01 : f32
    %10 = vector.broadcast %cst_5 : f32 to vector<64x128xf32>
    %11 = arith.mulf %10, %7 : vector<64x128xf32>
    %12 = arith.select %9, %7, %11 : vector<64x128xi1>, vector<64x128xf32>
    %13 = arith.truncf %12 : vector<64x128xf32> to vector<64x128xbf16>
    %c0_6 = arith.constant 0 : index
    %c0_7 = arith.constant 0 : index
    %14 = vector.load %arg4[%c0_6, %c0_7] : memref<64x128xbf16, #tpu.memory_space<vmem>>, vector<64x128xbf16>
    tpu.vector_store %arg4[%c0_6, %c0_7], %13 {strides = array<i32>} : memref<64x128xbf16, #tpu.memory_space<vmem>>, vector<64x128xbf16>,
    return
  }
  func.func @transform_0(%arg0: i32) -> (i32, i32) {
    %c0_i32 = arith.constant 0 : i32
    %c0_i32_0 = arith.constant 0 : i32
    return %arg0, %c0_i32 : i32, i32
  }
  func.func @transform_1(%arg0: i32) -> (i32, i32) {
    %c0_i32 = arith.constant 0 : i32
    %c0_i32_0 = arith.constant 0 : i32
    %c0_i32_1 = arith.constant 0 : i32
    return %c0_i32, %c0_i32_0 : i32, i32
  }
  func.func @transform_2(%arg0: i32) -> (i32, i32) {
    %c0_i32 = arith.constant 0 : i32
    %c0_i32_0 = arith.constant 0 : i32
    %c0_i32_1 = arith.constant 0 : i32
    return %c0_i32, %c0_i32_0 : i32, i32
  }
  func.func @transform_3(%arg0: i32) -> (i32, i32) {
    %c0_i32 = arith.constant 0 : i32
    %c0_i32_0 = arith.constant 0 : i32
    return %arg0, %c0_i32 : i32, i32
  }
}

</mosaic_0001>

<bundles_post_ra>
// kernel: dc_discriminator_forward.3
= control target key start
LH: loop header
LB: loop body
LE: loop exit
PB: predicated region body
PF: predicated region fallthrough
CT: control target
= control target key end

     0   :  { %s1237_s12 = smov 0   ;;  %s1413_s0 = inlined_call_operand.vmem [shape: bf16[1024,128], index: 0, kind: input, shape index: {}]   ;;  %s1414_s1 = inlined_call_operand.vmem [shape: bf16[128,128], index: 1, kind: input, shape index: {}]   ;;  %s1415_s2 = inlined_call_operand.vmem [shape: bf16[1024,128], index: 2, kind: output, shape index: {0}]   ;;  %s1416_s3 = inlined_call_operand.vmem [shape: f32[4,2,128], index: 3, kind: output, shape index: {1}]  }
   0x1 LB: > { %s1243_s13 = sadd.s32 4294967295, %s1215_s12   ;;  %p898_p0 = scmp.ge.s32.totalorder %s1215_s12, 1  ;;  %s1215_s12 = sphi %s1237_s12, %s14_s12  }
   0x2   : > { %p141_p1 = scmp.lt.s32.totalorder %s1215_s12, 5 }
   0x4   : > { %p142_p2 = pnand %p898_p0, %p141_p1 }
   0x5   : > { %v1185_v0 = vld [vmem:[%s1414_s1] sm:$0xff] (!%p142_p2)   ;;  %s899_s16 = sshll.u32 (!%p142_p2), %s1243_s13, 5  ;;  %v1186_v1 = vld [vmem:[%s1414_s1 + $0x8] sm:$0xff] (!%p142_p2)   ;;  %v1187_v2 = vld [vmem:[%s1414_s1 + $0x10] sm:$0xff] (!%p142_p2)   ;;  %p181_p4 = scmp.lt.s32.totalorder (!%p142_p2), %s1243_s13, 3 }
   0x6   : > { %145 = sbr.rel (%p142_p2) target bundleno = 330 (0x14a), region = 28  ;;  %p170_p3 = scmp.lt.s32.totalorder (!%p142_p2), %s899_s16, 127  ;;  %1113 = vmatprep.subr.bf16.mxu0 (!%p142_p2), %v1185_v0  ;;  %1161 = vmatprep.subr.bf16.mxu1 (!%p142_p2), %v1185_v0  ;;  %v1188_v3 = vld [vmem:[%s1414_s1 + $0x18] sm:$0xff] (!%p142_p2)   ;;  %v1189_v5 = vld [vmem:[%s1414_s1 + $0x20] sm:$0xff] (!%p142_p2)   ;;  %v1190_v6 = vld [vmem:[%s1414_s1 + $0x28] sm:$0xff] (!%p142_p2)  }
   0x7   : > { %1114 = vmatpush3.bf16.msra.mxu0 (!%p142_p2), %v1185_v0  ;;  %1169 = vmatpush3.bf16.msra.mxu1 (!%p142_p2), %v1185_v0  ;;  %v1191_v8 = vld [vmem:[%s1414_s1 + $0x30] sm:$0xff] (!%p142_p2)   ;;  %v1192_v9 = vld [vmem:[%s1414_s1 + $0x38] sm:$0xff] (!%p142_p2)  }
   0x8   : > { %1115 = vmatprep.subr.bf16.mxu0 (!%p142_p2), %v1186_v1  ;;  %1162 = vmatprep.subr.bf16.mxu1 (!%p142_p2), %v1186_v1 }
   0xb   : > { %1116 = vmatpush3.bf16.msra.mxu0 (!%p142_p2), %v1186_v1  ;;  %1170 = vmatpush3.bf16.msra.mxu1 (!%p142_p2), %v1186_v1 }
   0xc   : > { %1117 = vmatprep.subr.bf16.mxu0 (!%p142_p2), %v1187_v2  ;;  %1163 = vmatprep.subr.bf16.mxu1 (!%p142_p2), %v1187_v2 }
   0xd   : > { %s1418_s16 = smov (!%p170_p3, %s899_s16), 127  ;;  %s1420_s13 = smov (!%p181_p4, %s1243_s13), 3 }
   0xe   : > { %s900_s21 = sshll.u32 %s1418_s16, 2  ;;  %s903_s11 = sshll.u32 %s1420_s13, 1 }
   0xf   : > { %s1265_s24 = scalar_lea.vmem %s1413_s0, %s900_s21  ;;  %1118 = vmatpush3.bf16.msra.mxu0 %v1187_v2  ;;  %1171 = vmatpush3.bf16.msra.mxu1 %v1187_v2  ;;  %s1307_s10 = scalar_lea.vmem %s1415_s2, %s900_s21 }
  0x10   : > { %v1193_v4 = vld [vmem:[%s1265_s24] sm:$0xff]   ;;  %1119 = vmatprep.subr.bf16.mxu0 %v1188_v3  ;;  %1164 = vmatprep.subr.bf16.mxu1 %v1188_v3  ;;  %v1194_v10 = vld [vmem:[%s1265_s24 + $0x8] sm:$0xff]   ;;  %v1195_v12 = vld [vmem:[%s1265_s24 + $0x10] sm:$0xff]   ;;  %s184_s16 = scalar_lea.vmem %s1416_s3, %s903_s11 }
  0x11   : > { %1129 = vmatprep.mubr.bf16.mxu0 %v1193_v4  ;;  %v1201_v7 = vld [vmem:[%s1265_s24 + $0x40] sm:$0xff]   ;;  %v1202_v11 = vld [vmem:[%s1265_s24 + $0x48] sm:$0xff]   ;;  %v1203_v13 = vld [vmem:[%s1265_s24 + $0x50] sm:$0xff]  }
  0x12   : > { %1145 = vmatprep.mubr.bf16.mxu1 %v1201_v7  ;;  %v1196_v14 = vld [vmem:[%s1265_s24 + $0x18] sm:$0xff]   ;;  %v1197_v16 = vld [vmem:[%s1265_s24 + $0x20] sm:$0xff]   ;;  %v1198_v18 = vld [vmem:[%s1265_s24 + $0x28] sm:$0xff]  }
  0x13   : > { %1120 = vmatpush3.bf16.msra.mxu0 %v1188_v3  ;;  %1172 = vmatpush3.bf16.msra.mxu1 %v1188_v3  ;;  %v1204_v15 = vld [vmem:[%s1265_s24 + $0x58] sm:$0xff]   ;;  %v1205_v17 = vld [vmem:[%s1265_s24 + $0x60] sm:$0xff]   ;;  %v1206_v19 = vld [vmem:[%s1265_s24 + $0x68] sm:$0xff]  }
  0x14   : > { %1121 = vmatprep.subr.bf16.mxu0 %v1189_v5  ;;  %1165 = vmatprep.subr.bf16.mxu1 %v1189_v5  ;;  %v1199_v20 = vld [vmem:[%s1265_s24 + $0x30] sm:$0xff]   ;;  %v1200_v22 = vld [vmem:[%s1265_s24 + $0x38] sm:$0xff]  }
  0x15   : > { %v1207_v21 = vld [vmem:[%s1265_s24 + $0x70] sm:$0xff]   ;;  %v1208_v23 = vld [vmem:[%s1265_s24 + $0x78] sm:$0xff]  }
  0x17   : > { %1122 = vmatpush3.bf16.msra.mxu0 %v1189_v5  ;;  %1173 = vmatpush3.bf16.msra.mxu1 %v1189_v5 }
  0x18   : > { %1123 = vmatprep.subr.bf16.mxu0 %v1190_v6  ;;  %1166 = vmatprep.subr.bf16.mxu1 %v1190_v6 }
  0x1b   : > { %1124 = vmatpush3.bf16.msra.mxu0 %v1190_v6  ;;  %1174 = vmatpush3.bf16.msra.mxu1 %v1190_v6 }
  0x1c   : > { %1125 = vmatprep.subr.bf16.mxu0 %v1191_v8  ;;  %1167 = vmatprep.subr.bf16.mxu1 %v1191_v8 }
  0x1f   : > { %1126 = vmatpush3.bf16.msra.mxu0 %v1191_v8  ;;  %1175 = vmatpush3.bf16.msra.mxu1 %v1191_v8 }
  0x20   : > { %1127 = vmatprep.subr.bf16.mxu0 %v1192_v9  ;;  %1168 = vmatprep.subr.bf16.mxu1 %v1192_v9 }
  0x23   : > { %1128 = vmatpush3.bf16.msra.mxu0 %v1192_v9  ;;  %1176 = vmatpush3.bf16.msra.mxu1 %v1192_v9 }
  0x26   : > { %1130 = vmatmul.mubr.bf16.vlgmr.msra.gmra.mrb[0].mxu0 %v1194_v10  ;;  %1146 = vmatmul.mubr.bf16.vlgmr.msra.gmra.mrb[0].mxu1 %v1202_v11 }
  0x27   : > { %1133 = vmatprep.mubr.bf16.mxu0 %v1195_v12  ;;  %1149 = vmatprep.mubr.bf16.mxu1 %v1203_v13 }
  0x2e   : > { %1134 = vmatmul.mubr.bf16.gmra.mrb[4].mxu0 %v1196_v14  ;;  %1150 = vmatmul.mubr.bf16.gmra.mrb[4].mxu1 %v1204_v15 }
  0x2f   : > { %1137 = vmatprep.mubr.bf16.mxu0 %v1197_v16  ;;  %1153 = vmatprep.mubr.bf16.mxu1 %v1205_v17 }
  0x36   : > { %1138 = vmatmul.mubr.bf16.gmra.mrb[8].mxu0 %v1198_v18  ;;  %1154 = vmatmul.mubr.bf16.gmra.mrb[8].mxu1 %v1206_v19 }
  0x37   : > { %1141 = vmatprep.mubr.bf16.mxu0 %v1199_v20  ;;  %1157 = vmatprep.mubr.bf16.mxu1 %v1207_v21 }
  0x3e   : > { %1142 = vmatmul.mubr.bf16.gmra.mrb[12].mxu0 %v1200_v22  ;;  %1158 = vmatmul.mubr.bf16.gmra.mrb[12].mxu1 %v1208_v23 }
  0xf9   : > { %v1131_v24 = vpop.f32.mrb[0].mxu0  ;;  %v1298_v25 = vpop.f32.mrb[0].mxu1 }
  0xfa   : > { %v412_v26 = vpop.f32.mrb[1].mxu0  ;;  %v1300_v27 = vpop.f32.mrb[1].mxu1  ;;  %v579_v39 = vmul.f32 %v1131_v24, %v1131_v24 }
  0xfb   : > { %v1132_v28 = vpop.f32.mrb[2].mxu0  ;;  %v1309_v29 = vpop.f32.mrb[2].mxu1  ;;  %v577_v34 = vmul.f32 %v412_v26, %v412_v26 }
  0xfc   : > { %v1002_v30 = vpack.c.bf16 %v1132_v28, %v1131_v24  ;;  %v415_v31 = vpop.f32.mrb[3].mxu0  ;;  %v1042_v32 = vpack.c.bf16 %v1309_v29, %v1298_v25  ;;  %v1313_v33 = vpop.f32.mrb[3].mxu1  ;;  %v580_v42 = vmul.f32 %v1132_v28, %v1132_v28 }
  0xfd   : > { %v539_v35 = vadd.f32 %v415_v31, %v412_v26  ;;  %v578_v36 = vmul.f32 %v415_v31, %v415_v31  ;;  %v997_v37 = vpack.c.bf16 %v415_v31, %v412_v26  ;;  %v1037_v38 = vpack.c.bf16 %v1313_v33, %v1300_v27 }
  0xfe   : > { %1074 = vst [vmem:[%s1307_s10 + $0x8] sm:$0xff] %v1002_v30   ;;  %1082 = vst [vmem:[%s1307_s10 + $0x48] sm:$0xff] %v1042_v32  }
  0xff   : > { %v540_v40 = vadd.f32 %v1131_v24, %v539_v35  ;;  %v609_v41 = vadd.f32 %v578_v36, %v577_v34  ;;  %998 = vst [vmem:[%s1307_s10] sm:$0xff] %v997_v37   ;;  %1081 = vst [vmem:[%s1307_s10 + $0x40] sm:$0xff] %v1037_v38  }
 0x101   : > { %v610_v43 = vadd.f32 %v609_v41, %v579_v39  ;;  %v1135_v44 = vpop.f32.mrb[4].mxu0  ;;  %v541_v45 = vadd.f32 %v1132_v28, %v540_v40  ;;  %v1321_v46 = vpop.f32.mrb[4].mxu1 }
 0x102   : > { %v428_v47 = vpop.f32.mrb[5].mxu0  ;;  %v1323_v48 = vpop.f32.mrb[5].mxu1  ;;  %v583_v63 = vmul.f32 %v1135_v44, %v1135_v44 }
 0x103   : > { %v542_v49 = vadd.f32 %v541_v45, %v428_v47  ;;  %v581_v50 = vmul.f32 %v428_v47, %v428_v47  ;;  %v611_v51 = vadd.f32 %v610_v43, %v580_v42  ;;  %v1136_v52 = vpop.f32.mrb[6].mxu0  ;;  %v1325_v53 = vpop.f32.mrb[6].mxu1 }
 0x104   : > { %v1012_v54 = vpack.c.bf16 %v1136_v52, %v1135_v44  ;;  %v431_v55 = vpop.f32.mrb[7].mxu0  ;;  %v1052_v56 = vpack.c.bf16 %v1325_v53, %v1321_v46  ;;  %v1329_v57 = vpop.f32.mrb[7].mxu1  ;;  %v584_v2 = vmul.f32 %v1136_v52, %v1136_v52 }
 0x105   : > { %v612_v58 = vadd.f32 %v611_v51, %v581_v50  ;;  %v543_v59 = vadd.f32 %v542_v49, %v431_v55  ;;  %v582_v60 = vmul.f32 %v431_v55, %v431_v55  ;;  %v1007_v61 = vpack.c.bf16 %v431_v55, %v428_v47 }
 0x106   : > { %1076 = vst [vmem:[%s1307_s10 + $0x18] sm:$0xff] %v1012_v54   ;;  %1084 = vst [vmem:[%s1307_s10 + $0x58] sm:$0xff] %v1052_v56   ;;  %v1047_v62 = vpack.c.bf16 %v1329_v57, %v1323_v48 }
 0x107   : > { %v544_v0 = vadd.f32 %v1135_v44, %v543_v59  ;;  %v613_v1 = vadd.f32 %v612_v58, %v582_v60  ;;  %1075 = vst [vmem:[%s1307_s10 + $0x10] sm:$0xff] %v1007_v61   ;;  %v593_v61 = vmul.f32 %v1300_v27, %v1300_v27 }
 0x108   : > { %1083 = vst [vmem:[%s1307_s10 + $0x50] sm:$0xff] %v1047_v62  }
 0x109   : > { %v614_v3 = vadd.f32 %v613_v1, %v583_v63  ;;  %v1139_v4 = vpop.f32.mrb[8].mxu0  ;;  %v545_v5 = vadd.f32 %v1136_v52, %v544_v0  ;;  %v1337_v6 = vpop.f32.mrb[8].mxu1 }
 0x10a   : > { %v444_v7 = vpop.f32.mrb[9].mxu0  ;;  %v1339_v8 = vpop.f32.mrb[9].mxu1  ;;  %v587_v23 = vmul.f32 %v1139_v4, %v1139_v4 }
 0x10b   : > { %v546_v9 = vadd.f32 %v545_v5, %v444_v7  ;;  %v585_v10 = vmul.f32 %v444_v7, %v444_v7  ;;  %v615_v11 = vadd.f32 %v614_v3, %v584_v2  ;;  %v1140_v12 = vpop.f32.mrb[10].mxu0  ;;  %v1341_v13 = vpop.f32.mrb[10].mxu1  ;;  %v594_v2 = vmul.f32 %v1313_v33, %v1313_v33 }
 0x10c   : > { %v1022_v14 = vpack.c.bf16 %v1140_v12, %v1139_v4  ;;  %v447_v15 = vpop.f32.mrb[11].mxu0  ;;  %v1062_v16 = vpack.c.bf16 %v1341_v13, %v1337_v6  ;;  %v1345_v17 = vpop.f32.mrb[11].mxu1  ;;  %v588_v28 = vmul.f32 %v1140_v12, %v1140_v12  ;;  %v595_v3 = vmul.f32 %v1298_v25, %v1298_v25 }
 0x10d   : > { %v616_v18 = vadd.f32 %v615_v11, %v585_v10  ;;  %v547_v19 = vadd.f32 %v546_v9, %v447_v15  ;;  %v586_v20 = vmul.f32 %v447_v15, %v447_v15  ;;  %v1017_v21 = vpack.c.bf16 %v447_v15, %v444_v7 }
 0x10e   : > { %1078 = vst [vmem:[%s1307_s10 + $0x28] sm:$0xff] %v1022_v14   ;;  %1086 = vst [vmem:[%s1307_s10 + $0x68] sm:$0xff] %v1062_v16   ;;  %v1057_v22 = vpack.c.bf16 %v1345_v17, %v1339_v8  ;;  %v596_v7 = vmul.f32 %v1309_v29, %v1309_v29  ;;  %v598_v15 = vmul.f32 %v1329_v57, %v1329_v57 }
 0x10f   : > { %v548_v24 = vadd.f32 %v1139_v4, %v547_v19  ;;  %v617_v26 = vadd.f32 %v616_v18, %v586_v20  ;;  %1077 = vst [vmem:[%s1307_s10 + $0x20] sm:$0xff] %v1017_v21  }
 0x110   : > { %1085 = vst [vmem:[%s1307_s10 + $0x60] sm:$0xff] %v1057_v22  }
 0x111   : > { %v618_v30 = vadd.f32 %v617_v26, %v587_v23  ;;  %v1143_v31 = vpop.f32.mrb[12].mxu0  ;;  %v549_v32 = vadd.f32 %v1140_v12, %v548_v24  ;;  %v1353_v34 = vpop.f32.mrb[12].mxu1  ;;  %v602_v24 = vmul.f32 %v1345_v17, %v1345_v17 }
 0x112   : > { %v460_v35 = vpop.f32.mrb[13].mxu0  ;;  %v524_v36 = vpop.f32.mrb[13].mxu1  ;;  %v591_v54 = vmul.f32 %v1143_v31, %v1143_v31 }
 0x113   : > { %v550_v37 = vadd.f32 %v549_v32, %v460_v35  ;;  %v589_v38 = vmul.f32 %v460_v35, %v460_v35  ;;  %v619_v39 = vadd.f32 %v618_v30, %v588_v28  ;;  %v1144_v40 = vpop.f32.mrb[14].mxu0  ;;  %v1355_v41 = vpop.f32.mrb[14].mxu1 }
 0x114   : > { %v1032_v42 = vpack.c.bf16 %v1144_v40, %v1143_v31  ;;  %v463_v43 = vpop.f32.mrb[15].mxu0  ;;  %v1072_v44 = vpack.c.bf16 %v1355_v41, %v1353_v34  ;;  %v527_v45 = vpop.f32.mrb[15].mxu1  ;;  %v592_v58 = vmul.f32 %v1144_v40, %v1144_v40 }
 0x115   : > { %v620_v47 = vadd.f32 %v619_v39, %v589_v38  ;;  %v551_v49 = vadd.f32 %v550_v37, %v463_v43  ;;  %v590_v50 = vmul.f32 %v463_v43, %v463_v43  ;;  %v1027_v51 = vpack.c.bf16 %v463_v43, %v460_v35 }
 0x116   : > { %1080 = vst [vmem:[%s1307_s10 + $0x38] sm:$0xff] %v1032_v42   ;;  %1088 = vst [vmem:[%s1307_s10 + $0x78] sm:$0xff] %v1072_v44   ;;  %v1067_v52 = vpack.c.bf16 %v527_v45, %v524_v36  ;;  %v607_v39 = vmul.f32 %v1353_v34, %v1353_v34  ;;  %v608_v42 = vmul.f32 %v1355_v41, %v1355_v41 }
 0x117   : > { %v552_v55 = vadd.f32 %v1143_v31, %v551_v49  ;;  %v621_v56 = vadd.f32 %v620_v47, %v590_v50  ;;  %1079 = vst [vmem:[%s1307_s10 + $0x30] sm:$0xff] %v1027_v51   ;;  %v605_v31 = vmul.f32 %v524_v36, %v524_v36 }
 0x118   : > { %1087 = vst [vmem:[%s1307_s10 + $0x70] sm:$0xff] %v1067_v52  }
 0x119   : > { %v622_v59 = vadd.f32 %v621_v56, %v591_v54  ;;  %v553_v60 = vadd.f32 %v1144_v40, %v552_v55 }
 0x11b   : > { %v554_v62 = vadd.f32 %v553_v60, %v1300_v27  ;;  %v623_v63 = vadd.f32 %v622_v59, %v592_v58  ;;  %v597_v27 = vmul.f32 %v1323_v48, %v1323_v48 }
 0x11d   : > { %v624_v0 = vadd.f32 %v623_v63, %v593_v61  ;;  %v555_v1 = vadd.f32 %v554_v62, %v1313_v33 }
 0x11f   : > { %v556_v4 = vadd.f32 %v1298_v25, %v555_v1  ;;  %v625_v5 = vadd.f32 %v624_v0, %v594_v2  ;;  %v599_v25 = vmul.f32 %v1321_v46, %v1321_v46 }
 0x121   : > { %v626_v9 = vadd.f32 %v625_v5, %v595_v3  ;;  %v557_v10 = vadd.f32 %v1309_v29, %v556_v4  ;;  %v600_v29 = vmul.f32 %v1325_v53, %v1325_v53 }
 0x123   : > { %v558_v11 = vadd.f32 %v557_v10, %v1323_v48  ;;  %v627_v12 = vadd.f32 %v626_v9, %v596_v7  ;;  %v601_v48 = vmul.f32 %v1339_v8, %v1339_v8 }
 0x125   : > { %v628_v14 = vadd.f32 %v627_v12, %v597_v27  ;;  %v559_v33 = vadd.f32 %v558_v11, %v1329_v57 }
 0x127   : > { %v560_v16 = vadd.f32 %v1321_v46, %v559_v33  ;;  %v629_v18 = vadd.f32 %v628_v14, %v598_v15  ;;  %v603_v46 = vmul.f32 %v1337_v6, %v1337_v6 }
 0x129   : > { %v630_v19 = vadd.f32 %v629_v18, %v599_v25  ;;  %v561_v20 = vadd.f32 %v1325_v53, %v560_v16  ;;  %v604_v53 = vmul.f32 %v1341_v13, %v1341_v13 }
 0x12b   : > { %v562_v21 = vadd.f32 %v561_v20, %v1339_v8  ;;  %v631_v22 = vadd.f32 %v630_v19, %v600_v29 }
 0x12d   : > { %v632_v23 = vadd.f32 %v631_v22, %v601_v48  ;;  %v563_v57 = vadd.f32 %v562_v21, %v1345_v17  ;;  %v606_v17 = vmul.f32 %v527_v45, %v527_v45 }
 0x12f   : > { %v564_v26 = vadd.f32 %v1337_v6, %v563_v57  ;;  %v633_v28 = vadd.f32 %v632_v23, %v602_v24 }
 0x131   : > { %v634_v30 = vadd.f32 %v633_v28, %v603_v46  ;;  %v565_v8 = vadd.f32 %v1341_v13, %v564_v26 }
 0x133   : > { %v566_v32 = vadd.f32 %v565_v8, %v524_v36  ;;  %v635_v35 = vadd.f32 %v634_v30, %v604_v53 }
 0x135   : > { %v636_v37 = vadd.f32 %v635_v35, %v605_v31  ;;  %v567_v38 = vadd.f32 %v566_v32, %v527_v45 }
 0x137   : > { %v568_v40 = vadd.f32 %v1353_v34, %v567_v38  ;;  %v637_v6 = vadd.f32 %v636_v37, %v606_v17 }
 0x139   : > { %v569_v43 = vadd.f32 %v1355_v41, %v568_v40  ;;  %v638_v13 = vadd.f32 %v637_v6, %v607_v39 }
 0x13b   : > { %v570_v44 = vrot.slane %v569_v43, 4  ;;  %v639_v47 = vadd.f32 %v638_v13, %v608_v42 }
 0x13d   : > { %v571_v36 = vadd.f32 %v570_v44, %v569_v43  ;;  %v640_v49 = vrot.slane %v639_v47, 4 }
 0x13f   : > { %v572_v50 = vrot.slane %v571_v36, 2  ;;  %v641_v45 = vadd.f32 %v640_v49, %v639_v47 }
 0x141   : > { %v573_v51 = vadd.f32 %v572_v50, %v571_v36  ;;  %v642_v52 = vrot.slane %v641_v45, 2 }
 0x143   : > { %v574_v54 = vrot.slane %v573_v51, 1  ;;  %v643_v34 = vadd.f32 %v642_v52, %v641_v45 }
 0x145   : > { %v575_v55 = vadd.f32 %v574_v54, %v573_v51  ;;  %v644_v56 = vrot.slane %v643_v34, 1 }
 0x147   : > { %576 = vst [vmem:[%s184_s16] sm:$0x1] %v575_v55  ;;  %v645_v41 = vadd.f32 %v644_v56, %v643_v34 }
 0x149   : > { %646 = vst [vmem:[%s184_s16 + $0x1] sm:$0x1] %v645_v41 }
 0x14a PF: > { %s14_s12 = sadd.s32 1, %s1215_s12  }
 0x14b   : > { %p11_p5 = scmp.ge.s32.totalorder %s14_s12, 6  }
 0x14d   :  { %13 = sbr.rel (!%p11_p5) target bundleno = 1 (0x1), region = 70 }

// kernel: tile.13
= control target key start
LH: loop header
LB: loop body
LE: loop exit
PB: predicated region body
PF: predicated region fallthrough
CT: control target
= control target key end

     0   :  { %s28_s0 = inlined_call_operand.vmem [shape: f32[128], index: 0, kind: input, shape index: {}]   ;;  %s29_s1 = inlined_call_operand.vmem [shape: f32[16,128], index: 1, kind: output, shape index: {}]  }
   0x1   :  { %v4_v0 = vld [vmem:[%s28_s0] ss:$0 sm:$0xff] }
   0x2   :  { %5 = vst [vmem:[%s29_s1] sm:$0xff] %v4_v0  ;;  %8 = vst [vmem:[%s29_s1 + $0x8] sm:$0xff] %v4_v0 }

// kernel: dc_discriminator_forward.5
= control target key start
LH: loop header
LB: loop body
LE: loop exit
PB: predicated region body
PF: predicated region fallthrough
CT: control target
= control target key end

     0   :  { %s447_s12 = smov 0   ;;  %s477_s0 = inlined_call_operand.vmem [shape: bf16[256,128], index: 0, kind: input, shape index: {}]   ;;  %s478_s1 = inlined_call_operand.vmem [shape: f32[1,128], index: 1, kind: input, shape index: {}]   ;;  %s479_s2 = inlined_call_operand.vmem [shape: f32[1,128], index: 2, kind: input, shape index: {}]   ;;  %s480_s3 = inlined_call_operand.vmem [shape: bf16[256,128], index: 3, kind: output, shape index: {}]  }
   0x1 LB: > { %s340_s13 = sadd.s32 4294967295, %s425_s12   ;;  %p344_p0 = scmp.ge.s32.totalorder %s425_s12, 1  ;;  %s425_s12 = sphi %s447_s12, %s13_s12  }
   0x2   : > { %p138_p1 = scmp.lt.s32.totalorder %s425_s12, 5 }
   0x4   : > { %p139_p2 = pnand %p344_p0, %p138_p1 }
   0x5   : > { %s345_s14 = sshll.u32 (!%p139_p2), %s340_s13, 3  ;;  %v349_v0 = vld [vmem:[%s478_s1] ss:$0 sm:$0xff] (!%p139_p2) }
   0x6   : > { %142 = sbr.rel (%p139_p2) target bundleno = 34 (0x22), region = 32  ;;  %p163_p3 = scmp.lt.s32.totalorder (!%p139_p2), %s345_s14, 31  ;;  %v350_v13 = vld [vmem:[%s479_s2] ss:$0 sm:$0xff] (!%p139_p2) }
   0xd   : > { %s482_s14 = smov (!%p163_p3, %s345_s14), 31 }
   0xe   : > { %s346_s15 = sshll.u32 %s482_s14, 2 }
   0xf   : > { %s166_s18 = scalar_lea.vmem %s477_s0, %s346_s15  ;;  %s172_s25 = scalar_lea.vmem %s480_s3, %s346_s15 }
  0x10   : > { %v370_v1 = vld [vmem:[%s166_s18] sm:$0xff]   ;;  %v405_v2 = vld [vmem:[%s166_s18 + $0x8] sm:$0xff]   ;;  %v406_v3 = vld [vmem:[%s166_s18 + $0x10] sm:$0xff]  }
  0x11   : > { %v371_v4 = vunpack.c.l.bf16 %v370_v1  ;;  %v372_v5 = vunpack.c.h.bf16 %v370_v1  ;;  %v375_v6 = vunpack.c.l.bf16 %v405_v2  ;;  %v376_v7 = vunpack.c.h.bf16 %v405_v2  ;;  %v407_v8 = vld [vmem:[%s166_s18 + $0x18] sm:$0xff]  }
  0x12   : > { %v379_v9 = vunpack.c.l.bf16 %v406_v3  ;;  %v380_v10 = vunpack.c.h.bf16 %v406_v3  ;;  %v383_v11 = vunpack.c.l.bf16 %v407_v8  ;;  %v384_v12 = vunpack.c.h.bf16 %v407_v8 }
  0x13   : > { %v197_v14 = vmul.f32 %v371_v4, %v349_v0  ;;  %v198_v15 = vmul.f32 %v372_v5, %v349_v0  ;;  %v199_v16 = vmul.f32 %v375_v6, %v349_v0  ;;  %v200_v17 = vmul.f32 %v376_v7, %v349_v0 }
  0x14   : > { %v201_v18 = vmul.f32 %v379_v9, %v349_v0  ;;  %v202_v19 = vmul.f32 %v380_v10, %v349_v0  ;;  %v203_v20 = vmul.f32 %v383_v11, %v349_v0  ;;  %v204_v21 = vmul.f32 %v384_v12, %v349_v0 }
  0x15   : > { %v212_v22 = vadd.f32 %v350_v13, %v197_v14  ;;  %v213_v23 = vadd.f32 %v350_v13, %v198_v15  ;;  %v214_v24 = vadd.f32 %v350_v13, %v199_v16  ;;  %v215_v25 = vadd.f32 %v350_v13, %v200_v17 }
  0x16   : > { %v216_v26 = vadd.f32 %v350_v13, %v201_v18  ;;  %v217_v27 = vadd.f32 %v350_v13, %v202_v19  ;;  %v218_v28 = vadd.f32 %v350_v13, %v203_v20  ;;  %v219_v29 = vadd.f32 %v350_v13, %v204_v21 }
  0x17   : > { %vm220_vm0 = vcmp.ge.f32.partialorder %v212_v22, 0.0  ;;  %vm221_vm1 = vcmp.ge.f32.partialorder %v213_v23, 0.0  ;;  %v228_v30 = vmul.f32 0.2, %v212_v22  ;;  %v229_v31 = vmul.f32 0.2, %v213_v23 }
  0x18   : > { %vm222_vm2 = vcmp.ge.f32.partialorder %v214_v24, 0.0  ;;  %vm223_vm3 = vcmp.ge.f32.partialorder %v215_v25, 0.0  ;;  %v230_v32 = vmul.f32 0.2, %v214_v24  ;;  %v231_v33 = vmul.f32 0.2, %v215_v25 }
  0x19   : > { %v236_v34 = vsel %vm220_vm0, %v212_v22, %v228_v30  ;;  %v237_v35 = vsel %vm221_vm1, %v213_v23, %v229_v31  ;;  %vm224_vm4 = vcmp.ge.f32.partialorder %v216_v26, 0.0  ;;  %vm225_vm5 = vcmp.ge.f32.partialorder %v217_v27, 0.0 }
  0x1a   : > { %v388_v36 = vpack.c.bf16 %v237_v35, %v236_v34  ;;  %v238_v37 = vsel %vm222_vm2, %v214_v24, %v230_v32  ;;  %v239_v38 = vsel %vm223_vm3, %v215_v25, %v231_v33  ;;  %v232_v39 = vmul.f32 0.2, %v216_v26 }
  0x1b   : > { %v393_v40 = vpack.c.bf16 %v239_v38, %v238_v37  ;;  %v233_v41 = vmul.f32 0.2, %v217_v27  ;;  %vm226_vm6 = vcmp.ge.f32.partialorder %v218_v28, 0.0  ;;  %vm227_vm7 = vcmp.ge.f32.partialorder %v219_v29, 0.0 }
  0x1c   : > { %389 = vst [vmem:[%s172_s25] sm:$0xff] %v388_v36   ;;  %v240_v42 = vsel %vm224_vm4, %v216_v26, %v232_v39  ;;  %v234_v43 = vmul.f32 0.2, %v218_v28  ;;  %v235_v44 = vmul.f32 0.2, %v219_v29 }
  0x1d   : > { %408 = vst [vmem:[%s172_s25 + $0x8] sm:$0xff] %v393_v40   ;;  %v241_v45 = vsel %vm225_vm5, %v217_v27, %v233_v41 }
  0x1e   : > { %v398_v46 = vpack.c.bf16 %v241_v45, %v240_v42  ;;  %v242_v47 = vsel %vm226_vm6, %v218_v28, %v234_v43  ;;  %v243_v48 = vsel %vm227_vm7, %v219_v29, %v235_v44 }
  0x1f   : > { %v403_v49 = vpack.c.bf16 %v243_v48, %v242_v47 }
  0x20   : > { %409 = vst [vmem:[%s172_s25 + $0x10] sm:$0xff] %v398_v46  }
  0x21   : > { %410 = vst [vmem:[%s172_s25 + $0x18] sm:$0xff] %v403_v49  }
  0x22 PF: > { %s13_s12 = sadd.s32 1, %s425_s12  }
  0x23   : > { %p10_p4 = scmp.ge.s32.totalorder %s13_s12, 6  }
  0x25   :  { %12 = sbr.rel (!%p10_p4) target bundleno = 1 (0x1), region = 62 }

// kernel: dc_discriminator_forward.4
= control target key start
LH: loop header
LB: loop body
LE: loop exit
PB: predicated region body
PF: predicated region fallthrough
CT: control target
= control target key end

     0   :  { %s3689_s18 = smov 0   ;;  %s4754_s0 = inlined_call_operand.vmem [shape: bf16[256,2048], index: 0, kind: input, shape index: {}]   ;;  %s4755_s1 = inlined_call_operand.vmem [shape: f32[1,2048], index: 1, kind: input, shape index: {}]   ;;  %s4756_s2 = inlined_call_operand.vmem [shape: f32[1,2048], index: 2, kind: input, shape index: {}]   ;;  %s4757_s3 = inlined_call_operand.vmem [shape: bf16[2048,128], index: 3, kind: input, shape index: {}]   ;;  %s4758_s4 = inlined_call_operand.vmem [shape: bf16[256,128], index: 4, kind: output, shape index: {0}]   ;;  %s4759_s5 = inlined_call_operand.vmem [shape: f32[4,2,128], index: 5, kind: output, shape index: {1}]  }
   0x1 LB: > { %s3695_s19 = sadd.s32 4294967295, %s3657_s18   ;;  %p3018_p0 = scmp.ge.s32.totalorder %s3657_s18, 1  ;;  %s3657_s18 = sphi %s3689_s18, %s16_s18  }
   0x2   : > { %p192_p1 = scmp.lt.s32.totalorder %s3657_s18, 5 }
   0x4   : > { %p193_p2 = pnand %p3018_p0, %p192_p1 }
   0x5   : > { %v3523_v0 = vld [vmem:[%s4757_s3 + $0x40] sm:$0xff] (!%p193_p2)   ;;  %v3527_v4 = vld [vmem:[%s4757_s3 + $0x48] sm:$0xff] (!%p193_p2)   ;;  %v3531_v8 = vld [vmem:[%s4757_s3 + $0x50] sm:$0xff] (!%p193_p2)   ;;  %s3019_s29 = sshll.u32 (!%p193_p2), %s3695_s19, 3  ;;  %v439_v21 = vlaneseq (!%p193_p2)  ;;  %p238_p4 = scmp.lt.s32.totalorder (!%p193_p2), %s3695_s19, 3 }
   0x6   : > { %196 = sbr.rel (%p193_p2) target bundleno = 475 (0x1db), region = 36  ;;  %v3524_v1 = vld [vmem:[%s4757_s3 + $0xc0] sm:$0xff] (!%p193_p2)   ;;  %3195 = vmatprep.subr.bf16.mxu0 (!%p193_p2), %v3523_v0  ;;  %v3528_v5 = vld [vmem:[%s4757_s3 + $0xc8] sm:$0xff] (!%p193_p2)   ;;  %v3532_v9 = vld [vmem:[%s4757_s3 + $0xd0] sm:$0xff] (!%p193_p2)   ;;  %p226_p3 = scmp.lt.s32.totalorder (!%p193_p2), %s3019_s29, 31 }
   0x7   : > { %v3525_v2 = vld [vmem:[%s4757_s3] sm:$0xff] (!%p193_p2)   ;;  %3235 = vmatprep.subr.bf16.mxu1 (!%p193_p2), %v3524_v1  ;;  %v3529_v6 = vld [vmem:[%s4757_s3 + $0x8] sm:$0xff] (!%p193_p2)   ;;  %v3533_v10 = vld [vmem:[%s4757_s3 + $0x10] sm:$0xff] (!%p193_p2)   ;;  %v3777_v26 = vshrl.u32 (!%p193_p2), %v439_v21, 7 }
   0x8   : > { %v3526_v3 = vld [vmem:[%s4757_s3 + $0x80] sm:$0xff] (!%p193_p2)   ;;  %3196 = vmatpush3.bf16.msra.mxu0 (!%p193_p2), %v3525_v2  ;;  %v3530_v7 = vld [vmem:[%s4757_s3 + $0x88] sm:$0xff] (!%p193_p2)   ;;  %v3534_v11 = vld [vmem:[%s4757_s3 + $0x90] sm:$0xff] (!%p193_p2)  }
   0x9   : > { %3236 = vmatpush3.bf16.msra.mxu1 (!%p193_p2), %v3526_v3  ;;  %3197 = vmatprep.subr.bf16.mxu0 (!%p193_p2), %v3527_v4  ;;  %v3535_v12 = vld [vmem:[%s4757_s3 + $0x58] sm:$0xff] (!%p193_p2)   ;;  %v3539_v16 = vld [vmem:[%s4757_s3 + $0x60] sm:$0xff] (!%p193_p2)   ;;  %v3543_v20 = vld [vmem:[%s4757_s3 + $0x68] sm:$0xff] (!%p193_p2)   ;;  %v3793_v31 = vsub.s32 (!%p193_p2), 1, %v3777_v26  ;;  %v3804_v33 = vsub.s32 (!%p193_p2), 3, %v3777_v26  ;;  %v3810_v35 = vsub.s32 (!%p193_p2), 0, %v3777_v26 }
   0xa   : > { %3237 = vmatprep.subr.bf16.mxu1 (!%p193_p2), %v3528_v5  ;;  %v3536_v13 = vld [vmem:[%s4757_s3 + $0xd8] sm:$0xff] (!%p193_p2)   ;;  %v3540_v17 = vld [vmem:[%s4757_s3 + $0xe0] sm:$0xff] (!%p193_p2)   ;;  %v3544_v22 = vld [vmem:[%s4757_s3 + $0xe8] sm:$0xff] (!%p193_p2)   ;;  %v3816_v37 = vsub.s32 (!%p193_p2), 2, %v3777_v26  ;;  %v3826_v41 = vsub.s32 (!%p193_p2), 4, %v3777_v26  ;;  %v3829_v42 = vsub.s32 (!%p193_p2), 5, %v3777_v26 }
   0xb   : > { %v3537_v14 = vld [vmem:[%s4757_s3 + $0x18] sm:$0xff] (!%p193_p2)   ;;  %v3541_v18 = vld [vmem:[%s4757_s3 + $0x20] sm:$0xff] (!%p193_p2)   ;;  %v3545_v23 = vld [vmem:[%s4757_s3 + $0x28] sm:$0xff] (!%p193_p2)   ;;  %v3832_v43 = vsub.s32 (!%p193_p2), 6, %v3777_v26 }
   0xc   : > { %3198 = vmatpush3.bf16.msra.mxu0 (!%p193_p2), %v3529_v6  ;;  %v3538_v15 = vld [vmem:[%s4757_s3 + $0x98] sm:$0xff] (!%p193_p2)   ;;  %v3542_v19 = vld [vmem:[%s4757_s3 + $0xa0] sm:$0xff] (!%p193_p2)   ;;  %v3546_v24 = vld [vmem:[%s4757_s3 + $0xa8] sm:$0xff] (!%p193_p2)  }
   0xd   : > { %3238 = vmatpush3.bf16.msra.mxu1 %v3530_v7  ;;  %3199 = vmatprep.subr.bf16.mxu0 %v3531_v8  ;;  %s4761_s29 = smov (!%p226_p3, %s3019_s29), 31  ;;  %v3547_v25 = vld [vmem:[%s4757_s3 + $0x70] sm:$0xff]   ;;  %v3551_v30 = vld [vmem:[%s4757_s3 + $0x78] sm:$0xff]   ;;  %v3823_v40 = vld [vmem:[%s4755_s1] sm:$0xff]  ;;  %s4763_s19 = smov (!%p238_p4, %s3695_s19), 3 }
   0xe   : > { %3239 = vmatprep.subr.bf16.mxu1 %v3532_v9  ;;  %v3548_v27 = vld [vmem:[%s4757_s3 + $0xf0] sm:$0xff]   ;;  %s3163_s30 = sshll.u32 %s4761_s29, 6  ;;  %v3552_v32 = vld [vmem:[%s4757_s3 + $0xf8] sm:$0xff]   ;;  %v3837_v48 = vld [vmem:[%s4756_s2] sm:$0xff]  ;;  %v3843_v51 = vrot.slane %v3823_v40, %v3793_v31  ;;  %v3854_v58 = vrot.slane %v3823_v40, %v3804_v33  ;;  %v3867_v63 = vrot.slane %v3823_v40, %v3810_v35  ;;  %v3877_v3 = vrot.slane %v3823_v40, %v3816_v37 }
   0xf   : > { %v3549_v28 = vld [vmem:[%s4757_s3 + $0x30] sm:$0xff]   ;;  %s3801_s14 = scalar_lea.vmem %s4754_s0, %s3163_s30  ;;  %v3553_v34 = vld [vmem:[%s4757_s3 + $0x38] sm:$0xff]   ;;  %v3847_v52 = vrot.slane %v3837_v48, %v3793_v31  ;;  %v3555_v55 = vld [vmem:[%s4757_s3 + $0x140] sm:$0xff]   ;;  %v3858_v59 = vrot.slane %v3837_v48, %v3804_v33  ;;  %v3871_v0 = vrot.slane %v3837_v48, %v3810_v35  ;;  %v3881_v4 = vrot.slane %v3837_v48, %v3816_v37 }
  0x10   : > { %3200 = vmatpush3.bf16.msra.mxu0 %v3533_v10  ;;  %v3550_v29 = vld [vmem:[%s4757_s3 + $0xb0] sm:$0xff]   ;;  %v3554_v36 = vld [vmem:[%s4757_s3 + $0xb8] sm:$0xff]   ;;  %v243_v38 = vld [vmem:[%s3801_s14] sm:$0xff] }
  0x11   : > { %3240 = vmatpush3.bf16.msra.mxu1 %v3534_v11  ;;  %3201 = vmatprep.subr.bf16.mxu0 %v3535_v12  ;;  %v251_v39 = vld [vmem:[%s3801_s14 + $0x40] sm:$0xff]  ;;  %v307_v44 = vunpack.c.l.bf16 %v243_v38  ;;  %v308_v45 = vunpack.c.h.bf16 %v243_v38  ;;  %v244_v49 = vld [vmem:[%s3801_s14 + $0x8] sm:$0xff] }
  0x12   : > { %3241 = vmatprep.subr.bf16.mxu1 %v3536_v13  ;;  %v323_v46 = vunpack.c.l.bf16 %v251_v39  ;;  %v324_v47 = vunpack.c.h.bf16 %v251_v39  ;;  %v252_v50 = vld [vmem:[%s3801_s14 + $0x48] sm:$0xff]  ;;  %v309_v53 = vunpack.c.l.bf16 %v244_v49  ;;  %v310_v54 = vunpack.c.h.bf16 %v244_v49  ;;  %v3556_v60 = vld [vmem:[%s4757_s3 + $0x1c0] sm:$0xff]  }
  0x13   : > { %v325_v56 = vunpack.c.l.bf16 %v252_v50  ;;  %v326_v57 = vunpack.c.h.bf16 %v252_v50  ;;  %v520_v61 = vmul.f32 %v3843_v51, %v308_v45  ;;  %v519_v7 = vmul.f32 %v3867_v63, %v307_v44  ;;  %v3901_v38 = vld [vmem:[%s3801_s14 + $0x88] sm:$0xff] }
  0x14   : > { %3202 = vmatpush3.bf16.msra.mxu0 %v3537_v14  ;;  %v536_v62 = vmul.f32 %v3843_v51, %v324_v47  ;;  %v522_v1 = vmul.f32 %v3854_v58, %v310_v54  ;;  %v535_v8 = vmul.f32 %v3867_v63, %v323_v46  ;;  %v521_v11 = vmul.f32 %v3877_v3, %v309_v53  ;;  %v3904_v46 = vld [vmem:[%s3801_s14 + $0xc8] sm:$0xff]  ;;  %v3558_v54 = vld [vmem:[%s4757_s3 + $0x180] sm:$0xff]  }
  0x15   : > { %3242 = vmatpush3.bf16.msra.mxu1 %v3538_v15  ;;  %3203 = vmatprep.subr.bf16.mxu0 %v3539_v16  ;;  %v538_v2 = vmul.f32 %v3854_v58, %v326_v57  ;;  %v732_v5 = vadd.f32 %v3847_v52, %v520_v61  ;;  %v537_v12 = vmul.f32 %v3877_v3, %v325_v56  ;;  %v342_v47 = vunpack.c.h.bf16 %v3901_v38  ;;  %v3559_v56 = vld [vmem:[%s4757_s3 + $0x148] sm:$0xff]  }
  0x16   : > { %3243 = vmatprep.subr.bf16.mxu1 %v3540_v17  ;;  %v748_v6 = vadd.f32 %v3847_v52, %v536_v62  ;;  %v734_v9 = vadd.f32 %v3858_v59, %v522_v1  ;;  %v358_v61 = vunpack.c.h.bf16 %v3904_v46  ;;  %v3560_v1 = vld [vmem:[%s4757_s3 + $0x1c8] sm:$0xff]  }
  0x17   : > { %v750_v10 = vadd.f32 %v3858_v59, %v538_v2  ;;  %vm860_vm0 = vcmp.ge.f32.partialorder %v732_v5, 0.0  ;;  %v988_v13 = vmul.f32 0.2, %v732_v5  ;;  %v554_v2 = vmul.f32 %v3854_v58, %v342_v47 }
  0x18   : > { %3204 = vmatpush3.bf16.msra.mxu0 %v3541_v18  ;;  %vm876_vm1 = vcmp.ge.f32.partialorder %v748_v6, 0.0  ;;  %v1004_v14 = vmul.f32 0.2, %v748_v6  ;;  %vm862_vm2 = vcmp.ge.f32.partialorder %v734_v9, 0.0  ;;  %v990_v15 = vmul.f32 0.2, %v734_v9 }
  0x19   : > { %3244 = vmatpush3.bf16.msra.mxu1 %v3542_v19  ;;  %3205 = vmatprep.subr.bf16.mxu0 %v3543_v20  ;;  %vm878_vm3 = vcmp.ge.f32.partialorder %v750_v10, 0.0  ;;  %v1006_v16 = vmul.f32 0.2, %v750_v10  ;;  %v1116_v17 = vsel %vm860_vm0, %v732_v5, %v988_v13  ;;  %v731_v19 = vadd.f32 %v3871_v0, %v519_v7 }
  0x1a   : > { %3245 = vmatprep.subr.bf16.mxu1 %v3544_v22  ;;  %v1132_v18 = vsel %vm876_vm1, %v748_v6, %v1004_v14  ;;  %v747_v20 = vadd.f32 %v3871_v0, %v535_v8  ;;  %v1118_v22 = vsel %vm862_vm2, %v734_v9, %v990_v15  ;;  %v3561_v8 = vld [vmem:[%s4757_s3 + $0x108] sm:$0xff]   ;;  %v766_v13 = vadd.f32 %v3858_v59, %v554_v2 }
  0x1b   : > { %v1244_v21 = vpack.c.bf16 %v1132_v18, %v1116_v17  ;;  %vm859_vm4 = vcmp.ge.f32.partialorder %v731_v19, 0.0  ;;  %v3563_v17 = vld [vmem:[%s4757_s3 + $0x150] sm:$0xff]  }
  0x1c   : > { %3206 = vmatpush3.bf16.msra.mxu0 %v3545_v23  ;;  %v1134_v23 = vsel %vm878_vm3, %v750_v10, %v1006_v16  ;;  %vm875_vm5 = vcmp.ge.f32.partialorder %v747_v20, 0.0  ;;  %v341_v16 = vunpack.c.l.bf16 %v3901_v38  ;;  %vm894_vm10 = vcmp.ge.f32.partialorder %v766_v13, 0.0  ;;  %v3567_v38 = vld [vmem:[%s4757_s3 + $0x158] sm:$0xff]  }
  0x1d   : > { %3246 = vmatpush3.bf16.msra.mxu1 %v3546_v24  ;;  %3207 = vmatprep.subr.bf16.mxu0 %v3547_v25  ;;  %v733_v24 = vadd.f32 %v3881_v4, %v521_v11  ;;  %v1246_v25 = vpack.c.bf16 %v1134_v23, %v1118_v22  ;;  %v570_v11 = vmul.f32 %v3854_v58, %v358_v61  ;;  %v3564_v23 = vld [vmem:[%s4757_s3 + $0x1d0] sm:$0xff]  }
  0x1e   : > { %3247 = vmatprep.subr.bf16.mxu1 %v3548_v27  ;;  %v987_v27 = vmul.f32 0.2, %v731_v19  ;;  %2363 = vmatprep.mubr.bf16.mxu0 %v1244_v21  ;;  %v1022_v21 = vmul.f32 0.2, %v766_v13  ;;  %v553_v47 = vmul.f32 %v3877_v3, %v341_v16 }
  0x1f   : > { %vm861_vm6 = vcmp.ge.f32.partialorder %v733_v24, 0.0  ;;  %2428 = vmatprep.mubr.bf16.mxu1 %v1246_v25 }
  0x20   : > { %3208 = vmatpush3.bf16.msra.mxu0 %v3549_v28  ;;  %v259_v28 = vld [vmem:[%s3801_s14 + $0x80] sm:$0xff]  ;;  %v1115_v39 = vsel %vm859_vm4, %v731_v19, %v987_v27 }
  0x21   : > { %3248 = vmatpush3.bf16.msra.mxu1 %v3550_v29  ;;  %3209 = vmatprep.subr.bf16.mxu0 %v3551_v30  ;;  %v267_v29 = vld [vmem:[%s3801_s14 + $0xc0] sm:$0xff]  ;;  %v1003_v30 = vmul.f32 0.2, %v747_v20  ;;  %v340_v44 = vunpack.c.h.bf16 %v259_v28  ;;  %v339_v5 = vunpack.c.l.bf16 %v259_v28  ;;  %v357_v28 = vunpack.c.l.bf16 %v3904_v46 }
  0x22   : > { %3249 = vmatprep.subr.bf16.mxu1 %v3552_v32  ;;  %v749_v32 = vadd.f32 %v3881_v4, %v537_v12  ;;  %v356_v45 = vunpack.c.h.bf16 %v267_v29  ;;  %v355_v6 = vunpack.c.l.bf16 %v267_v29  ;;  %v3562_v12 = vld [vmem:[%s4757_s3 + $0x188] sm:$0xff]   ;;  %v3565_v29 = vld [vmem:[%s4757_s3 + $0x110] sm:$0xff]  }
  0x23   : > { %v1131_v49 = vsel %vm875_vm5, %v747_v20, %v1003_v30  ;;  %v552_v57 = vmul.f32 %v3843_v51, %v340_v44  ;;  %v551_v14 = vmul.f32 %v3867_v63, %v339_v5  ;;  %v782_v20 = vadd.f32 %v3858_v59, %v570_v11 }
  0x24   : > { %3210 = vmatpush3.bf16.msra.mxu0 %v3553_v34  ;;  %v989_v34 = vmul.f32 0.2, %v733_v24  ;;  %vm877_vm7 = vcmp.ge.f32.partialorder %v749_v32, 0.0  ;;  %v1005_v50 = vmul.f32 0.2, %v749_v32  ;;  %v567_v15 = vmul.f32 %v3867_v63, %v355_v6 }
  0x25   : > { %3250 = vmatpush3.bf16.msra.mxu1 %v3554_v36  ;;  %3275 = vmatprep.subr.bf16.mxu0 %v3555_v55  ;;  %v3557_v36 = vld [vmem:[%s4757_s3 + $0x100] sm:$0xff]   ;;  %v1243_v55 = vpack.c.bf16 %v1131_v49, %v1115_v39  ;;  %v764_v9 = vadd.f32 %v3847_v52, %v552_v57  ;;  %v763_v22 = vadd.f32 %v3871_v0, %v551_v14  ;;  %vm910_vm11 = vcmp.ge.f32.partialorder %v782_v20, 0.0 }
  0x26   : > { %3315 = vmatprep.subr.bf16.mxu1 %v3556_v60  ;;  %v1117_v53 = vsel %vm861_vm6, %v733_v24, %v989_v34  ;;  %v568_v60 = vmul.f32 %v3843_v51, %v356_v45  ;;  %v1133_v62 = vsel %vm877_vm7, %v749_v32, %v1005_v50  ;;  %v779_v27 = vadd.f32 %v3871_v0, %v567_v15  ;;  %v3568_v45 = vld [vmem:[%s4757_s3 + $0x1d8] sm:$0xff]  }
  0x27   : > { %2364 = vmatmul.mubr.bf16.vlgmr.msra.gmra.mrb[0].mxu0 %v1243_v55  ;;  %v1245_v7 = vpack.c.bf16 %v1133_v62, %v1117_v53  ;;  %vm892_vm8 = vcmp.ge.f32.partialorder %v764_v9, 0.0  ;;  %v1020_v18 = vmul.f32 0.2, %v764_v9  ;;  %v1038_v32 = vmul.f32 0.2, %v782_v20  ;;  %v3569_v50 = vld [vmem:[%s4757_s3 + $0x118] sm:$0xff]  }
  0x28   : > { %v780_v10 = vadd.f32 %v3847_v52, %v568_v60  ;;  %3276 = vmatpush3.bf16.msra.mxu0 %v3557_v36  ;;  %v1150_v34 = vsel %vm894_vm10, %v766_v13, %v1022_v21  ;;  %v3566_v36 = vld [vmem:[%s4757_s3 + $0x190] sm:$0xff]   ;;  %vm891_vm12 = vcmp.ge.f32.partialorder %v763_v22, 0.0  ;;  %vm907_vm13 = vcmp.ge.f32.partialorder %v779_v27, 0.0  ;;  %v275_v53 = vld [vmem:[%s3801_s14 + $0x100] sm:$0xff]  ;;  %v3969_v62 = vld [vmem:[%s3801_s14 + $0x108] sm:$0xff] }
  0x29   : > { %2429 = vmatmul.mubr.bf16.vlgmr.msra.gmra.mrb[0].mxu1 %v1245_v7  ;;  %3277 = vmatprep.subr.bf16.mxu0 %v3559_v56  ;;  %v1148_v24 = vsel %vm892_vm8, %v764_v9, %v1020_v18  ;;  %v1019_v39 = vmul.f32 0.2, %v763_v22  ;;  %v1035_v44 = vmul.f32 0.2, %v779_v27  ;;  %v1166_v46 = vsel %vm910_vm11, %v782_v20, %v1038_v32  ;;  %v3572_v13 = vld [vmem:[%s4757_s3 + $0x1e0] sm:$0xff]  }
  0x2a   : > { %vm908_vm9 = vcmp.ge.f32.partialorder %v780_v10, 0.0  ;;  %v1036_v19 = vmul.f32 0.2, %v780_v10  ;;  %3316 = vmatpush3.bf16.msra.mxu1 %v3558_v54  ;;  %v569_v49 = vmul.f32 %v3877_v3, %v357_v28  ;;  %v283_v54 = vld [vmem:[%s3801_s14 + $0x140] sm:$0xff]  ;;  %v3964_v55 = vsub.s32 7, %v3777_v26  ;;  %v3570_v26 = vld [vmem:[%s4757_s3 + $0x198] sm:$0xff]  }
  0x2b   : > { %3317 = vmatprep.subr.bf16.mxu1 %v3560_v1  ;;  %v1262_v56 = vpack.c.bf16 %v1166_v46, %v1150_v34  ;;  %v1147_v57 = vsel %vm891_vm12, %v763_v22, %v1019_v39  ;;  %v1163_v60 = vsel %vm907_vm13, %v779_v27, %v1035_v44  ;;  %v372_v61 = vunpack.c.h.bf16 %v275_v53  ;;  %v3972_v1 = vld [vmem:[%s3801_s14 + $0x148] sm:$0xff]  ;;  %v3573_v20 = vld [vmem:[%s4757_s3 + $0x120] sm:$0xff]  }
  0x2c   : > { %v1164_v25 = vsel %vm908_vm9, %v780_v10, %v1036_v19  ;;  %3278 = vmatpush3.bf16.msra.mxu0 %v3561_v8  ;;  %v1259_v2 = vpack.c.bf16 %v1163_v60, %v1147_v57  ;;  %v765_v5 = vadd.f32 %v3881_v4, %v553_v47  ;;  %v781_v6 = vadd.f32 %v3881_v4, %v569_v49  ;;  %v3571_v8 = vld [vmem:[%s4757_s3 + $0x160] sm:$0xff]   ;;  %v3576_v39 = vld [vmem:[%s4757_s3 + $0x1e8] sm:$0xff]  }
  0x2d   : > { %v1260_v30 = vpack.c.bf16 %v1164_v25, %v1148_v24  ;;  %3279 = vmatprep.subr.bf16.mxu0 %v3563_v17  ;;  %v388_v7 = vunpack.c.h.bf16 %v283_v54  ;;  %2436 = vmatprep.mubr.bf16.mxu1 %v1262_v56  ;;  %v584_v9 = vmul.f32 %v3843_v51, %v372_v61  ;;  %v374_v10 = vunpack.c.h.bf16 %v3969_v62  ;;  %v3574_v25 = vld [vmem:[%s4757_s3 + $0x1a0] sm:$0xff]   ;;  %v3577_v47 = vld [vmem:[%s4757_s3 + $0x128] sm:$0xff]  }
  0x2e   : > { %3318 = vmatpush3.bf16.msra.mxu1 %v3562_v12  ;;  %v390_v11 = vunpack.c.h.bf16 %v3972_v1  ;;  %v371_v12 = vunpack.c.l.bf16 %v275_v53  ;;  %vm893_vm14 = vcmp.ge.f32.partialorder %v765_v5, 0.0  ;;  %vm909_vm15 = vcmp.ge.f32.partialorder %v781_v6, 0.0  ;;  %v3578_v57 = vld [vmem:[%s4757_s3 + $0x1a8] sm:$0xff]  }
  0x2f   : > { %2371 = vmatprep.mubr.bf16.mxu0 %v1260_v30  ;;  %3319 = vmatprep.subr.bf16.mxu1 %v3564_v23  ;;  %v1021_v14 = vmul.f32 0.2, %v765_v5  ;;  %v1037_v15 = vmul.f32 0.2, %v781_v6  ;;  %v600_v16 = vmul.f32 %v3843_v51, %v388_v7  ;;  %v796_v17 = vadd.f32 %v3847_v52, %v584_v9  ;;  %v3575_v30 = vld [vmem:[%s4757_s3 + $0x168] sm:$0xff]  }
  0x30   : > { %3280 = vmatpush3.bf16.msra.mxu0 %v3565_v29  ;;  %v586_v18 = vmul.f32 %v3854_v58, %v374_v10  ;;  %v602_v19 = vmul.f32 %v3854_v58, %v390_v11  ;;  %v387_v23 = vunpack.c.l.bf16 %v283_v54  ;;  %v583_v24 = vmul.f32 %v3867_v63, %v371_v12  ;;  %v4022_v9 = vld [vmem:[%s3801_s14 + $0x188] sm:$0xff] }
  0x31   : > { %3281 = vmatprep.subr.bf16.mxu0 %v3567_v38  ;;  %2372 = vmatmul.mubr.bf16.gmra.mrb[4].mxu0 %v1259_v2  ;;  %v1149_v21 = vsel %vm893_vm14, %v765_v5, %v1021_v14  ;;  %v1165_v22 = vsel %vm909_vm15, %v781_v6, %v1037_v15  ;;  %v812_v28 = vadd.f32 %v3847_v52, %v600_v16  ;;  %vm924_vm0 = vcmp.ge.f32.partialorder %v796_v17, 0.0  ;;  %v291_v5 = vld [vmem:[%s3801_s14 + $0x180] sm:$0xff]  ;;  %v4025_v10 = vld [vmem:[%s3801_s14 + $0x1c8] sm:$0xff]  ;;  %v3579_v14 = vld [vmem:[%s4757_s3 + $0x170] sm:$0xff]  }
  0x32   : > { %3320 = vmatpush3.bf16.msra.mxu1 %v3566_v36  ;;  %v1261_v27 = vpack.c.bf16 %v1165_v22, %v1149_v21  ;;  %v1052_v29 = vmul.f32 0.2, %v796_v17  ;;  %v798_v32 = vadd.f32 %v3858_v59, %v586_v18  ;;  %v814_v34 = vadd.f32 %v3858_v59, %v602_v19  ;;  %v3580_v19 = vld [vmem:[%s4757_s3 + $0x1f0] sm:$0xff]  }
  0x33   : > { %3321 = vmatprep.subr.bf16.mxu1 %v3568_v45  ;;  %v599_v36 = vmul.f32 %v3867_v63, %v387_v23  ;;  %v795_v38 = vadd.f32 %v3871_v0, %v583_v24  ;;  %vm940_vm1 = vcmp.ge.f32.partialorder %v812_v28, 0.0  ;;  %v1068_v44 = vmul.f32 0.2, %v812_v28  ;;  %v3581_v24 = vld [vmem:[%s4757_s3 + $0x130] sm:$0xff]  }
  0x34   : > { %3282 = vmatpush3.bf16.msra.mxu0 %v3569_v50  ;;  %2437 = vmatmul.mubr.bf16.gmra.mrb[4].mxu1 %v1261_v27  ;;  %v1180_v45 = vsel %vm924_vm0, %v796_v17, %v1052_v29  ;;  %v373_v46 = vunpack.c.l.bf16 %v3969_v62  ;;  %vm926_vm2 = vcmp.ge.f32.partialorder %v798_v32, 0.0  ;;  %vm942_vm3 = vcmp.ge.f32.partialorder %v814_v34, 0.0 }
  0x35   : > { %3283 = vmatprep.subr.bf16.mxu0 %v3571_v8  ;;  %v1054_v49 = vmul.f32 0.2, %v798_v32  ;;  %v1070_v50 = vmul.f32 0.2, %v814_v34  ;;  %v1196_v53 = vsel %vm940_vm1, %v812_v28, %v1068_v44  ;;  %v811_v54 = vadd.f32 %v3871_v0, %v599_v36  ;;  %v299_v8 = vld [vmem:[%s3801_s14 + $0x1c0] sm:$0xff] }
  0x36   : > { %3322 = vmatpush3.bf16.msra.mxu1 %v3570_v26  ;;  %vm923_vm4 = vcmp.ge.f32.partialorder %v795_v38, 0.0  ;;  %v1051_v56 = vmul.f32 0.2, %v795_v38  ;;  %v1276_v60 = vpack.c.bf16 %v1196_v53, %v1180_v45  ;;  %v389_v2 = vunpack.c.l.bf16 %v3972_v1 }
  0x37   : > { %3323 = vmatprep.subr.bf16.mxu1 %v3572_v13  ;;  %v1182_v61 = vsel %vm926_vm2, %v798_v32, %v1054_v49  ;;  %v1198_v62 = vsel %vm942_vm3, %v814_v34, %v1070_v50  ;;  %vm939_vm5 = vcmp.ge.f32.partialorder %v811_v54, 0.0  ;;  %v1067_v26 = vmul.f32 0.2, %v811_v54 }
  0x38   : > { %3284 = vmatpush3.bf16.msra.mxu0 %v3573_v20  ;;  %v1278_v6 = vpack.c.bf16 %v1198_v62, %v1182_v61  ;;  %v1179_v7 = vsel %vm923_vm4, %v795_v38, %v1051_v56  ;;  %2379 = vmatprep.mubr.bf16.mxu0 %v1276_v60  ;;  %v585_v11 = vmul.f32 %v3877_v3, %v373_v46  ;;  %v404_v13 = vunpack.c.h.bf16 %v291_v5  ;;  %v3585_v60 = vld [vmem:[%s4757_s3 + $0x138] sm:$0xff]  }
  0x39   : > { %3285 = vmatprep.subr.bf16.mxu0 %v3575_v30  ;;  %v601_v12 = vmul.f32 %v3877_v3, %v389_v2  ;;  %v420_v1 = vunpack.c.h.bf16 %v299_v8  ;;  %v1195_v15 = vsel %vm939_vm5, %v811_v54, %v1067_v26  ;;  %v406_v16 = vunpack.c.h.bf16 %v4022_v9  ;;  %v3582_v30 = vld [vmem:[%s4757_s3 + $0x1b0] sm:$0xff]   ;;  %v3586_v61 = vld [vmem:[%s4757_s3 + $0x1b8] sm:$0xff]  }
  0x3a   : > { %3324 = vmatpush3.bf16.msra.mxu1 %v3574_v25  ;;  %2444 = vmatprep.mubr.bf16.mxu1 %v1278_v6  ;;  %v422_v17 = vunpack.c.h.bf16 %v4025_v10  ;;  %v403_v18 = vunpack.c.l.bf16 %v291_v5  ;;  %v1275_v20 = vpack.c.bf16 %v1195_v15, %v1179_v7  ;;  %v797_v21 = vadd.f32 %v3881_v4, %v585_v11  ;;  %v245_v26 = vld [vmem:[%s3801_s14 + $0x10] sm:$0xff]  ;;  %v246_v11 = vld [vmem:[%s3801_s14 + $0x18] sm:$0xff] }
  0x3b   : > { %3325 = vmatprep.subr.bf16.mxu1 %v3576_v39  ;;  %v813_v22 = vadd.f32 %v3881_v4, %v601_v12  ;;  %v616_v23 = vmul.f32 %v3843_v51, %v404_v13  ;;  %v632_v25 = vmul.f32 %v3843_v51, %v420_v1  ;;  %v618_v27 = vmul.f32 %v3854_v58, %v406_v16  ;;  %v3583_v39 = vld [vmem:[%s4757_s3 + $0x178] sm:$0xff]  }
  0x3c   : > { %3286 = vmatpush3.bf16.msra.mxu0 %v3577_v47  ;;  %v634_v28 = vmul.f32 %v3854_v58, %v422_v17  ;;  %v419_v29 = vunpack.c.l.bf16 %v299_v8  ;;  %vm925_vm6 = vcmp.ge.f32.partialorder %v797_v21, 0.0  ;;  %v1053_v32 = vmul.f32 0.2, %v797_v21  ;;  %v3587_v17 = vld [vmem:[%s4757_s3 + $0x240] sm:$0xff]  }
  0x3d   : > { %3287 = vmatprep.subr.bf16.mxu0 %v3579_v14  ;;  %2380 = vmatmul.mubr.bf16.gmra.mrb[8].mxu0 %v1275_v20  ;;  %vm941_vm7 = vcmp.ge.f32.partialorder %v813_v22, 0.0  ;;  %v1069_v34 = vmul.f32 0.2, %v813_v22  ;;  %v828_v36 = vadd.f32 %v3847_v52, %v616_v23  ;;  %v844_v51 = vadd.f32 %v3847_v52, %v632_v25  ;;  %v3584_v52 = vld [vmem:[%s4757_s3 + $0x1f8] sm:$0xff]  }
  0x3e   : > { %3326 = vmatpush3.bf16.msra.mxu1 %v3578_v57  ;;  %v830_v38 = vadd.f32 %v3858_v59, %v618_v27  ;;  %v846_v58 = vadd.f32 %v3858_v59, %v634_v28  ;;  %v1181_v44 = vsel %vm925_vm6, %v797_v21, %v1053_v32  ;;  %v615_v46 = vmul.f32 %v3867_v63, %v403_v18 }
  0x3f   : > { %3327 = vmatprep.subr.bf16.mxu1 %v3580_v19  ;;  %v1197_v45 = vsel %vm941_vm7, %v813_v22, %v1069_v34  ;;  %v631_v47 = vmul.f32 %v3867_v63, %v419_v29  ;;  %vm956_vm8 = vcmp.ge.f32.partialorder %v828_v36, 0.0  ;;  %vm972_vm9 = vcmp.ge.f32.partialorder %v844_v51, 0.0  ;;  %v254_v29 = vld [vmem:[%s3801_s14 + $0x58] sm:$0xff] }
  0x40   : > { %3288 = vmatpush3.bf16.msra.mxu0 %v3581_v24  ;;  %v1277_v49 = vpack.c.bf16 %v1197_v45, %v1181_v44  ;;  %v1084_v59 = vmul.f32 0.2, %v828_v36  ;;  %v1100_v50 = vmul.f32 0.2, %v844_v51  ;;  %vm958_vm10 = vcmp.ge.f32.partialorder %v830_v38, 0.0 }
  0x41   : > { %3289 = vmatprep.subr.bf16.mxu0 %v3583_v39  ;;  %vm974_vm11 = vcmp.ge.f32.partialorder %v846_v58, 0.0  ;;  %v1086_v53 = vmul.f32 0.2, %v830_v38  ;;  %v1102_v56 = vmul.f32 0.2, %v846_v58  ;;  %v827_v63 = vadd.f32 %v3871_v0, %v615_v46 }
  0x42   : > { %3328 = vmatpush3.bf16.msra.mxu1 %v3582_v30  ;;  %v1212_v54 = vsel %vm956_vm8, %v828_v36, %v1084_v59  ;;  %v843_v57 = vadd.f32 %v3871_v0, %v631_v47  ;;  %v1228_v62 = vsel %vm972_vm9, %v844_v51, %v1100_v50  ;;  %v405_v5 = vunpack.c.l.bf16 %v4022_v9  ;;  %v253_v0 = vld [vmem:[%s3801_s14 + $0x50] sm:$0xff] }
  0x43   : > { %3329 = vmatprep.subr.bf16.mxu1 %v3584_v52  ;;  %2445 = vmatmul.mubr.bf16.gmra.mrb[8].mxu1 %v1277_v49  ;;  %v1214_v2 = vsel %vm958_vm10, %v830_v38, %v1086_v53  ;;  %v421_v6 = vunpack.c.l.bf16 %v4025_v10  ;;  %v1292_v7 = vpack.c.bf16 %v1228_v62, %v1212_v54  ;;  %v1230_v8 = vsel %vm974_vm11, %v846_v58, %v1102_v56 }
  0x44   : > { %vm955_vm12 = vcmp.ge.f32.partialorder %v827_v63, 0.0  ;;  %vm971_vm13 = vcmp.ge.f32.partialorder %v843_v57, 0.0  ;;  %3290 = vmatpush3.bf16.msra.mxu0 %v3585_v60  ;;  %v1294_v12 = vpack.c.bf16 %v1230_v8, %v1214_v2  ;;  %v1083_v13 = vmul.f32 0.2, %v827_v63 }
  0x45   : > { %v1099_v1 = vmul.f32 0.2, %v843_v57  ;;  %v617_v14 = vmul.f32 %v3877_v3, %v405_v5  ;;  %2387 = vmatprep.mubr.bf16.mxu0 %v1292_v7  ;;  %v633_v9 = vmul.f32 %v3877_v3, %v421_v6  ;;  %v311_v15 = vunpack.c.l.bf16 %v245_v26  ;;  %v3588_v3 = vld [vmem:[%s4757_s3 + $0x2c0] sm:$0xff]   ;;  %3355 = vmatprep.subr.bf16.mxu0 %v3587_v17  ;;  %v261_v7 = vld [vmem:[%s3801_s14 + $0x90] sm:$0xff] }
  0x46   : > { %3330 = vmatpush3.bf16.msra.mxu1 %v3586_v61  ;;  %v312_v10 = vunpack.c.h.bf16 %v245_v26  ;;  %v327_v16 = vunpack.c.l.bf16 %v253_v0  ;;  %2452 = vmatprep.mubr.bf16.mxu1 %v1294_v12  ;;  %v1211_v18 = vsel %vm955_vm12, %v827_v63, %v1083_v13  ;;  %v328_v21 = vunpack.c.h.bf16 %v253_v0  ;;  %v269_v12 = vld [vmem:[%s3801_s14 + $0xd0] sm:$0xff] }
  0x47   : > { %v1227_v19 = vsel %vm971_vm13, %v843_v57, %v1099_v1  ;;  %v829_v20 = vadd.f32 %v3881_v4, %v617_v14  ;;  %v845_v23 = vadd.f32 %v3881_v4, %v633_v9  ;;  %v4089_v24 = vrot.slane %v3823_v40, %v3826_v41  ;;  %3395 = vmatprep.subr.bf16.mxu1 %v3588_v3  ;;  %v3589_v14 = vld [vmem:[%s4757_s3 + $0x200] sm:$0xff]   ;;  %v4140_v9 = vld [vmem:[%s3801_s14 + $0x98] sm:$0xff] }
  0x48   : > { %v1291_v22 = vpack.c.bf16 %v1227_v19, %v1211_v18  ;;  %v4093_v25 = vrot.slane %v3823_v40, %v3829_v42  ;;  %v4097_v28 = vrot.slane %v3837_v48, %v3829_v42  ;;  %v313_v30 = vunpack.c.l.bf16 %v246_v11 }
  0x49   : > { %vm957_vm14 = vcmp.ge.f32.partialorder %v829_v20, 0.0  ;;  %v1085_v27 = vmul.f32 0.2, %v829_v20  ;;  %vm973_vm15 = vcmp.ge.f32.partialorder %v845_v23, 0.0  ;;  %v1101_v4 = vmul.f32 0.2, %v845_v23 }
  0x4a   : > { %2388 = vmatmul.mubr.bf16.gmra.mrb[12].mxu0 %v1291_v22  ;;  %v523_v32 = vmul.f32 %v4089_v24, %v311_v15  ;;  %v524_v34 = vmul.f32 %v4093_v25, %v312_v10  ;;  %v539_v51 = vmul.f32 %v4089_v24, %v327_v16  ;;  %v540_v38 = vmul.f32 %v4093_v25, %v328_v21  ;;  %v4144_v16 = vld [vmem:[%s3801_s14 + $0xd8] sm:$0xff] }
  0x4b   : > { %v1213_v36 = vsel %vm957_vm14, %v829_v20, %v1085_v27  ;;  %v314_v58 = vunpack.c.h.bf16 %v246_v11  ;;  %v1229_v39 = vsel %vm973_vm15, %v845_v23, %v1101_v4  ;;  %v329_v45 = vunpack.c.l.bf16 %v254_v29  ;;  %v3591_v23 = vld [vmem:[%s4757_s3 + $0x248] sm:$0xff]  }
  0x4c   : > { %v736_v44 = vadd.f32 %v4097_v28, %v524_v34  ;;  %v330_v46 = vunpack.c.h.bf16 %v254_v29  ;;  %v1293_v47 = vpack.c.bf16 %v1229_v39, %v1213_v36  ;;  %v752_v52 = vadd.f32 %v4097_v28, %v540_v38 }
  0x4d   : > { %v4108_v49 = vrot.slane %v3823_v40, %v3832_v43  ;;  %v4112_v59 = vrot.slane %v3823_v40, %v3964_v55  ;;  %v4116_v53 = vrot.slane %v3837_v48, %v3964_v55  ;;  %v4120_v54 = vrot.slane %v3837_v48, %v3826_v41 }
  0x4e   : > { %vm864_vm0 = vcmp.ge.f32.partialorder %v736_v44, 0.0  ;;  %v992_v50 = vmul.f32 0.2, %v736_v44  ;;  %2453 = vmatmul.mubr.bf16.gmra.mrb[12].mxu1 %v1293_v47  ;;  %vm880_vm1 = vcmp.ge.f32.partialorder %v752_v52, 0.0  ;;  %v1008_v56 = vmul.f32 0.2, %v752_v52 }
  0x4f   : > { %v525_v63 = vmul.f32 %v4108_v49, %v313_v30  ;;  %v526_v40 = vmul.f32 %v4112_v59, %v314_v58  ;;  %v541_v60 = vmul.f32 %v4108_v49, %v329_v45  ;;  %v542_v61 = vmul.f32 %v4112_v59, %v330_v46  ;;  %v3593_v58 = vld [vmem:[%s4757_s3 + $0x208] sm:$0xff]  }
  0x50   : > { %v1120_v57 = vsel %vm864_vm0, %v736_v44, %v992_v50  ;;  %v735_v62 = vadd.f32 %v4120_v54, %v523_v32  ;;  %v1136_v2 = vsel %vm880_vm1, %v752_v52, %v1008_v56  ;;  %v751_v6 = vadd.f32 %v4120_v54, %v539_v51  ;;  %v3590_v32 = vld [vmem:[%s4757_s3 + $0x280] sm:$0xff]   ;;  %v3592_v47 = vld [vmem:[%s4757_s3 + $0x2c8] sm:$0xff]  }
  0x51   : > { %v738_v5 = vadd.f32 %v4116_v53, %v526_v40  ;;  %v4131_v26 = vrot.slane %v3837_v48, %v3832_v43  ;;  %v1248_v8 = vpack.c.bf16 %v1136_v2, %v1120_v57  ;;  %v754_v0 = vadd.f32 %v4116_v53, %v542_v61  ;;  %v3594_v40 = vld [vmem:[%s4757_s3 + $0x288] sm:$0xff]   ;;  %v3597_v2 = vld [vmem:[%s4757_s3 + $0x210] sm:$0xff]  }
  0x52   : > { %vm863_vm2 = vcmp.ge.f32.partialorder %v735_v62, 0.0  ;;  %v991_v11 = vmul.f32 0.2, %v735_v62  ;;  %vm879_vm4 = vcmp.ge.f32.partialorder %v751_v6, 0.0  ;;  %v1007_v1 = vmul.f32 0.2, %v751_v6 }
  0x53   : > { %vm866_vm3 = vcmp.ge.f32.partialorder %v738_v5, 0.0  ;;  %v994_v13 = vmul.f32 0.2, %v738_v5  ;;  %2493 = vmatprep.mubr.bf16.mxu0 %v1248_v8  ;;  %vm882_vm5 = vcmp.ge.f32.partialorder %v754_v0, 0.0  ;;  %v1010_v48 = vmul.f32 0.2, %v754_v0 }
  0x54   : > { %v1119_v15 = vsel %vm863_vm2, %v735_v62, %v991_v11  ;;  %v737_v10 = vadd.f32 %v4131_v26, %v525_v63  ;;  %v1135_v18 = vsel %vm879_vm4, %v751_v6, %v1007_v1  ;;  %v753_v19 = vadd.f32 %v4131_v26, %v541_v60  ;;  %v3595_v63 = vld [vmem:[%s4757_s3 + $0x250] sm:$0xff]   ;;  %v3599_v1 = vld [vmem:[%s4757_s3 + $0x258] sm:$0xff]  }
  0x55   : > { %v1122_v17 = vsel %vm866_vm3, %v738_v5, %v994_v13  ;;  %v344_v20 = vunpack.c.h.bf16 %v261_v7  ;;  %v1138_v21 = vsel %vm882_vm5, %v754_v0, %v1010_v48  ;;  %v1247_v3 = vpack.c.bf16 %v1135_v18, %v1119_v15  ;;  %v3596_v8 = vld [vmem:[%s4757_s3 + $0x2d0] sm:$0xff]  }
  0x56   : > { %vm865_vm6 = vcmp.ge.f32.partialorder %v737_v10, 0.0  ;;  %v993_v22 = vmul.f32 0.2, %v737_v10  ;;  %v1250_v27 = vpack.c.bf16 %v1138_v21, %v1122_v17  ;;  %vm881_vm7 = vcmp.ge.f32.partialorder %v753_v19, 0.0  ;;  %v4185_v0 = vld [vmem:[%s3801_s14 + $0x110] sm:$0xff] }
  0x57   : > { %v1009_v29 = vmul.f32 0.2, %v753_v19  ;;  %v360_v30 = vunpack.c.h.bf16 %v269_v12  ;;  %2494 = vmatmul.mubr.bf16.vlgmr.msra.gmra.mrb[16].mxu0 %v1247_v3  ;;  %v556_v34 = vmul.f32 %v4093_v25, %v344_v20  ;;  %v346_v36 = vunpack.c.h.bf16 %v4140_v9  ;;  %v3598_v17 = vld [vmem:[%s4757_s3 + $0x290] sm:$0xff]   ;;  %v3600_v3 = vld [vmem:[%s4757_s3 + $0x2d8] sm:$0xff]  }
  0x58   : > { %v1121_v4 = vsel %vm865_vm6, %v737_v10, %v993_v22  ;;  %v362_v51 = vunpack.c.h.bf16 %v4144_v16  ;;  %2558 = vmatprep.mubr.bf16.mxu1 %v1250_v27  ;;  %3356 = vmatpush3.bf16.msra.mxu0 %v3589_v14  ;;  %v343_v44 = vunpack.c.l.bf16 %v261_v7  ;;  %v359_v45 = vunpack.c.l.bf16 %v269_v12  ;;  %v4193_v14 = vld [vmem:[%s3801_s14 + $0x150] sm:$0xff]  ;;  %v4202_v22 = vld [vmem:[%s3801_s14 + $0x118] sm:$0xff] }
  0x59   : > { %v1137_v38 = vsel %vm881_vm7, %v753_v19, %v1009_v29  ;;  %v572_v39 = vmul.f32 %v4093_v25, %v360_v30  ;;  %3357 = vmatprep.subr.bf16.mxu0 %v3591_v23  ;;  %v768_v52 = vadd.f32 %v4097_v28, %v556_v34  ;;  %v558_v50 = vmul.f32 %v4112_v59, %v346_v36  ;;  %v4205_v23 = vld [vmem:[%s3801_s14 + $0x158] sm:$0xff] }
  0x5a   : > { %v1249_v46 = vpack.c.bf16 %v1137_v38, %v1121_v4  ;;  %v574_v56 = vmul.f32 %v4112_v59, %v362_v51  ;;  %v555_v60 = vmul.f32 %v4089_v24, %v343_v44  ;;  %v571_v61 = vmul.f32 %v4089_v24, %v359_v45  ;;  %v3601_v51 = vld [vmem:[%s4757_s3 + $0x218] sm:$0xff]   ;;  %v3603_v45 = vld [vmem:[%s4757_s3 + $0x260] sm:$0xff]  }
  0x5b   : > { %v784_v57 = vadd.f32 %v4097_v28, %v572_v39  ;;  %v345_v62 = vunpack.c.l.bf16 %v4140_v9  ;;  %vm896_vm8 = vcmp.ge.f32.partialorder %v768_v52, 0.0  ;;  %v1024_v5 = vmul.f32 0.2, %v768_v52 }
  0x5c   : > { %2559 = vmatmul.mubr.bf16.vlgmr.msra.gmra.mrb[16].mxu1 %v1249_v46  ;;  %v770_v6 = vadd.f32 %v4116_v53, %v558_v50  ;;  %v786_v7 = vadd.f32 %v4116_v53, %v574_v56  ;;  %3358 = vmatpush3.bf16.msra.mxu0 %v3593_v58  ;;  %v767_v12 = vadd.f32 %v4120_v54, %v555_v60  ;;  %v361_v29 = vunpack.c.l.bf16 %v4144_v16 }
  0x5d   : > { %3396 = vmatpush3.bf16.msra.mxu1 %v3590_v32  ;;  %vm912_vm9 = vcmp.ge.f32.partialorder %v784_v57, 0.0  ;;  %v1040_v11 = vmul.f32 0.2, %v784_v57  ;;  %v783_v13 = vadd.f32 %v4120_v54, %v571_v61  ;;  %v1152_v9 = vsel %vm896_vm8, %v768_v52, %v1024_v5  ;;  %3359 = vmatprep.subr.bf16.mxu0 %v3595_v63  ;;  %v3604_v5 = vld [vmem:[%s4757_s3 + $0x2e0] sm:$0xff]  }
  0x5e   : > { %3397 = vmatprep.subr.bf16.mxu1 %v3592_v47  ;;  %vm898_vm10 = vcmp.ge.f32.partialorder %v770_v6, 0.0  ;;  %vm914_vm11 = vcmp.ge.f32.partialorder %v786_v7, 0.0  ;;  %v1026_v48 = vmul.f32 0.2, %v770_v6  ;;  %v1042_v10 = vmul.f32 0.2, %v786_v7 }
  0x5f   : > { %v1168_v15 = vsel %vm912_vm9, %v784_v57, %v1040_v11  ;;  %vm895_vm12 = vcmp.ge.f32.partialorder %v767_v12, 0.0  ;;  %vm911_vm13 = vcmp.ge.f32.partialorder %v783_v13, 0.0  ;;  %v1023_v20 = vmul.f32 0.2, %v767_v12  ;;  %v3607_v11 = vld [vmem:[%s4757_s3 + $0x268] sm:$0xff]  }
  0x60   : > { %v1264_v18 = vpack.c.bf16 %v1168_v15, %v1152_v9  ;;  %v1154_v19 = vsel %vm898_vm10, %v770_v6, %v1026_v48  ;;  %v1039_v21 = vmul.f32 0.2, %v783_v13  ;;  %v1170_v27 = vsel %vm914_vm11, %v786_v7, %v1042_v10  ;;  %3360 = vmatpush3.bf16.msra.mxu0 %v3597_v2  ;;  %v3605_v6 = vld [vmem:[%s4757_s3 + $0x220] sm:$0xff]   ;;  %v3609_v9 = vld [vmem:[%s4757_s3 + $0x228] sm:$0xff]   ;;  %v4256_v48 = vld [vmem:[%s3801_s14 + $0x190] sm:$0xff] }
  0x61   : > { %3398 = vmatpush3.bf16.msra.mxu1 %v3594_v40  ;;  %v557_v30 = vmul.f32 %v4108_v49, %v345_v62  ;;  %v376_v4 = vunpack.c.h.bf16 %v4185_v0  ;;  %v1266_v32 = vpack.c.bf16 %v1170_v27, %v1154_v19  ;;  %v1151_v34 = vsel %vm895_vm12, %v767_v12, %v1023_v20  ;;  %3361 = vmatprep.subr.bf16.mxu0 %v3599_v1  ;;  %v3602_v40 = vld [vmem:[%s4757_s3 + $0x298] sm:$0xff]  }
  0x62   : > { %2501 = vmatprep.mubr.bf16.mxu0 %v1264_v18  ;;  %v1167_v36 = vsel %vm911_vm13, %v783_v13, %v1039_v21  ;;  %3399 = vmatprep.subr.bf16.mxu1 %v3596_v8  ;;  %v392_v38 = vunpack.c.h.bf16 %v4193_v14  ;;  %v573_v16 = vmul.f32 %v4108_v49, %v361_v29  ;;  %v378_v47 = vunpack.c.h.bf16 %v4202_v22 }
  0x63   : > { %v1263_v58 = vpack.c.bf16 %v1167_v36, %v1151_v34  ;;  %v769_v39 = vadd.f32 %v4131_v26, %v557_v30  ;;  %v588_v44 = vmul.f32 %v4093_v25, %v376_v4  ;;  %2566 = vmatprep.mubr.bf16.mxu1 %v1266_v32  ;;  %v394_v52 = vunpack.c.h.bf16 %v4205_v23  ;;  %v3610_v4 = vld [vmem:[%s4757_s3 + $0x2a8] sm:$0xff]   ;;  %v4269_v32 = vld [vmem:[%s3801_s14 + $0x198] sm:$0xff]  ;;  %v3611_v36 = vld [vmem:[%s4757_s3 + $0x270] sm:$0xff]  }
  0x64   : > { %v604_v46 = vmul.f32 %v4093_v25, %v392_v38  ;;  %v375_v50 = vunpack.c.l.bf16 %v4185_v0  ;;  %v785_v56 = vadd.f32 %v4131_v26, %v573_v16  ;;  %3362 = vmatpush3.bf16.msra.mxu0 %v3601_v51  ;;  %v590_v61 = vmul.f32 %v4112_v59, %v378_v47  ;;  %v3606_v0 = vld [vmem:[%s4757_s3 + $0x2a0] sm:$0xff]   ;;  %v4272_v34 = vld [vmem:[%s3801_s14 + $0x1d8] sm:$0xff]  ;;  %v3612_v47 = vld [vmem:[%s4757_s3 + $0x2f0] sm:$0xff]  }
  0x65   : > { %2502 = vmatmul.mubr.bf16.gmra.mrb[20].mxu0 %v1263_v58  ;;  %vm897_vm14 = vcmp.ge.f32.partialorder %v769_v39, 0.0  ;;  %v1025_v63 = vmul.f32 0.2, %v769_v39  ;;  %3400 = vmatpush3.bf16.msra.mxu1 %v3598_v17  ;;  %v800_v57 = vadd.f32 %v4097_v28, %v588_v44  ;;  %v606_v62 = vmul.f32 %v4112_v59, %v394_v52 }
  0x66   : > { %3401 = vmatprep.subr.bf16.mxu1 %v3600_v3  ;;  %v816_v60 = vadd.f32 %v4097_v28, %v604_v46  ;;  %v391_v2 = vunpack.c.l.bf16 %v4193_v14  ;;  %vm913_vm15 = vcmp.ge.f32.partialorder %v785_v56, 0.0  ;;  %v1041_v7 = vmul.f32 0.2, %v785_v56  ;;  %3363 = vmatprep.subr.bf16.mxu0 %v3603_v45  ;;  %v3608_v14 = vld [vmem:[%s4757_s3 + $0x2e8] sm:$0xff]   ;;  %v4263_v3 = vld [vmem:[%s3801_s14 + $0x1d0] sm:$0xff] }
  0x67   : > { %v1153_v8 = vsel %vm897_vm14, %v769_v39, %v1025_v63  ;;  %vm928_vm0 = vcmp.ge.f32.partialorder %v800_v57, 0.0  ;;  %v1056_v12 = vmul.f32 0.2, %v800_v57  ;;  %v802_v1 = vadd.f32 %v4116_v53, %v590_v61 }
  0x68   : > { %vm944_vm1 = vcmp.ge.f32.partialorder %v816_v60, 0.0  ;;  %v1072_v13 = vmul.f32 0.2, %v816_v60  ;;  %v1169_v15 = vsel %vm913_vm15, %v785_v56, %v1041_v7  ;;  %v818_v10 = vadd.f32 %v4116_v53, %v606_v62  ;;  %3364 = vmatpush3.bf16.msra.mxu0 %v3605_v6 }
  0x69   : > { %3402 = vmatpush3.bf16.msra.mxu1 %v3602_v40  ;;  %v587_v17 = vmul.f32 %v4089_v24, %v375_v50  ;;  %v603_v18 = vmul.f32 %v4089_v24, %v391_v2  ;;  %v1265_v19 = vpack.c.bf16 %v1169_v15, %v1153_v8  ;;  %v1184_v20 = vsel %vm928_vm0, %v800_v57, %v1056_v12  ;;  %v3613_v40 = vld [vmem:[%s4757_s3 + $0x230] sm:$0xff]   ;;  %v3615_v57 = vld [vmem:[%s4757_s3 + $0x278] sm:$0xff]  }
  0x6a   : > { %v1200_v21 = vsel %vm944_vm1, %v816_v60, %v1072_v13  ;;  %vm930_vm2 = vcmp.ge.f32.partialorder %v802_v1, 0.0  ;;  %3403 = vmatprep.subr.bf16.mxu1 %v3604_v5  ;;  %vm946_vm3 = vcmp.ge.f32.partialorder %v818_v10, 0.0  ;;  %v1058_v29 = vmul.f32 0.2, %v802_v1  ;;  %3365 = vmatprep.subr.bf16.mxu0 %v3607_v11 }
  0x6b   : > { %v1280_v27 = vpack.c.bf16 %v1200_v21, %v1184_v20  ;;  %v1074_v30 = vmul.f32 0.2, %v818_v10  ;;  %2567 = vmatmul.mubr.bf16.gmra.mrb[20].mxu1 %v1265_v19  ;;  %v799_v51 = vadd.f32 %v4120_v54, %v587_v17  ;;  %v815_v38 = vadd.f32 %v4120_v54, %v603_v18  ;;  %v3618_v20 = vld [vmem:[%s4757_s3 + $0x2b8] sm:$0xff]   ;;  %v247_v21 = vld [vmem:[%s3801_s14 + $0x20] sm:$0xff] }
  0x6c   : > { %v377_v58 = vunpack.c.l.bf16 %v4202_v22  ;;  %v393_v16 = vunpack.c.l.bf16 %v4205_v23  ;;  %v1186_v39 = vsel %vm930_vm2, %v802_v1, %v1058_v29  ;;  %v408_v45 = vunpack.c.h.bf16 %v4256_v48  ;;  %3366 = vmatpush3.bf16.msra.mxu0 %v3609_v9  ;;  %v3616_v1 = vld [vmem:[%s4757_s3 + $0x2f8] sm:$0xff]  }
  0x6d   : > { %2509 = vmatprep.mubr.bf16.mxu0 %v1280_v27  ;;  %v1202_v44 = vsel %vm946_vm3, %v818_v10, %v1074_v30  ;;  %3404 = vmatpush3.bf16.msra.mxu1 %v3606_v0  ;;  %v424_v46 = vunpack.c.h.bf16 %v4263_v3  ;;  %vm927_vm4 = vcmp.ge.f32.partialorder %v799_v51, 0.0  ;;  %vm943_vm5 = vcmp.ge.f32.partialorder %v815_v38, 0.0  ;;  %v3614_v0 = vld [vmem:[%s4757_s3 + $0x2b0] sm:$0xff]  }
  0x6e   : > { %v1282_v52 = vpack.c.bf16 %v1202_v44, %v1186_v39  ;;  %v1055_v50 = vmul.f32 0.2, %v799_v51  ;;  %3405 = vmatprep.subr.bf16.mxu1 %v3608_v14  ;;  %v1071_v22 = vmul.f32 0.2, %v815_v38  ;;  %v589_v23 = vmul.f32 %v4108_v49, %v377_v58  ;;  %3367 = vmatprep.subr.bf16.mxu0 %v3611_v36  ;;  %v3617_v14 = vld [vmem:[%s4757_s3 + $0x238] sm:$0xff]   ;;  %v255_v36 = vld [vmem:[%s3801_s14 + $0x60] sm:$0xff] }
  0x6f   : > { %v605_v56 = vmul.f32 %v4108_v49, %v393_v16  ;;  %v620_v63 = vmul.f32 %v4093_v25, %v408_v45  ;;  %v636_v61 = vmul.f32 %v4093_v25, %v424_v46  ;;  %v410_v62 = vunpack.c.h.bf16 %v4269_v32  ;;  %v3620_v45 = vld [vmem:[%s4757_s3 + $0x3c0] sm:$0xff]  }
  0x70   : > { %2574 = vmatprep.mubr.bf16.mxu1 %v1282_v52  ;;  %v1183_v60 = vsel %vm927_vm4, %v799_v51, %v1055_v50  ;;  %v426_v2 = vunpack.c.h.bf16 %v4272_v34  ;;  %v1199_v5 = vsel %vm943_vm5, %v815_v38, %v1071_v22  ;;  %v801_v6 = vadd.f32 %v4131_v26, %v589_v23  ;;  %3368 = vmatpush3.bf16.msra.mxu0 %v3613_v40  ;;  %v3619_v51 = vld [vmem:[%s4757_s3 + $0x340] sm:$0xff]  }
  0x71   : > { %v817_v7 = vadd.f32 %v4131_v26, %v605_v56  ;;  %3406 = vmatpush3.bf16.msra.mxu1 %v3610_v4  ;;  %v832_v8 = vadd.f32 %v4097_v28, %v620_v63  ;;  %v1279_v11 = vpack.c.bf16 %v1199_v5, %v1183_v60  ;;  %v848_v25 = vadd.f32 %v4097_v28, %v636_v61  ;;  %v4345_v56 = vld [vmem:[%s4756_s2 + $0x8] sm:$0xff] }
  0x72   : > { %v622_v12 = vmul.f32 %v4112_v59, %v410_v62  ;;  %v638_v13 = vmul.f32 %v4112_v59, %v426_v2  ;;  %3407 = vmatprep.subr.bf16.mxu1 %v3612_v47  ;;  %vm929_vm6 = vcmp.ge.f32.partialorder %v801_v6, 0.0  ;;  %v1057_v9 = vmul.f32 0.2, %v801_v6  ;;  %3369 = vmatprep.subr.bf16.mxu0 %v3615_v57 }
  0x73   : > { %vm945_vm7 = vcmp.ge.f32.partialorder %v817_v7, 0.0  ;;  %v1073_v15 = vmul.f32 0.2, %v817_v7  ;;  %2510 = vmatmul.mubr.bf16.gmra.mrb[24].mxu0 %v1279_v11  ;;  %vm960_vm8 = vcmp.ge.f32.partialorder %v832_v8, 0.0  ;;  %vm976_vm9 = vcmp.ge.f32.partialorder %v848_v25, 0.0 }
  0x74   : > { %v1088_v28 = vmul.f32 0.2, %v832_v8  ;;  %v1104_v59 = vmul.f32 0.2, %v848_v25  ;;  %v1185_v10 = vsel %vm929_vm6, %v801_v6, %v1057_v9  ;;  %v834_v18 = vadd.f32 %v4116_v53, %v622_v12  ;;  %3370 = vmatpush3.bf16.msra.mxu0 %v3617_v14 }
  0x75   : > { %v1201_v17 = vsel %vm945_vm7, %v817_v7, %v1073_v15  ;;  %v850_v19 = vadd.f32 %v4116_v53, %v638_v13  ;;  %3408 = vmatpush3.bf16.msra.mxu1 %v3614_v0  ;;  %v407_v4 = vunpack.c.l.bf16 %v4256_v48  ;;  %v423_v16 = vunpack.c.l.bf16 %v4263_v3  ;;  %v4332_v48 = vld [vmem:[%s4755_s1 + $0x8] sm:$0xff]  ;;  %3435 = vmatprep.subr.bf16.mxu0 %v3619_v51 }
  0x76   : > { %v1281_v27 = vpack.c.bf16 %v1201_v17, %v1185_v10  ;;  %v1216_v29 = vsel %vm960_vm8, %v832_v8, %v1088_v28  ;;  %v1232_v30 = vsel %vm976_vm9, %v848_v25, %v1104_v59  ;;  %3409 = vmatprep.subr.bf16.mxu1 %v3616_v1  ;;  %vm962_vm10 = vcmp.ge.f32.partialorder %v834_v18, 0.0 }
  0x77   : > { %v1296_v38 = vpack.c.bf16 %v1232_v30, %v1216_v29  ;;  %vm978_vm11 = vcmp.ge.f32.partialorder %v850_v19, 0.0  ;;  %v1090_v53 = vmul.f32 0.2, %v834_v18  ;;  %v1106_v58 = vmul.f32 0.2, %v850_v19  ;;  %v4383_v29 = vld [vmem:[%s3801_s14 + $0xe0] sm:$0xff] }
  0x78   : > { %2575 = vmatmul.mubr.bf16.gmra.mrb[24].mxu1 %v1281_v27  ;;  %v619_v39 = vmul.f32 %v4089_v24, %v407_v4  ;;  %v409_v44 = vunpack.c.l.bf16 %v4269_v32  ;;  %v425_v47 = vunpack.c.l.bf16 %v4272_v34  ;;  %v315_v3 = vunpack.c.l.bf16 %v247_v21 }
  0x79   : > { %2517 = vmatprep.mubr.bf16.mxu0 %v1296_v38  ;;  %v1218_v46 = vsel %vm962_vm10, %v834_v18, %v1090_v53  ;;  %3410 = vmatpush3.bf16.msra.mxu1 %v3618_v20  ;;  %v316_v52 = vunpack.c.h.bf16 %v247_v21  ;;  %v1234_v50 = vsel %vm978_vm11, %v850_v19, %v1106_v58  ;;  %v635_v32 = vmul.f32 %v4089_v24, %v423_v16  ;;  %v4372_v18 = vld [vmem:[%s3801_s14 + $0xa0] sm:$0xff] }
  0x7a   : > { %v831_v22 = vadd.f32 %v4120_v54, %v619_v39  ;;  %v621_v23 = vmul.f32 %v4108_v49, %v409_v44  ;;  %3475 = vmatprep.subr.bf16.mxu1 %v3620_v45  ;;  %v1298_v63 = vpack.c.bf16 %v1234_v50, %v1218_v46  ;;  %v637_v34 = vmul.f32 %v4108_v49, %v425_v47 }
  0x7b   : > { %v331_v40 = vunpack.c.l.bf16 %v255_v36  ;;  %v332_v57 = vunpack.c.h.bf16 %v255_v36  ;;  %v847_v60 = vadd.f32 %v4120_v54, %v635_v32  ;;  %v4353_v2 = vrot.slane %v4332_v48, %v3810_v35  ;;  %v248_v54 = vld [vmem:[%s3801_s14 + $0x28] sm:$0xff] }
  0x7c   : > { %vm959_vm12 = vcmp.ge.f32.partialorder %v831_v22, 0.0  ;;  %v1087_v24 = vmul.f32 0.2, %v831_v22  ;;  %v833_v61 = vadd.f32 %v4131_v26, %v621_v23  ;;  %2582 = vmatprep.mubr.bf16.mxu1 %v1298_v63  ;;  %v849_v62 = vadd.f32 %v4131_v26, %v637_v34 }
  0x7d   : > { %v4357_v5 = vrot.slane %v4332_v48, %v3793_v31  ;;  %v4361_v49 = vrot.slane %v4345_v56, %v3793_v31  ;;  %vm975_vm13 = vcmp.ge.f32.partialorder %v847_v60, 0.0  ;;  %v1103_v6 = vmul.f32 0.2, %v847_v60  ;;  %v256_v31 = vld [vmem:[%s3801_s14 + $0x68] sm:$0xff] }
  0x7e   : > { %v1215_v7 = vsel %vm959_vm12, %v831_v22, %v1087_v24  ;;  %vm961_vm14 = vcmp.ge.f32.partialorder %v833_v61, 0.0  ;;  %vm977_vm15 = vcmp.ge.f32.partialorder %v849_v62, 0.0  ;;  %v1089_v26 = vmul.f32 0.2, %v833_v61 }
  0x7f   : > { %v1105_v8 = vmul.f32 0.2, %v849_v62  ;;  %v527_v0 = vmul.f32 %v4353_v2, %v315_v3  ;;  %v1231_v11 = vsel %vm975_vm13, %v847_v60, %v1103_v6  ;;  %v528_v25 = vmul.f32 %v4357_v5, %v316_v52 }
  0x80   : > { %v543_v12 = vmul.f32 %v4353_v2, %v331_v40  ;;  %v544_v13 = vmul.f32 %v4357_v5, %v332_v57  ;;  %v1295_v1 = vpack.c.bf16 %v1231_v11, %v1215_v7  ;;  %v1217_v14 = vsel %vm961_vm14, %v833_v61, %v1089_v26  ;;  %v264_v61 = vld [vmem:[%s3801_s14 + $0xa8] sm:$0xff] }
  0x81   : > { %v1233_v9 = vsel %vm977_vm15, %v849_v62, %v1105_v8  ;;  %v317_v15 = vunpack.c.l.bf16 %v248_v54  ;;  %v740_v59 = vadd.f32 %v4361_v49, %v528_v25  ;;  %v318_v17 = vunpack.c.h.bf16 %v248_v54  ;;  %v272_v62 = vld [vmem:[%s3801_s14 + $0xe8] sm:$0xff]  ;;  %v3621_v8 = vld [vmem:[%s4757_s3 + $0x300] sm:$0xff]  }
  0x82   : > { %v1297_v28 = vpack.c.bf16 %v1233_v9, %v1217_v14  ;;  %v756_v10 = vadd.f32 %v4361_v49, %v544_v13  ;;  %2518 = vmatmul.mubr.bf16.gmra.mrb[28].mxu0 %v1295_v1  ;;  %v333_v19 = vunpack.c.l.bf16 %v256_v31  ;;  %v334_v20 = vunpack.c.h.bf16 %v256_v31  ;;  %v3622_v25 = vld [vmem:[%s4757_s3 + $0x380] sm:$0xff]   ;;  %v3624_v14 = vld [vmem:[%s4757_s3 + $0x3c8] sm:$0xff]  }
  0x83   : > { %v4376_v21 = vrot.slane %v4332_v48, %v3816_v37  ;;  %v4380_v27 = vrot.slane %v4332_v48, %v3804_v33  ;;  %vm868_vm0 = vcmp.ge.f32.partialorder %v740_v59, 0.0  ;;  %v996_v30 = vmul.f32 0.2, %v740_v59 }
  0x84   : > { %2583 = vmatmul.mubr.bf16.gmra.mrb[28].mxu1 %v1297_v28  ;;  %vm884_vm1 = vcmp.ge.f32.partialorder %v756_v10, 0.0  ;;  %v1012_v4 = vmul.f32 0.2, %v756_v10  ;;  %v4391_v39 = vrot.slane %v4345_v56, %v3804_v33  ;;  %v4395_v44 = vrot.slane %v4345_v56, %v3810_v35 }
  0x85   : > { %v529_v36 = vmul.f32 %v4376_v21, %v317_v15  ;;  %v530_v51 = vmul.f32 %v4380_v27, %v318_v17  ;;  %v545_v38 = vmul.f32 %v4376_v21, %v333_v19  ;;  %v546_v53 = vmul.f32 %v4380_v27, %v334_v20  ;;  %v3625_v19 = vld [vmem:[%s4757_s3 + $0x308] sm:$0xff]  }
  0x86   : > { %v1124_v58 = vsel %vm868_vm0, %v740_v59, %v996_v30  ;;  %v1140_v16 = vsel %vm884_vm1, %v756_v10, %v1012_v4  ;;  %v4399_v46 = vrot.slane %v4345_v56, %v3816_v37  ;;  %v348_v47 = vunpack.c.h.bf16 %v4372_v18 }
  0x87   : > { %v1252_v45 = vpack.c.bf16 %v1140_v16, %v1124_v58  ;;  %v364_v3 = vunpack.c.h.bf16 %v4383_v29  ;;  %v742_v52 = vadd.f32 %v4391_v39, %v530_v51  ;;  %v758_v50 = vadd.f32 %v4391_v39, %v546_v53 }
  0x88   : > { %v739_v33 = vadd.f32 %v4395_v44, %v527_v0  ;;  %v755_v32 = vadd.f32 %v4395_v44, %v543_v12  ;;  %v741_v35 = vadd.f32 %v4399_v46, %v529_v36  ;;  %v757_v22 = vadd.f32 %v4399_v46, %v545_v38  ;;  %v3623_v12 = vld [vmem:[%s4757_s3 + $0x348] sm:$0xff]  }
  0x89   : > { %2623 = vmatprep.mubr.bf16.mxu0 %v1252_v45  ;;  %v560_v37 = vmul.f32 %v4357_v5, %v348_v47  ;;  %v576_v23 = vmul.f32 %v4357_v5, %v364_v3  ;;  %vm870_vm2 = vcmp.ge.f32.partialorder %v742_v52, 0.0  ;;  %vm886_vm3 = vcmp.ge.f32.partialorder %v758_v50, 0.0  ;;  %v3626_v36 = vld [vmem:[%s4757_s3 + $0x388] sm:$0xff]  }
  0x8a   : > { %v998_v63 = vmul.f32 0.2, %v742_v52  ;;  %v1014_v34 = vmul.f32 0.2, %v758_v50  ;;  %vm867_vm4 = vcmp.ge.f32.partialorder %v739_v33, 0.0  ;;  %vm883_vm5 = vcmp.ge.f32.partialorder %v755_v32, 0.0 }
  0x8b   : > { %v995_v40 = vmul.f32 0.2, %v739_v33  ;;  %v1011_v57 = vmul.f32 0.2, %v755_v32  ;;  %vm869_vm6 = vcmp.ge.f32.partialorder %v741_v35, 0.0  ;;  %vm885_vm7 = vcmp.ge.f32.partialorder %v757_v22, 0.0 }
  0x8c   : > { %v1126_v60 = vsel %vm870_vm2, %v742_v52, %v998_v63  ;;  %v1142_v24 = vsel %vm886_vm3, %v758_v50, %v1014_v34  ;;  %v997_v26 = vmul.f32 0.2, %v741_v35  ;;  %v1013_v11 = vmul.f32 0.2, %v757_v22  ;;  %v3628_v52 = vld [vmem:[%s4757_s3 + $0x3d0] sm:$0xff]  }
  0x8d   : > { %v1254_v54 = vpack.c.bf16 %v1142_v24, %v1126_v60  ;;  %v1123_v6 = vsel %vm867_vm4, %v739_v33, %v995_v40  ;;  %v1139_v7 = vsel %vm883_vm5, %v755_v32, %v1011_v57  ;;  %v772_v13 = vadd.f32 %v4361_v49, %v560_v37  ;;  %v4459_v37 = vld [vmem:[%s3801_s14 + $0x120] sm:$0xff] }
  0x8e   : > { %v1251_v0 = vpack.c.bf16 %v1139_v7, %v1123_v6  ;;  %v788_v31 = vadd.f32 %v4361_v49, %v576_v23  ;;  %v1125_v1 = vsel %vm869_vm6, %v741_v35, %v997_v26  ;;  %v350_v9 = vunpack.c.h.bf16 %v264_v61  ;;  %v287_v60 = vld [vmem:[%s3801_s14 + $0x160] sm:$0xff]  ;;  %v4467_v6 = vld [vmem:[%s3801_s14 + $0x128] sm:$0xff] }
  0x8f   : > { %2688 = vmatprep.mubr.bf16.mxu1 %v1254_v54  ;;  %v366_v15 = vunpack.c.h.bf16 %v272_v62  ;;  %v347_v28 = vunpack.c.l.bf16 %v4372_v18  ;;  %v1141_v59 = vsel %vm885_vm7, %v757_v22, %v1013_v11  ;;  %vm900_vm8 = vcmp.ge.f32.partialorder %v772_v13, 0.0  ;;  %v3627_v18 = vld [vmem:[%s4757_s3 + $0x350] sm:$0xff]   ;;  %v3631_v22 = vld [vmem:[%s4757_s3 + $0x358] sm:$0xff]   ;;  %v4470_v7 = vld [vmem:[%s3801_s14 + $0x168] sm:$0xff] }
  0x90   : > { %2624 = vmatmul.mubr.bf16.vlgmr.msra.gmra.mrb[32].mxu0 %v1251_v0  ;;  %vm916_vm9 = vcmp.ge.f32.partialorder %v788_v31, 0.0  ;;  %v1028_v10 = vmul.f32 0.2, %v772_v13  ;;  %v1253_v17 = vpack.c.bf16 %v1141_v59, %v1125_v1  ;;  %v1044_v20 = vmul.f32 0.2, %v788_v31  ;;  %v3630_v11 = vld [vmem:[%s4757_s3 + $0x390] sm:$0xff]  }
  0x91   : > { %3436 = vmatpush3.bf16.msra.mxu0 %v3621_v8  ;;  %v562_v30 = vmul.f32 %v4380_v27, %v350_v9  ;;  %v578_v4 = vmul.f32 %v4380_v27, %v366_v15  ;;  %v363_v38 = vunpack.c.l.bf16 %v4383_v29  ;;  %v559_v53 = vmul.f32 %v4353_v2, %v347_v28  ;;  %v3629_v29 = vld [vmem:[%s4757_s3 + $0x310] sm:$0xff]  }
  0x92   : > { %3437 = vmatprep.subr.bf16.mxu0 %v3623_v12  ;;  %v1156_v51 = vsel %vm900_vm8, %v772_v13, %v1028_v10  ;;  %v349_v58 = vunpack.c.l.bf16 %v264_v61  ;;  %2689 = vmatmul.mubr.bf16.vlgmr.msra.gmra.mrb[32].mxu1 %v1253_v17  ;;  %v1172_v16 = vsel %vm916_vm9, %v788_v31, %v1044_v20  ;;  %v365_v3 = vunpack.c.l.bf16 %v272_v62  ;;  %v3633_v31 = vld [vmem:[%s4757_s3 + $0x318] sm:$0xff]  }
  0x93   : > { %v774_v45 = vadd.f32 %v4391_v39, %v562_v30  ;;  %v790_v47 = vadd.f32 %v4391_v39, %v578_v4  ;;  %3476 = vmatpush3.bf16.msra.mxu1 %v3622_v25  ;;  %v1268_v50 = vpack.c.bf16 %v1172_v16, %v1156_v51  ;;  %v575_v33 = vmul.f32 %v4353_v2, %v363_v38  ;;  %v3632_v25 = vld [vmem:[%s4757_s3 + $0x3d8] sm:$0xff]   ;;  %v3636_v16 = vld [vmem:[%s4757_s3 + $0x3e0] sm:$0xff]  }
  0x94   : > { %v771_v32 = vadd.f32 %v4395_v44, %v559_v53  ;;  %v561_v35 = vmul.f32 %v4376_v21, %v349_v58  ;;  %3477 = vmatprep.subr.bf16.mxu1 %v3624_v14  ;;  %v577_v57 = vmul.f32 %v4376_v21, %v365_v3  ;;  %v380_v54 = vunpack.c.h.bf16 %v4459_v37  ;;  %v3634_v20 = vld [vmem:[%s4757_s3 + $0x398] sm:$0xff]  }
  0x95   : > { %3438 = vmatpush3.bf16.msra.mxu0 %v3625_v19  ;;  %vm902_vm10 = vcmp.ge.f32.partialorder %v774_v45, 0.0  ;;  %vm918_vm11 = vcmp.ge.f32.partialorder %v790_v47, 0.0  ;;  %v1030_v23 = vmul.f32 0.2, %v774_v45  ;;  %v1046_v63 = vmul.f32 0.2, %v790_v47  ;;  %2631 = vmatprep.mubr.bf16.mxu0 %v1268_v50 }
  0x96   : > { %v787_v34 = vadd.f32 %v4395_v44, %v575_v33  ;;  %vm899_vm12 = vcmp.ge.f32.partialorder %v771_v32, 0.0  ;;  %v1027_v40 = vmul.f32 0.2, %v771_v32  ;;  %3439 = vmatprep.subr.bf16.mxu0 %v3627_v18  ;;  %v773_v62 = vadd.f32 %v4399_v46, %v561_v35  ;;  %v3635_v19 = vld [vmem:[%s4757_s3 + $0x360] sm:$0xff]  }
  0x97   : > { %v1158_v24 = vsel %vm902_vm10, %v774_v45, %v1030_v23  ;;  %v1174_v61 = vsel %vm918_vm11, %v790_v47, %v1046_v63  ;;  %3478 = vmatpush3.bf16.msra.mxu1 %v3626_v36  ;;  %v789_v12 = vadd.f32 %v4399_v46, %v577_v57  ;;  %v396_v1 = vunpack.c.h.bf16 %v287_v60  ;;  %v3638_v35 = vld [vmem:[%s4757_s3 + $0x3a0] sm:$0xff]  }
  0x98   : > { %v1270_v26 = vpack.c.bf16 %v1174_v61, %v1158_v24  ;;  %vm915_vm13 = vcmp.ge.f32.partialorder %v787_v34, 0.0  ;;  %v1043_v8 = vmul.f32 0.2, %v787_v34  ;;  %v1155_v0 = vsel %vm899_vm12, %v771_v32, %v1027_v40  ;;  %3479 = vmatprep.subr.bf16.mxu1 %v3628_v52  ;;  %v3637_v52 = vld [vmem:[%s4757_s3 + $0x320] sm:$0xff]   ;;  %v3641_v24 = vld [vmem:[%s4757_s3 + $0x328] sm:$0xff]  }
  0x99   : > { %vm901_vm14 = vcmp.ge.f32.partialorder %v773_v62, 0.0  ;;  %v1029_v13 = vmul.f32 0.2, %v773_v62  ;;  %3440 = vmatpush3.bf16.msra.mxu0 %v3629_v29  ;;  %v592_v9 = vmul.f32 %v4357_v5, %v380_v54  ;;  %v382_v15 = vunpack.c.h.bf16 %v4467_v6  ;;  %v4519_v40 = vld [vmem:[%s3801_s14 + $0x1a0] sm:$0xff] }
  0x9a   : > { %2696 = vmatprep.mubr.bf16.mxu1 %v1270_v26  ;;  %v1171_v14 = vsel %vm915_vm13, %v787_v34, %v1043_v8  ;;  %3441 = vmatprep.subr.bf16.mxu0 %v3631_v22  ;;  %v398_v28 = vunpack.c.h.bf16 %v4470_v7  ;;  %vm917_vm15 = vcmp.ge.f32.partialorder %v789_v12, 0.0  ;;  %v1045_v10 = vmul.f32 0.2, %v789_v12  ;;  %v3639_v22 = vld [vmem:[%s4757_s3 + $0x368] sm:$0xff]  }
  0x9b   : > { %v1267_v59 = vpack.c.bf16 %v1171_v14, %v1155_v0  ;;  %v1157_v17 = vsel %vm901_vm14, %v773_v62, %v1029_v13  ;;  %3480 = vmatpush3.bf16.msra.mxu1 %v3630_v11  ;;  %v608_v30 = vmul.f32 %v4357_v5, %v396_v1  ;;  %v804_v4 = vadd.f32 %v4361_v49, %v592_v9  ;;  %v3640_v34 = vld [vmem:[%s4757_s3 + $0x3e8] sm:$0xff]   ;;  %v4529_v11 = vld [vmem:[%s3801_s14 + $0x1e0] sm:$0xff]  ;;  %v3643_v1 = vld [vmem:[%s4757_s3 + $0x370] sm:$0xff]  }
  0x9c   : > { %v594_v18 = vmul.f32 %v4380_v27, %v382_v15  ;;  %v610_v36 = vmul.f32 %v4380_v27, %v398_v28  ;;  %v1173_v51 = vsel %vm917_vm15, %v789_v12, %v1045_v10  ;;  %3481 = vmatprep.subr.bf16.mxu1 %v3632_v25  ;;  %v379_v38 = vunpack.c.l.bf16 %v4459_v37  ;;  %v4532_v25 = vld [vmem:[%s3801_s14 + $0x1a8] sm:$0xff] }
  0x9d   : > { %2632 = vmatmul.mubr.bf16.gmra.mrb[36].mxu0 %v1267_v59  ;;  %v395_v53 = vunpack.c.l.bf16 %v287_v60  ;;  %v381_v58 = vunpack.c.l.bf16 %v4467_v6  ;;  %v1269_v45 = vpack.c.bf16 %v1173_v51, %v1157_v17  ;;  %v820_v47 = vadd.f32 %v4361_v49, %v608_v30  ;;  %v4535_v12 = vld [vmem:[%s3801_s14 + $0x1e8] sm:$0xff]  ;;  %v3644_v30 = vld [vmem:[%s4757_s3 + $0x3f0] sm:$0xff]  }
  0x9e   : > { %3442 = vmatpush3.bf16.msra.mxu0 %v3633_v31  ;;  %vm932_vm0 = vcmp.ge.f32.partialorder %v804_v4, 0.0  ;;  %v1060_v3 = vmul.f32 0.2, %v804_v4  ;;  %v806_v29 = vadd.f32 %v4391_v39, %v594_v18  ;;  %v822_v50 = vadd.f32 %v4391_v39, %v610_v36  ;;  %v3642_v28 = vld [vmem:[%s4757_s3 + $0x3a8] sm:$0xff]   ;;  %v3645_v36 = vld [vmem:[%s4757_s3 + $0x330] sm:$0xff]  }
  0x9f   : > { %v591_v33 = vmul.f32 %v4353_v2, %v379_v38  ;;  %v607_v32 = vmul.f32 %v4353_v2, %v395_v53  ;;  %3443 = vmatprep.subr.bf16.mxu0 %v3635_v19  ;;  %2697 = vmatmul.mubr.bf16.gmra.mrb[36].mxu1 %v1269_v45  ;;  %vm948_vm1 = vcmp.ge.f32.partialorder %v820_v47, 0.0  ;;  %v1076_v37 = vmul.f32 0.2, %v820_v47 }
  0xa0   : > { %v1188_v23 = vsel %vm932_vm0, %v804_v4, %v1060_v3  ;;  %v397_v63 = vunpack.c.l.bf16 %v4470_v7  ;;  %3482 = vmatpush3.bf16.msra.mxu1 %v3634_v20  ;;  %vm934_vm2 = vcmp.ge.f32.partialorder %v806_v29, 0.0  ;;  %vm950_vm3 = vcmp.ge.f32.partialorder %v822_v50, 0.0 }
  0xa1   : > { %v1062_v57 = vmul.f32 0.2, %v806_v29  ;;  %v1078_v60 = vmul.f32 0.2, %v822_v50  ;;  %v1204_v61 = vsel %vm948_vm1, %v820_v47, %v1076_v37  ;;  %v803_v62 = vadd.f32 %v4395_v44, %v591_v33  ;;  %3483 = vmatprep.subr.bf16.mxu1 %v3636_v16  ;;  %v3647_v16 = vld [vmem:[%s4757_s3 + $0x378] sm:$0xff]  }
  0xa2   : > { %v819_v54 = vadd.f32 %v4395_v44, %v607_v32  ;;  %v593_v6 = vmul.f32 %v4376_v21, %v381_v58  ;;  %v1284_v7 = vpack.c.bf16 %v1204_v61, %v1188_v23  ;;  %v609_v0 = vmul.f32 %v4376_v21, %v397_v63  ;;  %3444 = vmatpush3.bf16.msra.mxu0 %v3637_v52  ;;  %v3646_v32 = vld [vmem:[%s4757_s3 + $0x3b0] sm:$0xff]   ;;  %v3648_v23 = vld [vmem:[%s4757_s3 + $0x3f8] sm:$0xff]  }
  0xa3   : > { %v1190_v26 = vsel %vm934_vm2, %v806_v29, %v1062_v57  ;;  %v1206_v8 = vsel %vm950_vm3, %v822_v50, %v1078_v60  ;;  %vm931_vm4 = vcmp.ge.f32.partialorder %v803_v62, 0.0  ;;  %v1059_v31 = vmul.f32 0.2, %v803_v62  ;;  %3445 = vmatprep.subr.bf16.mxu0 %v3639_v22 }
  0xa4   : > { %v1286_v13 = vpack.c.bf16 %v1206_v8, %v1190_v26  ;;  %vm947_vm5 = vcmp.ge.f32.partialorder %v819_v54, 0.0  ;;  %2639 = vmatprep.mubr.bf16.mxu0 %v1284_v7  ;;  %v1075_v14 = vmul.f32 0.2, %v819_v54  ;;  %v805_v9 = vadd.f32 %v4399_v46, %v593_v6  ;;  %3484 = vmatpush3.bf16.msra.mxu1 %v3638_v35 }
  0xa5   : > { %v821_v15 = vadd.f32 %v4399_v46, %v609_v0  ;;  %v412_v59 = vunpack.c.h.bf16 %v4519_v40  ;;  %v1187_v10 = vsel %vm931_vm4, %v803_v62, %v1059_v31  ;;  %3485 = vmatprep.subr.bf16.mxu1 %v3640_v34  ;;  %v428_v17 = vunpack.c.h.bf16 %v4529_v11  ;;  %v3650_v62 = vld [vmem:[%s4757_s3 + $0x3b8] sm:$0xff]   ;;  %v257_v0 = vld [vmem:[%s3801_s14 + $0x70] sm:$0xff] }
  0xa6   : > { %2704 = vmatprep.mubr.bf16.mxu1 %v1286_v13  ;;  %v414_v19 = vunpack.c.h.bf16 %v4532_v25  ;;  %v430_v20 = vunpack.c.h.bf16 %v4535_v12  ;;  %v1203_v4 = vsel %vm947_vm5, %v819_v54, %v1075_v14  ;;  %vm933_vm6 = vcmp.ge.f32.partialorder %v805_v9, 0.0  ;;  %3446 = vmatpush3.bf16.msra.mxu0 %v3641_v24  ;;  %v249_v54 = vld [vmem:[%s3801_s14 + $0x30] sm:$0xff] }
  0xa7   : > { %vm949_vm7 = vcmp.ge.f32.partialorder %v821_v15, 0.0  ;;  %v1061_v18 = vmul.f32 0.2, %v805_v9  ;;  %v1283_v51 = vpack.c.bf16 %v1203_v4, %v1187_v10  ;;  %v1077_v38 = vmul.f32 0.2, %v821_v15  ;;  %3447 = vmatprep.subr.bf16.mxu0 %v3643_v1 }
  0xa8   : > { %v624_v53 = vmul.f32 %v4357_v5, %v412_v59  ;;  %v640_v58 = vmul.f32 %v4357_v5, %v428_v17  ;;  %3486 = vmatpush3.bf16.msra.mxu1 %v3642_v28  ;;  %v626_v47 = vmul.f32 %v4380_v27, %v414_v19  ;;  %v642_v3 = vmul.f32 %v4380_v27, %v430_v20 }
  0xa9   : > { %v1189_v45 = vsel %vm933_vm6, %v805_v9, %v1061_v18  ;;  %v411_v52 = vunpack.c.l.bf16 %v4519_v40  ;;  %2640 = vmatmul.mubr.bf16.gmra.mrb[40].mxu0 %v1283_v51  ;;  %v1205_v29 = vsel %vm949_vm7, %v821_v15, %v1077_v38  ;;  %v427_v33 = vunpack.c.l.bf16 %v4529_v11  ;;  %3487 = vmatprep.subr.bf16.mxu1 %v3644_v30  ;;  %v250_v15 = vld [vmem:[%s3801_s14 + $0x38] sm:$0xff] }
  0xaa   : > { %v836_v50 = vadd.f32 %v4361_v49, %v624_v53  ;;  %v852_v5 = vadd.f32 %v4361_v49, %v640_v58  ;;  %v1285_v35 = vpack.c.bf16 %v1205_v29, %v1189_v45  ;;  %v838_v22 = vadd.f32 %v4391_v39, %v626_v47  ;;  %3448 = vmatpush3.bf16.msra.mxu0 %v3645_v36  ;;  %v3649_v49 = vld [vmem:[%s4757_s3 + $0x338] sm:$0xff]  }
  0xab   : > { %v854_v27 = vadd.f32 %v4391_v39, %v642_v3  ;;  %v623_v37 = vmul.f32 %v4353_v2, %v411_v52  ;;  %3449 = vmatprep.subr.bf16.mxu0 %v3647_v16  ;;  %v639_v24 = vmul.f32 %v4353_v2, %v427_v33  ;;  %v413_v8 = vunpack.c.l.bf16 %v4532_v25  ;;  %v258_v51 = vld [vmem:[%s3801_s14 + $0x78] sm:$0xff] }
  0xac   : > { %vm964_vm8 = vcmp.ge.f32.partialorder %v836_v50, 0.0  ;;  %vm980_vm9 = vcmp.ge.f32.partialorder %v852_v5, 0.0  ;;  %v1092_v63 = vmul.f32 0.2, %v836_v50  ;;  %v1108_v34 = vmul.f32 0.2, %v852_v5  ;;  %2705 = vmatmul.mubr.bf16.gmra.mrb[40].mxu1 %v1285_v35 }
  0xad   : > { %vm966_vm10 = vcmp.ge.f32.partialorder %v838_v22, 0.0  ;;  %vm982_vm11 = vcmp.ge.f32.partialorder %v854_v27, 0.0  ;;  %v1094_v39 = vmul.f32 0.2, %v838_v22  ;;  %v1110_v40 = vmul.f32 0.2, %v854_v27  ;;  %3488 = vmatpush3.bf16.msra.mxu1 %v3646_v32 }
  0xae   : > { %v1220_v57 = vsel %vm964_vm8, %v836_v50, %v1092_v63  ;;  %v1236_v60 = vsel %vm980_vm9, %v852_v5, %v1108_v34  ;;  %v835_v61 = vadd.f32 %v4395_v44, %v623_v37  ;;  %3489 = vmatprep.subr.bf16.mxu1 %v3648_v23  ;;  %3450 = vmatpush3.bf16.msra.mxu0 %v3649_v49  ;;  %v429_v31 = vunpack.c.l.bf16 %v4535_v12  ;;  %v4630_v37 = vld [vmem:[%s3801_s14 + $0xf0] sm:$0xff] }
  0xaf   : > { %v1300_v6 = vpack.c.bf16 %v1236_v60, %v1220_v57  ;;  %v1222_v7 = vsel %vm966_vm10, %v838_v22, %v1094_v39  ;;  %v1238_v26 = vsel %vm982_vm11, %v854_v27, %v1110_v40  ;;  %v851_v2 = vadd.f32 %v4395_v44, %v639_v24  ;;  %v4627_v27 = vld [vmem:[%s3801_s14 + $0xb0] sm:$0xff] }
  0xb0   : > { %v1302_v11 = vpack.c.bf16 %v1238_v26, %v1222_v7  ;;  %vm963_vm12 = vcmp.ge.f32.partialorder %v835_v61, 0.0  ;;  %v1091_v13 = vmul.f32 0.2, %v835_v61  ;;  %v625_v1 = vmul.f32 %v4376_v21, %v413_v8 }
  0xb1   : > { %2647 = vmatprep.mubr.bf16.mxu0 %v1300_v6  ;;  %v319_v14 = vunpack.c.l.bf16 %v249_v54  ;;  %v320_v9 = vunpack.c.h.bf16 %v249_v54  ;;  %vm979_vm13 = vcmp.ge.f32.partialorder %v851_v2, 0.0  ;;  %v1107_v28 = vmul.f32 0.2, %v851_v2  ;;  %3490 = vmatpush3.bf16.msra.mxu1 %v3650_v62 }
  0xb2   : > { %2712 = vmatprep.mubr.bf16.mxu1 %v1302_v11  ;;  %v1219_v25 = vsel %vm963_vm12, %v835_v61, %v1091_v13  ;;  %v335_v59 = vunpack.c.l.bf16 %v257_v0  ;;  %v641_v10 = vmul.f32 %v4376_v21, %v429_v31  ;;  %v837_v44 = vadd.f32 %v4399_v46, %v625_v1 }
  0xb3   : > { %v336_v17 = vunpack.c.h.bf16 %v257_v0  ;;  %v4596_v12 = vrot.slane %v4332_v48, %v3826_v41  ;;  %v1235_v19 = vsel %vm979_vm13, %v851_v2, %v1107_v28  ;;  %v4600_v20 = vrot.slane %v4332_v48, %v3829_v42  ;;  %v266_v2 = vld [vmem:[%s3801_s14 + $0xb8] sm:$0xff] }
  0xb4   : > { %v4604_v30 = vrot.slane %v4345_v56, %v3829_v42  ;;  %v321_v4 = vunpack.c.l.bf16 %v250_v15  ;;  %v1299_v18 = vpack.c.bf16 %v1235_v19, %v1219_v25  ;;  %v853_v21 = vadd.f32 %v4399_v46, %v641_v10 }
  0xb5   : > { %vm965_vm14 = vcmp.ge.f32.partialorder %v837_v44, 0.0  ;;  %v1093_v36 = vmul.f32 0.2, %v837_v44  ;;  %v531_v38 = vmul.f32 %v4596_v12, %v319_v14  ;;  %v532_v53 = vmul.f32 %v4600_v20, %v320_v9  ;;  %v274_v14 = vld [vmem:[%s3801_s14 + $0xf8] sm:$0xff] }
  0xb6   : > { %v547_v58 = vmul.f32 %v4596_v12, %v335_v59  ;;  %v548_v16 = vmul.f32 %v4600_v20, %v336_v17  ;;  %2648 = vmatmul.mubr.bf16.gmra.mrb[44].mxu0 %v1299_v18  ;;  %vm981_vm15 = vcmp.ge.f32.partialorder %v853_v21, 0.0  ;;  %v1109_v42 = vmul.f32 0.2, %v853_v21 }
  0xb7   : > { %v1221_v45 = vsel %vm965_vm14, %v837_v44, %v1093_v36  ;;  %v322_v47 = vunpack.c.h.bf16 %v250_v15  ;;  %v744_v46 = vadd.f32 %v4604_v30, %v532_v53  ;;  %v337_v52 = vunpack.c.l.bf16 %v258_v51 }
  0xb8   : > { %v760_v3 = vadd.f32 %v4604_v30, %v548_v16  ;;  %v338_v29 = vunpack.c.h.bf16 %v258_v51  ;;  %v1237_v50 = vsel %vm981_vm15, %v853_v21, %v1109_v42  ;;  %v4616_v5 = vrot.slane %v4332_v48, %v3832_v43 }
  0xb9   : > { %v4620_v33 = vrot.slane %v4332_v48, %v3964_v55  ;;  %v4624_v32 = vrot.slane %v4345_v56, %v3964_v55  ;;  %v1301_v35 = vpack.c.bf16 %v1237_v50, %v1221_v45  ;;  %vm872_vm0 = vcmp.ge.f32.partialorder %v744_v46, 0.0 }
  0xba   : > { %vm888_vm1 = vcmp.ge.f32.partialorder %v760_v3, 0.0  ;;  %v1000_v22 = vmul.f32 0.2, %v744_v46  ;;  %v1016_v23 = vmul.f32 0.2, %v760_v3  ;;  %v533_v49 = vmul.f32 %v4616_v5, %v321_v4 }
  0xbb   : > { %v534_v63 = vmul.f32 %v4620_v33, %v322_v47  ;;  %v549_v48 = vmul.f32 %v4616_v5, %v337_v52  ;;  %2713 = vmatmul.mubr.bf16.gmra.mrb[44].mxu1 %v1301_v35  ;;  %v550_v55 = vmul.f32 %v4620_v33, %v338_v29  ;;  %v4638_v39 = vrot.slane %v4345_v56, %v3826_v41 }
  0xbc   : > { %v1128_v34 = vsel %vm872_vm0, %v744_v46, %v1000_v22  ;;  %v4642_v40 = vrot.slane %v4345_v56, %v3832_v43  ;;  %v1144_v57 = vsel %vm888_vm1, %v760_v3, %v1016_v23  ;;  %v352_v24 = vunpack.c.h.bf16 %v4627_v27 }
  0xbd   : > { %v746_v60 = vadd.f32 %v4624_v32, %v534_v63  ;;  %v368_v61 = vunpack.c.h.bf16 %v4630_v37  ;;  %v1256_v62 = vpack.c.bf16 %v1144_v57, %v1128_v34  ;;  %v762_v54 = vadd.f32 %v4624_v32, %v550_v55  ;;  %v281_v63 = vld [vmem:[%s3801_s14 + $0x130] sm:$0xff] }
  0xbe   : > { %v743_v6 = vadd.f32 %v4638_v39, %v531_v38  ;;  %v759_v41 = vadd.f32 %v4638_v39, %v547_v58  ;;  %v745_v43 = vadd.f32 %v4642_v40, %v533_v49  ;;  %v761_v56 = vadd.f32 %v4642_v40, %v549_v48  ;;  %v289_v48 = vld [vmem:[%s3801_s14 + $0x170] sm:$0xff] }
  0xbf   : > { %vm874_vm2 = vcmp.ge.f32.partialorder %v746_v60, 0.0  ;;  %v1002_v7 = vmul.f32 0.2, %v746_v60  ;;  %2753 = vmatprep.mubr.bf16.mxu0 %v1256_v62  ;;  %vm890_vm3 = vcmp.ge.f32.partialorder %v762_v54, 0.0  ;;  %v1018_v26 = vmul.f32 0.2, %v762_v54 }
  0xc0   : > { %vm871_vm4 = vcmp.ge.f32.partialorder %v743_v6, 0.0  ;;  %vm887_vm5 = vcmp.ge.f32.partialorder %v759_v41, 0.0  ;;  %v999_v0 = vmul.f32 0.2, %v743_v6  ;;  %v1015_v11 = vmul.f32 0.2, %v759_v41 }
  0xc1   : > { %v1130_v8 = vsel %vm874_vm2, %v746_v60, %v1002_v7  ;;  %vm873_vm6 = vcmp.ge.f32.partialorder %v745_v43, 0.0  ;;  %v1146_v13 = vsel %vm890_vm3, %v762_v54, %v1018_v26  ;;  %vm889_vm7 = vcmp.ge.f32.partialorder %v761_v56, 0.0  ;;  %v282_v7 = vld [vmem:[%s3801_s14 + $0x138] sm:$0xff] }
  0xc2   : > { %v1001_v31 = vmul.f32 0.2, %v745_v43  ;;  %v1017_v1 = vmul.f32 0.2, %v761_v56  ;;  %v1258_v9 = vpack.c.bf16 %v1146_v13, %v1130_v8  ;;  %v1127_v15 = vsel %vm871_vm4, %v743_v6, %v999_v0 }
  0xc3   : > { %v1143_v28 = vsel %vm887_vm5, %v759_v41, %v1015_v11  ;;  %v564_v25 = vmul.f32 %v4600_v20, %v352_v24  ;;  %v580_v17 = vmul.f32 %v4600_v20, %v368_v61  ;;  %v354_v18 = vunpack.c.h.bf16 %v266_v2 }
  0xc4   : > { %v1255_v59 = vpack.c.bf16 %v1143_v28, %v1127_v15  ;;  %v1129_v10 = vsel %vm873_vm6, %v745_v43, %v1001_v31  ;;  %v1145_v44 = vsel %vm889_vm7, %v761_v56, %v1017_v1  ;;  %2818 = vmatprep.mubr.bf16.mxu1 %v1258_v9  ;;  %v370_v21 = vunpack.c.h.bf16 %v274_v14  ;;  %v290_v43 = vld [vmem:[%s3801_s14 + $0x178] sm:$0xff] }
  0xc5   : > { %v1257_v19 = vpack.c.bf16 %v1145_v44, %v1129_v10  ;;  %v776_v4 = vadd.f32 %v4604_v30, %v564_v25  ;;  %v792_v36 = vadd.f32 %v4604_v30, %v580_v17  ;;  %v351_v51 = vunpack.c.l.bf16 %v4627_v27 }
  0xc6   : > { %2754 = vmatmul.mubr.bf16.vlgmr.msra.gmra.mrb[48].mxu0 %v1255_v59  ;;  %v367_v38 = vunpack.c.l.bf16 %v4630_v37  ;;  %v353_v53 = vunpack.c.l.bf16 %v266_v2  ;;  %v566_v16 = vmul.f32 %v4620_v33, %v354_v18  ;;  %v582_v42 = vmul.f32 %v4620_v33, %v370_v21 }
  0xc7   : > { %2819 = vmatmul.mubr.bf16.vlgmr.msra.gmra.mrb[48].mxu1 %v1257_v19  ;;  %vm904_vm8 = vcmp.ge.f32.partialorder %v776_v4, 0.0  ;;  %v1032_v58 = vmul.f32 0.2, %v776_v4  ;;  %vm920_vm9 = vcmp.ge.f32.partialorder %v792_v36, 0.0  ;;  %v1048_v45 = vmul.f32 0.2, %v792_v36 }
  0xc8   : > { %v563_v47 = vmul.f32 %v4596_v12, %v351_v51  ;;  %v579_v46 = vmul.f32 %v4596_v12, %v367_v38  ;;  %v778_v52 = vadd.f32 %v4624_v32, %v566_v16  ;;  %v794_v29 = vadd.f32 %v4624_v32, %v582_v42  ;;  %v297_v42 = vld [vmem:[%s3801_s14 + $0x1b0] sm:$0xff] }
  0xc9   : > { %v1160_v3 = vsel %vm904_vm8, %v776_v4, %v1032_v58  ;;  %v369_v50 = vunpack.c.l.bf16 %v274_v14  ;;  %v1176_v35 = vsel %vm920_vm9, %v792_v36, %v1048_v45  ;;  %v565_v37 = vmul.f32 %v4616_v5, %v353_v53 }
  0xca   : > { %v775_v22 = vadd.f32 %v4638_v39, %v563_v47  ;;  %v791_v27 = vadd.f32 %v4638_v39, %v579_v46  ;;  %v1272_v23 = vpack.c.bf16 %v1176_v35, %v1160_v3  ;;  %vm906_vm10 = vcmp.ge.f32.partialorder %v778_v52, 0.0 }
  0xcb   : > { %vm922_vm11 = vcmp.ge.f32.partialorder %v794_v29, 0.0  ;;  %v1034_v49 = vmul.f32 0.2, %v778_v52  ;;  %v1050_v34 = vmul.f32 0.2, %v794_v29  ;;  %v581_v24 = vmul.f32 %v4616_v5, %v369_v50 }
  0xcc   : > { %vm903_vm12 = vcmp.ge.f32.partialorder %v775_v22, 0.0  ;;  %vm919_vm13 = vcmp.ge.f32.partialorder %v791_v27, 0.0  ;;  %v1031_v55 = vmul.f32 0.2, %v775_v22  ;;  %2761 = vmatprep.mubr.bf16.mxu0 %v1272_v23  ;;  %v1047_v60 = vmul.f32 0.2, %v791_v27 }
  0xcd   : > { %v1162_v57 = vsel %vm906_vm10, %v778_v52, %v1034_v49  ;;  %v777_v61 = vadd.f32 %v4642_v40, %v565_v37  ;;  %v1178_v62 = vsel %vm922_vm11, %v794_v29, %v1050_v34  ;;  %v384_v6 = vunpack.c.h.bf16 %v281_v63  ;;  %v298_v23 = vld [vmem:[%s3801_s14 + $0x1b8] sm:$0xff] }
  0xce   : > { %v1159_v54 = vsel %vm903_vm12, %v775_v22, %v1031_v55  ;;  %v400_v41 = vunpack.c.h.bf16 %v289_v48  ;;  %v1274_v56 = vpack.c.bf16 %v1178_v62, %v1162_v57  ;;  %v1175_v26 = vsel %vm919_vm13, %v791_v27, %v1047_v60  ;;  %v305_v27 = vld [vmem:[%s3801_s14 + $0x1f0] sm:$0xff]  ;;  %v306_v62 = vld [vmem:[%s3801_s14 + $0x1f8] sm:$0xff]  ;;  %s3023_s14 = sshll.u32 %s4761_s29, 2  ;;  %s3024_s29 = sshll.u32 %s4763_s19, 1 }
  0xcf   : > { %v793_v8 = vadd.f32 %v4642_v40, %v581_v24  ;;  %vm905_vm14 = vcmp.ge.f32.partialorder %v777_v61, 0.0  ;;  %v1271_v0 = vpack.c.bf16 %v1175_v26, %v1159_v54  ;;  %v1033_v11 = vmul.f32 0.2, %v777_v61  ;;  %s4734_s10 = scalar_lea.vmem %s4758_s4, %s3023_s14  ;;  %s241_s13 = scalar_lea.vmem %s4759_s5, %s3024_s29 }
  0xd0   : > { %v596_v2 = vmul.f32 %v4600_v20, %v384_v6  ;;  %v612_v13 = vmul.f32 %v4600_v20, %v400_v41  ;;  %2826 = vmatprep.mubr.bf16.mxu1 %v1274_v56  ;;  %v386_v1 = vunpack.c.h.bf16 %v282_v7  ;;  %v402_v14 = vunpack.c.h.bf16 %v290_v43 }
  0xd1   : > { %vm921_vm15 = vcmp.ge.f32.partialorder %v793_v8, 0.0  ;;  %v1049_v31 = vmul.f32 0.2, %v793_v8  ;;  %2762 = vmatmul.mubr.bf16.gmra.mrb[52].mxu0 %v1271_v0  ;;  %v1161_v9 = vsel %vm905_vm14, %v777_v61, %v1033_v11  ;;  %v383_v25 = vunpack.c.l.bf16 %v281_v63 }
  0xd2   : > { %v808_v15 = vadd.f32 %v4604_v30, %v596_v2  ;;  %v824_v28 = vadd.f32 %v4604_v30, %v612_v13  ;;  %v598_v10 = vmul.f32 %v4620_v33, %v386_v1  ;;  %v614_v44 = vmul.f32 %v4620_v33, %v402_v14 }
  0xd3   : > { %v1177_v59 = vsel %vm921_vm15, %v793_v8, %v1049_v31  ;;  %v399_v17 = vunpack.c.l.bf16 %v289_v48  ;;  %v595_v51 = vmul.f32 %v4596_v12, %v383_v25  ;;  %v385_v58 = vunpack.c.l.bf16 %v282_v7 }
  0xd4   : > { %v1273_v19 = vpack.c.bf16 %v1177_v59, %v1161_v9  ;;  %vm936_vm0 = vcmp.ge.f32.partialorder %v808_v15, 0.0  ;;  %vm952_vm1 = vcmp.ge.f32.partialorder %v824_v28, 0.0  ;;  %v1064_v4 = vmul.f32 0.2, %v808_v15 }
  0xd5   : > { %v1080_v18 = vmul.f32 0.2, %v824_v28  ;;  %v810_v21 = vadd.f32 %v4624_v32, %v598_v10  ;;  %v826_v36 = vadd.f32 %v4624_v32, %v614_v44  ;;  %v611_v53 = vmul.f32 %v4596_v12, %v399_v17 }
  0xd6   : > { %2827 = vmatmul.mubr.bf16.gmra.mrb[52].mxu1 %v1273_v19  ;;  %v1192_v38 = vsel %vm936_vm0, %v808_v15, %v1064_v4  ;;  %v401_v16 = vunpack.c.l.bf16 %v290_v43  ;;  %v807_v52 = vadd.f32 %v4638_v39, %v595_v51  ;;  %v597_v35 = vmul.f32 %v4616_v5, %v385_v58 }
  0xd7   : > { %v1208_v45 = vsel %vm952_vm1, %v824_v28, %v1080_v18  ;;  %vm938_vm2 = vcmp.ge.f32.partialorder %v810_v21, 0.0  ;;  %vm954_vm3 = vcmp.ge.f32.partialorder %v826_v36, 0.0  ;;  %v1066_v47 = vmul.f32 0.2, %v810_v21 }
  0xd8   : > { %v1288_v46 = vpack.c.bf16 %v1208_v45, %v1192_v38  ;;  %v1082_v3 = vmul.f32 0.2, %v826_v36  ;;  %v823_v29 = vadd.f32 %v4638_v39, %v611_v53  ;;  %v613_v22 = vmul.f32 %v4616_v5, %v401_v16 }
  0xd9   : > { %v1194_v50 = vsel %vm938_vm2, %v810_v21, %v1066_v47  ;;  %v416_v37 = vunpack.c.h.bf16 %v297_v42  ;;  %vm935_vm4 = vcmp.ge.f32.partialorder %v807_v52, 0.0  ;;  %v1063_v63 = vmul.f32 0.2, %v807_v52 }
  0xda   : > { %2769 = vmatprep.mubr.bf16.mxu0 %v1288_v46  ;;  %v1210_v49 = vsel %vm954_vm3, %v826_v36, %v1082_v3  ;;  %vm951_vm5 = vcmp.ge.f32.partialorder %v823_v29, 0.0  ;;  %v1079_v34 = vmul.f32 0.2, %v823_v29  ;;  %v809_v55 = vadd.f32 %v4642_v40, %v597_v35 }
  0xdb   : > { %v1290_v48 = vpack.c.bf16 %v1210_v49, %v1194_v50  ;;  %v825_v57 = vadd.f32 %v4642_v40, %v613_v22  ;;  %v1191_v60 = vsel %vm935_vm4, %v807_v52, %v1063_v63  ;;  %v432_v24 = vunpack.c.h.bf16 %v305_v27 }
  0xdc   : > { %v628_v61 = vmul.f32 %v4600_v20, %v416_v37  ;;  %v418_v54 = vunpack.c.h.bf16 %v298_v23  ;;  %v1207_v6 = vsel %vm951_vm5, %v823_v29, %v1079_v34  ;;  %vm937_vm6 = vcmp.ge.f32.partialorder %v809_v55, 0.0 }
  0xdd   : > { %2834 = vmatprep.mubr.bf16.mxu1 %v1290_v48  ;;  %vm953_vm7 = vcmp.ge.f32.partialorder %v825_v57, 0.0  ;;  %v1065_v41 = vmul.f32 0.2, %v809_v55  ;;  %v1287_v7 = vpack.c.bf16 %v1207_v6, %v1191_v60  ;;  %v1081_v43 = vmul.f32 0.2, %v825_v57 }
  0xde   : > { %v644_v56 = vmul.f32 %v4600_v20, %v432_v24  ;;  %v840_v26 = vadd.f32 %v4604_v30, %v628_v61  ;;  %v434_v0 = vunpack.c.h.bf16 %v306_v62  ;;  %v630_v11 = vmul.f32 %v4620_v33, %v418_v54 }
  0xdf   : > { %v1193_v8 = vsel %vm937_vm6, %v809_v55, %v1065_v41  ;;  %v415_v2 = vunpack.c.l.bf16 %v297_v42  ;;  %2770 = vmatmul.mubr.bf16.gmra.mrb[56].mxu0 %v1287_v7  ;;  %v1209_v13 = vsel %vm953_vm7, %v825_v57, %v1081_v43  ;;  %v431_v28 = vunpack.c.l.bf16 %v305_v27 }
  0xe0   : > { %v856_v31 = vadd.f32 %v4604_v30, %v644_v56  ;;  %vm968_vm8 = vcmp.ge.f32.partialorder %v840_v26, 0.0  ;;  %v1096_v1 = vmul.f32 0.2, %v840_v26  ;;  %v1289_v14 = vpack.c.bf16 %v1209_v13, %v1193_v8 }
  0xe1   : > { %v646_v9 = vmul.f32 %v4620_v33, %v434_v0  ;;  %v842_v15 = vadd.f32 %v4624_v32, %v630_v11  ;;  %v627_v59 = vmul.f32 %v4596_v12, %v415_v2  ;;  %v643_v30 = vmul.f32 %v4596_v12, %v431_v28 }
  0xe2   : > { %vm984_vm9 = vcmp.ge.f32.partialorder %v856_v31, 0.0  ;;  %v1112_v20 = vmul.f32 0.2, %v856_v31  ;;  %v1224_v25 = vsel %vm968_vm8, %v840_v26, %v1096_v1  ;;  %2835 = vmatmul.mubr.bf16.gmra.mrb[56].mxu1 %v1289_v14  ;;  %v417_v4 = vunpack.c.l.bf16 %v298_v23 }
  0xe3   : > { %v858_v10 = vadd.f32 %v4624_v32, %v646_v9  ;;  %vm970_vm10 = vcmp.ge.f32.partialorder %v842_v15, 0.0  ;;  %v1098_v44 = vmul.f32 0.2, %v842_v15  ;;  %v839_v19 = vadd.f32 %v4638_v39, %v627_v59 }
  0xe4   : > { %v1240_v17 = vsel %vm984_vm9, %v856_v31, %v1112_v20  ;;  %v433_v33 = vunpack.c.l.bf16 %v306_v62  ;;  %v855_v51 = vadd.f32 %v4638_v39, %v643_v30  ;;  %v629_v53 = vmul.f32 %v4616_v5, %v417_v4 }
  0xe5   : > { %v1304_v18 = vpack.c.bf16 %v1240_v17, %v1224_v25  ;;  %vm986_vm11 = vcmp.ge.f32.partialorder %v858_v10, 0.0  ;;  %v1114_v21 = vmul.f32 0.2, %v858_v10  ;;  %v1226_v36 = vsel %vm970_vm10, %v842_v15, %v1098_v44 }
  0xe6   : > { %vm967_vm12 = vcmp.ge.f32.partialorder %v839_v19, 0.0  ;;  %v1095_v38 = vmul.f32 0.2, %v839_v19  ;;  %v645_v58 = vmul.f32 %v4616_v5, %v433_v33  ;;  %vm983_vm13 = vcmp.ge.f32.partialorder %v855_v51, 0.0 }
  0xe7   : > { %2777 = vmatprep.mubr.bf16.mxu0 %v1304_v18  ;;  %v1242_v32 = vsel %vm986_vm11, %v858_v10, %v1114_v21  ;;  %v1111_v16 = vmul.f32 0.2, %v855_v51  ;;  %v841_v45 = vadd.f32 %v4642_v40, %v629_v53 }
  0xe8   : > { %v1306_v12 = vpack.c.bf16 %v1242_v32, %v1226_v36  ;;  %v1223_v42 = vsel %vm967_vm12, %v839_v19, %v1095_v38  ;;  %v857_v47 = vadd.f32 %v4642_v40, %v645_v58 }
  0xe9   : > { %v1239_v46 = vsel %vm983_vm13, %v855_v51, %v1111_v16  ;;  %vm969_vm14 = vcmp.ge.f32.partialorder %v841_v45, 0.0  ;;  %v1097_v39 = vmul.f32 0.2, %v841_v45 }
  0xea   : > { %2842 = vmatprep.mubr.bf16.mxu1 %v1306_v12  ;;  %v1303_v3 = vpack.c.bf16 %v1239_v46, %v1223_v42  ;;  %vm985_vm15 = vcmp.ge.f32.partialorder %v857_v47, 0.0  ;;  %v1113_v52 = vmul.f32 0.2, %v857_v47 }
  0xeb   : > { %v1225_v29 = vsel %vm969_vm14, %v841_v45, %v1097_v39 }
  0xec   : > { %2778 = vmatmul.mubr.bf16.gmra.mrb[60].mxu0 %v1303_v3  ;;  %v1241_v50 = vsel %vm985_vm15, %v857_v47, %v1113_v52 }
  0xed   : > { %v1305_v35 = vpack.c.bf16 %v1241_v50, %v1225_v29 }
  0xef   : > { %2843 = vmatmul.mubr.bf16.gmra.mrb[60].mxu1 %v1305_v35 }
  0xfa   : > { %v3211_v5 = vpop.f32.mrb[0].mxu0 }
  0xfb   : > { %v3212_v22 = vpop.f32.mrb[1].mxu0 }
  0xfc   : > { %v3251_v27 = vpop.f32.mrb[0].mxu1  ;;  %v3213_v37 = vadd.f32 %v3212_v22, %v3211_v5  ;;  %v3214_v23 = vpop.f32.mrb[2].mxu0 }
  0xfd   : > { %v3252_v49 = vpop.f32.mrb[1].mxu1  ;;  %v3215_v63 = vpop.f32.mrb[3].mxu0 }
  0xfe   : > { %v3253_v40 = vadd.f32 %v3252_v49, %v3251_v27  ;;  %v3254_v48 = vpop.f32.mrb[2].mxu1  ;;  %v3216_v34 = vadd.f32 %v3215_v63, %v3214_v23 }
  0xff   : > { %v3255_v55 = vpop.f32.mrb[3].mxu1 }
 0x100   : > { %v2431_v57 = vadd.f32 %v3253_v40, %v3213_v37  ;;  %v3256_v60 = vadd.f32 %v3255_v55, %v3254_v48 }
 0x102   : > { %v2434_v24 = vadd.f32 %v3256_v60, %v3216_v34 }
 0x104   : > { %v3217_v61 = vpop.f32.mrb[4].mxu0 }
 0x105   : > { %v3218_v62 = vpop.f32.mrb[5].mxu0 }
 0x106   : > { %v3219_v54 = vadd.f32 %v3218_v62, %v3217_v61  ;;  %v3220_v6 = vpop.f32.mrb[6].mxu0 }
 0x107   : > { %v3221_v41 = vpop.f32.mrb[7].mxu0  ;;  %v3257_v43 = vpop.f32.mrb[4].mxu1 }
 0x108   : > { %v3222_v7 = vadd.f32 %v3221_v41, %v3220_v6  ;;  %v3258_v56 = vpop.f32.mrb[5].mxu1 }
 0x109   : > { %v3259_v26 = vadd.f32 %v3258_v56, %v3257_v43  ;;  %v3260_v8 = vpop.f32.mrb[6].mxu1 }
 0x10a   : > { %v3261_v0 = vpop.f32.mrb[7].mxu1 }
 0x10b   : > { %v2439_v11 = vadd.f32 %v3259_v26, %v3219_v54  ;;  %v3262_v2 = vadd.f32 %v3261_v0, %v3260_v8 }
 0x10d   : > { %v2442_v13 = vadd.f32 %v3262_v2, %v3222_v7 }
 0x110   : > { %v3223_v31 = vpop.f32.mrb[8].mxu0 }
 0x111   : > { %v3224_v1 = vpop.f32.mrb[9].mxu0 }
 0x112   : > { %v3225_v14 = vadd.f32 %v3224_v1, %v3223_v31  ;;  %v3226_v9 = vpop.f32.mrb[10].mxu0 }
 0x113   : > { %v3227_v15 = vpop.f32.mrb[11].mxu0 }
 0x114   : > { %v3228_v28 = vadd.f32 %v3227_v15, %v3226_v9 }
 0x116   : > { %v3263_v20 = vpop.f32.mrb[8].mxu1 }
 0x117   : > { %v3264_v25 = vpop.f32.mrb[9].mxu1 }
 0x118   : > { %v3265_v59 = vadd.f32 %v3264_v25, %v3263_v20  ;;  %v3266_v10 = vpop.f32.mrb[10].mxu1 }
 0x119   : > { %v3267_v44 = vpop.f32.mrb[11].mxu1 }
 0x11a   : > { %v2447_v30 = vadd.f32 %v3265_v59, %v3225_v14  ;;  %v3268_v17 = vadd.f32 %v3267_v44, %v3266_v10 }
 0x11c   : > { %v2450_v19 = vadd.f32 %v3268_v17, %v3228_v28 }
 0x11d   : > { %v3229_v4 = vpop.f32.mrb[12].mxu0 }
 0x11e   : > { %v3230_v33 = vpop.f32.mrb[13].mxu0 }
 0x11f   : > { %v3231_v18 = vadd.f32 %v3230_v33, %v3229_v4  ;;  %v3232_v21 = vpop.f32.mrb[14].mxu0 }
 0x120   : > { %v3233_v36 = vpop.f32.mrb[15].mxu0 }
 0x121   : > { %v3234_v51 = vadd.f32 %v3233_v36, %v3232_v21  ;;  %v3269_v38 = vpop.f32.mrb[12].mxu1 }
 0x122   : > { %v3270_v53 = vpop.f32.mrb[13].mxu1 }
 0x123   : > { %v3271_v32 = vadd.f32 %v3270_v53, %v3269_v38  ;;  %v3272_v58 = vpop.f32.mrb[14].mxu1 }
 0x124   : > { %v3273_v12 = vpop.f32.mrb[15].mxu1 }
 0x125   : > { %v2455_v16 = vadd.f32 %v3271_v32, %v3231_v18  ;;  %v3274_v42 = vadd.f32 %v3273_v12, %v3272_v58 }
 0x127   : > { %v4712_v45 = vadd.f32 %v3274_v42, %v3234_v51 }
 0x12a   : > { %v3291_v47 = vpop.f32.mrb[16].mxu0 }
 0x12b   : > { %v3292_v46 = vpop.f32.mrb[17].mxu0 }
 0x12c   : > { %v3293_v3 = vadd.f32 %v3292_v46, %v3291_v47  ;;  %v3294_v39 = vpop.f32.mrb[18].mxu0 }
 0x12d   : > { %v3295_v52 = vpop.f32.mrb[19].mxu0 }
 0x12e   : > { %v2496_v50 = vadd.f32 %v3293_v3, %v2431_v57  ;;  %v3296_v35 = vadd.f32 %v3295_v52, %v3294_v39 }
 0x12f   : > { %v3331_v29 = vpop.f32.mrb[16].mxu1 }
 0x130   : > { %v3332_v5 = vpop.f32.mrb[17].mxu1  ;;  %v2499_v37 = vadd.f32 %v3296_v35, %v2434_v24 }
 0x131   : > { %v3333_v22 = vadd.f32 %v3332_v5, %v3331_v29  ;;  %v3334_v27 = vpop.f32.mrb[18].mxu1 }
 0x132   : > { %v3335_v23 = vpop.f32.mrb[19].mxu1 }
 0x133   : > { %v2561_v49 = vadd.f32 %v3333_v22, %v2496_v50  ;;  %v3336_v63 = vadd.f32 %v3335_v23, %v3334_v27 }
 0x135   : > { %v2564_v40 = vadd.f32 %v3336_v63, %v2499_v37 }
 0x138   : > { %v3297_v48 = vpop.f32.mrb[20].mxu0 }
 0x139   : > { %v3298_v34 = vpop.f32.mrb[21].mxu0 }
 0x13a   : > { %v3299_v55 = vadd.f32 %v3298_v34, %v3297_v48  ;;  %v3300_v60 = vpop.f32.mrb[22].mxu0 }
 0x13b   : > { %v3301_v61 = vpop.f32.mrb[23].mxu0 }
 0x13c   : > { %v2504_v62 = vadd.f32 %v3299_v55, %v2439_v11  ;;  %v3302_v54 = vadd.f32 %v3301_v61, %v3300_v60 }
 0x13e   : > { %v2507_v6 = vadd.f32 %v3302_v54, %v2442_v13  ;;  %v3337_v41 = vpop.f32.mrb[20].mxu1 }
 0x13f   : > { %v3338_v7 = vpop.f32.mrb[21].mxu1 }
 0x140   : > { %v3339_v57 = vadd.f32 %v3338_v7, %v3337_v41  ;;  %v3340_v43 = vpop.f32.mrb[22].mxu1 }
 0x141   : > { %v3341_v56 = vpop.f32.mrb[23].mxu1 }
 0x142   : > { %v2569_v26 = vadd.f32 %v3339_v57, %v2504_v62  ;;  %v3342_v8 = vadd.f32 %v3341_v56, %v3340_v43 }
 0x144   : > { %v2572_v24 = vadd.f32 %v3342_v8, %v2507_v6 }
 0x146   : > { %v3303_v0 = vpop.f32.mrb[24].mxu0 }
 0x147   : > { %v3304_v2 = vpop.f32.mrb[25].mxu0 }
 0x148   : > { %v3305_v31 = vadd.f32 %v3304_v2, %v3303_v0  ;;  %v3306_v1 = vpop.f32.mrb[26].mxu0 }
 0x149   : > { %v3307_v14 = vpop.f32.mrb[27].mxu0 }
 0x14a   : > { %v2512_v15 = vadd.f32 %v3305_v31, %v2447_v30  ;;  %v3308_v28 = vadd.f32 %v3307_v14, %v3306_v1 }
 0x14b   : > { %v3343_v9 = vpop.f32.mrb[24].mxu1 }
 0x14c   : > { %v3344_v20 = vpop.f32.mrb[25].mxu1  ;;  %v2515_v13 = vadd.f32 %v3308_v28, %v2450_v19 }
 0x14d   : > { %v3345_v11 = vadd.f32 %v3344_v20, %v3343_v9  ;;  %v3346_v25 = vpop.f32.mrb[26].mxu1 }
 0x14e   : > { %v3347_v59 = vpop.f32.mrb[27].mxu1 }
 0x14f   : > { %v2577_v10 = vadd.f32 %v3345_v11, %v2512_v15  ;;  %v3348_v44 = vadd.f32 %v3347_v59, %v3346_v25 }
 0x151   : > { %v2580_v17 = vadd.f32 %v3348_v44, %v2515_v13 }
 0x155   : > { %v3309_v4 = vpop.f32.mrb[28].mxu0 }
 0x156   : > { %v3310_v18 = vpop.f32.mrb[29].mxu0 }
 0x157   : > { %v3349_v33 = vpop.f32.mrb[28].mxu1  ;;  %v3311_v21 = vadd.f32 %v3310_v18, %v3309_v4  ;;  %v3312_v51 = vpop.f32.mrb[30].mxu0 }
 0x158   : > { %v3350_v36 = vpop.f32.mrb[29].mxu1  ;;  %v3313_v32 = vpop.f32.mrb[31].mxu0 }
 0x159   : > { %v3351_v38 = vadd.f32 %v3350_v36, %v3349_v33  ;;  %v3352_v53 = vpop.f32.mrb[30].mxu1  ;;  %v2520_v58 = vadd.f32 %v3311_v21, %v2455_v16  ;;  %v3314_v30 = vadd.f32 %v3313_v32, %v3312_v51 }
 0x15a   : > { %v3353_v12 = vpop.f32.mrb[31].mxu1 }
 0x15b   : > { %v3354_v42 = vadd.f32 %v3353_v12, %v3352_v53  ;;  %v2585_v47 = vadd.f32 %v3351_v38, %v2520_v58  ;;  %v2523_v19 = vadd.f32 %v3314_v30, %v4712_v45 }
 0x15d   : > { %v2588_v46 = vadd.f32 %v3354_v42, %v2523_v19 }
 0x163   : > { %v3371_v3 = vpop.f32.mrb[32].mxu0 }
 0x164   : > { %v3372_v39 = vpop.f32.mrb[33].mxu0 }
 0x165   : > { %v3373_v52 = vadd.f32 %v3372_v39, %v3371_v3  ;;  %v3374_v29 = vpop.f32.mrb[34].mxu0  ;;  %v3411_v50 = vpop.f32.mrb[32].mxu1 }
 0x166   : > { %v3375_v35 = vpop.f32.mrb[35].mxu0  ;;  %v3412_v22 = vpop.f32.mrb[33].mxu1 }
 0x167   : > { %v2626_v5 = vadd.f32 %v3373_v52, %v2561_v49  ;;  %v3376_v27 = vadd.f32 %v3375_v35, %v3374_v29  ;;  %v3413_v37 = vadd.f32 %v3412_v22, %v3411_v50  ;;  %v3414_v23 = vpop.f32.mrb[34].mxu1 }
 0x168   : > { %v3415_v16 = vpop.f32.mrb[35].mxu1 }
 0x169   : > { %v2629_v63 = vadd.f32 %v3376_v27, %v2564_v40  ;;  %v2691_v48 = vadd.f32 %v3413_v37, %v2626_v5  ;;  %v3416_v34 = vadd.f32 %v3415_v16, %v3414_v23 }
 0x16b   : > { %v4715_v55 = vadd.f32 %v3416_v34, %v2629_v63 }
 0x170   : > { %v3377_v60 = vpop.f32.mrb[36].mxu0 }
 0x171   : > { %v3378_v45 = vpop.f32.mrb[37].mxu0 }
 0x172   : > { %v3379_v61 = vadd.f32 %v3378_v45, %v3377_v60  ;;  %v3380_v62 = vpop.f32.mrb[38].mxu0  ;;  %v3417_v54 = vpop.f32.mrb[36].mxu1 }
 0x173   : > { %v3381_v6 = vpop.f32.mrb[39].mxu0  ;;  %v3418_v7 = vpop.f32.mrb[37].mxu1 }
 0x174   : > { %v2634_v41 = vadd.f32 %v3379_v61, %v2569_v26  ;;  %v3382_v57 = vadd.f32 %v3381_v6, %v3380_v62  ;;  %v3419_v49 = vadd.f32 %v3418_v7, %v3417_v54  ;;  %v3420_v43 = vpop.f32.mrb[38].mxu1 }
 0x175   : > { %v3421_v8 = vpop.f32.mrb[39].mxu1 }
 0x176   : > { %v2637_v56 = vadd.f32 %v3382_v57, %v2572_v24  ;;  %v4717_v0 = vadd.f32 %v3419_v49, %v2634_v41  ;;  %v3422_v40 = vadd.f32 %v3421_v8, %v3420_v43 }
 0x178   : > { %v4719_v2 = vadd.f32 %v3422_v40, %v2637_v56 }
 0x17c   : > { %v3383_v31 = vpop.f32.mrb[40].mxu0 }
 0x17d   : > { %v3384_v1 = vpop.f32.mrb[41].mxu0 }
 0x17e   : > { %v3385_v14 = vadd.f32 %v3384_v1, %v3383_v31  ;;  %v3386_v9 = vpop.f32.mrb[42].mxu0 }
 0x17f   : > { %v3423_v15 = vpop.f32.mrb[40].mxu1  ;;  %v3387_v28 = vpop.f32.mrb[43].mxu0 }
 0x180   : > { %v2642_v20 = vadd.f32 %v3385_v14, %v2577_v10  ;;  %v3424_v11 = vpop.f32.mrb[41].mxu1  ;;  %v3388_v26 = vadd.f32 %v3387_v28, %v3386_v9 }
 0x181   : > { %v3425_v25 = vadd.f32 %v3424_v11, %v3423_v15  ;;  %v3426_v13 = vpop.f32.mrb[42].mxu1 }
 0x182   : > { %v2645_v59 = vadd.f32 %v3388_v26, %v2580_v17  ;;  %v3427_v44 = vpop.f32.mrb[43].mxu1 }
 0x183   : > { %v4721_v24 = vadd.f32 %v3425_v25, %v2642_v20  ;;  %v3428_v4 = vadd.f32 %v3427_v44, %v3426_v13 }
 0x185   : > { %v4723_v33 = vadd.f32 %v3428_v4, %v2645_v59 }
 0x189   : > { %v3389_v18 = vpop.f32.mrb[44].mxu0 }
 0x18a   : > { %v3390_v21 = vpop.f32.mrb[45].mxu0 }
 0x18b   : > { %v3391_v36 = vadd.f32 %v3390_v21, %v3389_v18  ;;  %v3392_v51 = vpop.f32.mrb[46].mxu0 }
 0x18c   : > { %v3393_v38 = vpop.f32.mrb[47].mxu0 }
 0x18d   : > { %v2650_v53 = vadd.f32 %v3391_v36, %v2585_v47  ;;  %v3394_v32 = vadd.f32 %v3393_v38, %v3392_v51 }
 0x18e   : > { %v3429_v58 = vpop.f32.mrb[44].mxu1 }
 0x18f   : > { %v3430_v10 = vpop.f32.mrb[45].mxu1  ;;  %v2653_v30 = vadd.f32 %v3394_v32, %v2588_v46 }
 0x190   : > { %v3431_v12 = vadd.f32 %v3430_v10, %v3429_v58  ;;  %v3432_v42 = vpop.f32.mrb[46].mxu1 }
 0x191   : > { %v3433_v19 = vpop.f32.mrb[47].mxu1 }
 0x192   : > { %v4725_v17 = vadd.f32 %v3431_v12, %v2650_v53  ;;  %v3434_v3 = vadd.f32 %v3433_v19, %v3432_v42 }
 0x194   : > { %v4727_v39 = vadd.f32 %v3434_v3, %v2653_v30 }
 0x199   : > { %v3451_v52 = vpop.f32.mrb[48].mxu0 }
 0x19a   : > { %v3491_v29 = vpop.f32.mrb[48].mxu1  ;;  %v3452_v50 = vpop.f32.mrb[49].mxu0 }
 0x19b   : > { %v3453_v35 = vadd.f32 %v3452_v50, %v3451_v52  ;;  %v3492_v5 = vpop.f32.mrb[49].mxu1  ;;  %v3454_v22 = vpop.f32.mrb[50].mxu0 }
 0x19c   : > { %v3493_v47 = vadd.f32 %v3492_v5, %v3491_v29  ;;  %v3494_v27 = vpop.f32.mrb[50].mxu1  ;;  %v3455_v37 = vpop.f32.mrb[51].mxu0 }
 0x19d   : > { %v2756_v23 = vadd.f32 %v3453_v35, %v2691_v48  ;;  %v3456_v46 = vadd.f32 %v3455_v37, %v3454_v22  ;;  %v3495_v63 = vpop.f32.mrb[51].mxu1 }
 0x19e   : > { %v3496_v16 = vadd.f32 %v3495_v63, %v3494_v27 }
 0x19f   : > { %v2821_v34 = vadd.f32 %v3493_v47, %v2756_v23  ;;  %v2759_v60 = vadd.f32 %v3456_v46, %v4715_v55 }
 0x1a1   : > { %v2824_v45 = vadd.f32 %v3496_v16, %v2759_v60  ;;  %v2865_v61 = vmul.f32 %v2821_v34, %v2821_v34 }
 0x1a3   : > { %v2851_v62 = vadd.f32 %v2824_v45, %v2821_v34  ;;  %v2866_v54 = vmul.f32 %v2824_v45, %v2824_v45  ;;  %v3175_v6 = vpack.c.bf16 %v2824_v45, %v2821_v34 }
 0x1a4   : > { %v3457_v48 = vpop.f32.mrb[52].mxu0 }
 0x1a5   : > { %v2873_v41 = vadd.f32 %v2866_v54, %v2865_v61  ;;  %3176 = vst [vmem:[%s4734_s10] sm:$0xff] %v3175_v6   ;;  %v3458_v7 = vpop.f32.mrb[53].mxu0 }
 0x1a6   : > { %v3459_v57 = vadd.f32 %v3458_v7, %v3457_v48  ;;  %v3460_v49 = vpop.f32.mrb[54].mxu0 }
 0x1a7   : > { %v3461_v43 = vpop.f32.mrb[55].mxu0 }
 0x1a8   : > { %v2764_v56 = vadd.f32 %v3459_v57, %v4717_v0  ;;  %v3462_v8 = vadd.f32 %v3461_v43, %v3460_v49 }
 0x1a9   : > { %v3497_v55 = vpop.f32.mrb[52].mxu1 }
 0x1aa   : > { %v3498_v40 = vpop.f32.mrb[53].mxu1  ;;  %v2767_v14 = vadd.f32 %v3462_v8, %v4719_v2 }
 0x1ab   : > { %v3499_v31 = vadd.f32 %v3498_v40, %v3497_v55  ;;  %v3500_v1 = vpop.f32.mrb[54].mxu1 }
 0x1ac   : > { %v3501_v9 = vpop.f32.mrb[55].mxu1 }
 0x1ad   : > { %v2829_v15 = vadd.f32 %v3499_v31, %v2764_v56  ;;  %v3502_v28 = vadd.f32 %v3501_v9, %v3500_v1 }
 0x1af   : > { %v2852_v20 = vadd.f32 %v2851_v62, %v2829_v15  ;;  %v2867_v11 = vmul.f32 %v2829_v15, %v2829_v15  ;;  %v2832_v26 = vadd.f32 %v3502_v28, %v2767_v14 }
 0x1b1   : > { %v2874_v25 = vadd.f32 %v2873_v41, %v2867_v11  ;;  %v2853_v13 = vadd.f32 %v2852_v20, %v2832_v26  ;;  %v2868_v59 = vmul.f32 %v2832_v26, %v2832_v26  ;;  %v3180_v44 = vpack.c.bf16 %v2832_v26, %v2829_v15 }
 0x1b2   : > { %v3463_v0 = vpop.f32.mrb[56].mxu0 }
 0x1b3   : > { %v2875_v4 = vadd.f32 %v2874_v25, %v2868_v59  ;;  %3192 = vst [vmem:[%s4734_s10 + $0x8] sm:$0xff] %v3180_v44   ;;  %v3464_v18 = vpop.f32.mrb[57].mxu0 }
 0x1b4   : > { %v3465_v21 = vadd.f32 %v3464_v18, %v3463_v0  ;;  %v3466_v36 = vpop.f32.mrb[58].mxu0 }
 0x1b5   : > { %v3503_v51 = vpop.f32.mrb[56].mxu1  ;;  %v3467_v38 = vpop.f32.mrb[59].mxu0 }
 0x1b6   : > { %v2772_v2 = vadd.f32 %v3465_v21, %v4721_v24  ;;  %v3504_v53 = vpop.f32.mrb[57].mxu1  ;;  %v3468_v32 = vadd.f32 %v3467_v38, %v3466_v36 }
 0x1b7   : > { %v3505_v58 = vadd.f32 %v3504_v53, %v3503_v51  ;;  %v3506_v10 = vpop.f32.mrb[58].mxu1 }
 0x1b8   : > { %v2775_v30 = vadd.f32 %v3468_v32, %v4723_v33  ;;  %v3507_v12 = vpop.f32.mrb[59].mxu1 }
 0x1b9   : > { %v2837_v42 = vadd.f32 %v3505_v58, %v2772_v2  ;;  %v3508_v19 = vadd.f32 %v3507_v12, %v3506_v10 }
 0x1bb   : > { %v2854_v3 = vadd.f32 %v2853_v13, %v2837_v42  ;;  %v2869_v52 = vmul.f32 %v2837_v42, %v2837_v42  ;;  %v2840_v29 = vadd.f32 %v3508_v19, %v2775_v30 }
 0x1bd   : > { %v2876_v50 = vadd.f32 %v2875_v4, %v2869_v52  ;;  %v2855_v35 = vadd.f32 %v2854_v3, %v2840_v29  ;;  %v2870_v5 = vmul.f32 %v2840_v29, %v2840_v29  ;;  %v3185_v22 = vpack.c.bf16 %v2840_v29, %v2837_v42 }
 0x1bf   : > { %v2877_v47 = vadd.f32 %v2876_v50, %v2870_v5  ;;  %3193 = vst [vmem:[%s4734_s10 + $0x10] sm:$0xff] %v3185_v22   ;;  %v3469_v24 = vpop.f32.mrb[60].mxu0 }
 0x1c0   : > { %v3470_v27 = vpop.f32.mrb[61].mxu0 }
 0x1c1   : > { %v3471_v37 = vadd.f32 %v3470_v27, %v3469_v24  ;;  %v3472_v23 = vpop.f32.mrb[62].mxu0 }
 0x1c2   : > { %v3473_v46 = vpop.f32.mrb[63].mxu0  ;;  %v3509_v63 = vpop.f32.mrb[60].mxu1 }
 0x1c3   : > { %v2780_v33 = vadd.f32 %v3471_v37, %v4725_v17  ;;  %v3474_v16 = vadd.f32 %v3473_v46, %v3472_v23  ;;  %v3510_v34 = vpop.f32.mrb[61].mxu1 }
 0x1c4   : > { %v3511_v60 = vadd.f32 %v3510_v34, %v3509_v63  ;;  %v3512_v45 = vpop.f32.mrb[62].mxu1 }
 0x1c5   : > { %v2783_v61 = vadd.f32 %v3474_v16, %v4727_v39  ;;  %v3513_v62 = vpop.f32.mrb[63].mxu1 }
 0x1c6   : > { %v2845_v54 = vadd.f32 %v3511_v60, %v2780_v33  ;;  %v3514_v6 = vadd.f32 %v3513_v62, %v3512_v45 }
 0x1c8   : > { %v2856_v41 = vadd.f32 %v2855_v35, %v2845_v54  ;;  %v2871_v48 = vmul.f32 %v2845_v54, %v2845_v54  ;;  %v2848_v7 = vadd.f32 %v3514_v6, %v2783_v61 }
 0x1ca   : > { %v2878_v57 = vadd.f32 %v2877_v47, %v2871_v48  ;;  %v2857_v49 = vadd.f32 %v2856_v41, %v2848_v7  ;;  %v2872_v43 = vmul.f32 %v2848_v7, %v2848_v7  ;;  %v3190_v55 = vpack.c.bf16 %v2848_v7, %v2845_v54 }
 0x1cc   : > { %v2858_v17 = vrot.slane %v2857_v49, 4  ;;  %v2879_v56 = vadd.f32 %v2878_v57, %v2872_v43  ;;  %3194 = vst [vmem:[%s4734_s10 + $0x18] sm:$0xff] %v3190_v55  }
 0x1ce   : > { %v2859_v8 = vadd.f32 %v2858_v17, %v2857_v49  ;;  %v2880_v40 = vrot.slane %v2879_v56, 4 }
 0x1d0   : > { %v2860_v31 = vrot.slane %v2859_v8, 2  ;;  %v2881_v1 = vadd.f32 %v2880_v40, %v2879_v56 }
 0x1d2   : > { %v2861_v39 = vadd.f32 %v2860_v31, %v2859_v8  ;;  %v2882_v14 = vrot.slane %v2881_v1, 2 }
 0x1d4   : > { %v2862_v9 = vrot.slane %v2861_v39, 1  ;;  %v2883_v15 = vadd.f32 %v2882_v14, %v2881_v1 }
 0x1d6   : > { %v2863_v28 = vadd.f32 %v2862_v9, %v2861_v39  ;;  %v2884_v20 = vrot.slane %v2883_v15, 1 }
 0x1d8   : > { %2864 = vst [vmem:[%s241_s13] sm:$0x1] %v2863_v28  ;;  %v2885_v11 = vadd.f32 %v2884_v20, %v2883_v15 }
 0x1da   : > { %2886 = vst [vmem:[%s241_s13 + $0x1] sm:$0x1] %v2885_v11 }
 0x1db PF: > { %s16_s18 = sadd.s32 1, %s3657_s18  }
 0x1dc   : > { %p13_p5 = scmp.ge.s32.totalorder %s16_s18, 6  }
 0x1de   :  { %15 = sbr.rel (!%p13_p5) target bundleno = 1 (0x1), region = 78 }

</bundles_post_ra>
